<compile_context>
chip_gen: v5e
topology: v5e:2x2
jax: 0.10.0
libtpu: 0.0.40
codegen_flags: <defaults>
</compile_context>

<pallas_src>
import functools

import jax
import jax.numpy as jnp
import numpy as np
from jax import lax
from jax.experimental import pallas as pl
from jax.experimental.pallas import tpu as pltpu

BN_EPS = 1e-5


def _zero_halo(buf, H, W):
    """Zero the 1-element border of a (H+2, W+2, C) staging buffer.

    Done every grid step (cost O((H+W)*C), tiny vs. the interior) so the
    invariant holds no matter how the 'parallel' batch axis is split across
    TensorCores; the interior is fully overwritten each step.
    """
    c = buf.shape[-1]
    zrow = jnp.zeros((W + 2, c), buf.dtype)
    zcol = jnp.zeros((H + 2, 1, c), buf.dtype)
    buf[0, :, :] = zrow
    buf[H + 1, :, :] = zrow
    buf[:, 0:1, :] = zcol
    buf[:, W + 1:W + 2, :] = zcol


def _conv3x3(src_pad, w_ref, b_ref, H, W):
    """3x3 'same' conv over a zero-padded (H+2, W+2, Cin) staging buffer.

    kw-outer / kh-inner: only 3 sublane-shifted window loads per conv; the kh
    shifts are slices along the untiled leading axis (free vreg selection).
    MXU operands stay in the native dtype; accumulation is f32.
    """
    acc = None
    for kw in range(3):
        wsl = src_pad[:, kw:kw + W, :]              # (H+2, W, Cin) — 1 shifted load per kw
        for kh in range(3):
            patch = wsl[kh:kh + H]                  # (H, W, Cin), leading-dim slice (free)
            p = lax.dot_general(
                patch, w_ref[kh, kw],
                dimension_numbers=(((2,), (0,)), ((), ())),
                preferred_element_type=jnp.float32)
            acc = p if acc is None else acc + p
    # TODO(synk): at production Cin (>=32), merge the kh taps into one K=3*Cin
    # matmul (lane-axis im2col) to deepen the MXU contraction; kept as 9 taps
    # here since lane-concat of Cin=4 pieces gains nothing at toy channel counts.
    return acc + b_ref[...].astype(jnp.float32)     # bias (1, Cout) broadcasts


def basic_block_kernel(
    x_ref,      # (1, H, W, Cin)     input tile (read once; also the residual)
    w1_ref,     # (3, 3, Cin, Cout)  conv1 weights with BN1 scale folded in
    b1_ref,     # (1, Cout)          fused BN1 bias
    w2_ref,     # (3, 3, Cout, Cout) conv2 weights with BN2 scale folded in
    b2_ref,     # (1, Cout)          fused BN2 bias
    out_ref,    # (1, H, W, Cout)
    xpad_s,     # VMEM scratch (H+2, W+2, Cin): zero-halo staging of x
    mid_s,      # VMEM scratch (H+2, W+2, Cout): zero-halo staging of relu(bn1(conv1))
    *,
    H,
    W,
    no_relu,
):
    _zero_halo(xpad_s, H, W)
    _zero_halo(mid_s, H, W)

    # Stage x with its halo; the residual is read straight from x_ref (already
    # in VMEM, aligned), so x is DMA'd from HBM exactly once per step.
    xpad_s[1:1 + H, 1:1 + W, :] = x_ref[0]

    # conv1 + bn1 (scale in weights, bias in kernel) + relu
    y = jnp.maximum(_conv3x3(xpad_s, w1_ref, b1_ref, H, W), 0.0)
    mid_s[1:1 + H, 1:1 + W, :] = y.astype(mid_s.dtype)

    # conv2 + bn2, residual add, optional final relu
    z = _conv3x3(mid_s, w2_ref, b2_ref, H, W)
    z = z + x_ref[0].astype(jnp.float32)
    if not no_relu:
        z = jnp.maximum(z, 0.0)
    out_ref[0] = z.astype(out_ref.dtype)


def basic_block_pallas(x, params, no_relu=False, data_format="NCHW"):
    """Pallas BasicBlock.forward (stride=1, downsample=None).

    TODO(synk): stride>1 / downsample branch of the PyTorch module is not
    implemented (only the PIDNet default path).
    """
    if data_format == "NCHW":
        # TODO(synk): keep the surrounding network NHWC end-to-end so these two
        # full-activation transpose round trips through HBM disappear.
        x = jnp.transpose(x, (0, 2, 3, 1))
    B, H, W, cin = x.shape
    w1 = params["w1"]  # (3, 3, Cin, Cout) HWIO
    w2 = params["w2"]  # (3, 3, Cout, Cout)
    cout = w1.shape[-1]

    # Fold eval-mode BatchNorm into the convs: per-channel scale goes into the
    # weights (free on the MXU path); only the bias add stays in the kernel.
    # Training-mode batch statistics are intentionally not reproduced.
    # (In deployment, precompute these once instead of per call.)
    s1 = params["gamma1"] / jnp.sqrt(params["var1"] + BN_EPS)
    b1 = params["beta1"] - params["mean1"] * s1
    s2 = params["gamma2"] / jnp.sqrt(params["var2"] + BN_EPS)
    b2 = params["beta2"] - params["mean2"] * s2
    w1f = (w1 * s1).astype(x.dtype)   # scale broadcasts over the out-channel axis
    w2f = (w2 * s2).astype(x.dtype)

    kernel = functools.partial(basic_block_kernel, H=H, W=W, no_relu=no_relu)

    # One grid step per batch element ('parallel' so megacore can split B).
    # For production PIDNet sizes, additionally tile H into the grid (row
    # blocks with a 1-row halo) so B=1 inference still uses both TensorCores
    # and tiles fit v7x's 64 MiB VMEM; channels should be (padded to) multiples
    # of 128 for lane-dense stores.
    out = pl.pallas_call(
        kernel,
        out_shape=jax.ShapeDtypeStruct((B, H, W, cout), x.dtype),
        grid_spec=pltpu.PrefetchScalarGridSpec(
            num_scalar_prefetch=0,
            grid=(B,),
            in_specs=[
                pl.BlockSpec((1, H, W, cin), lambda b: (b, 0, 0, 0)),
                pl.BlockSpec((3, 3, cin, cout), lambda b: (0, 0, 0, 0)),
                pl.BlockSpec((1, cout), lambda b: (0, 0)),
                pl.BlockSpec((3, 3, cout, cout), lambda b: (0, 0, 0, 0)),
                pl.BlockSpec((1, cout), lambda b: (0, 0)),
            ],
            out_specs=pl.BlockSpec((1, H, W, cout), lambda b: (b, 0, 0, 0)),
            scratch_shapes=[
                pltpu.VMEM((H + 2, W + 2, cin), x.dtype),
                pltpu.VMEM((H + 2, W + 2, cout), x.dtype),
            ],
        ),
        compiler_params=pltpu.CompilerParams(
            dimension_semantics=("parallel",),
            vmem_limit_bytes=32 * 1024 * 1024,
        ),
    )(
        x,
        w1f,
        b1.reshape(1, cout).astype(jnp.float32),
        w2f,
        b2.reshape(1, cout).astype(jnp.float32),
    )
    if data_format == "NCHW":
        out = jnp.transpose(out, (0, 3, 1, 2))
    return out


def basic_block_reference(x_nchw, params, no_relu=False):
    """Pure-JAX reference (lax.conv) for verification."""
    x = jnp.transpose(x_nchw, (0, 2, 3, 1))
    dn = ("NHWC", "HWIO", "NHWC")

    def conv(v, w):
        return lax.conv_general_dilated(v, w, (1, 1), "SAME", dimension_numbers=dn)

    def bn(v, g, b, m, var):
        return (v - m) / jnp.sqrt(var + BN_EPS) * g + b

    y = jax.nn.relu(bn(conv(x, params["w1"]), params["gamma1"], params["beta1"],
                       params["mean1"], params["var1"]))
    z = bn(conv(y, params["w2"]), params["gamma2"], params["beta2"],
           params["mean2"], params["var2"])
    z = z + x
    if not no_relu:
        z = jax.nn.relu(z)
    return jnp.transpose(z, (0, 3, 1, 2))


def make_params(key, inplanes, planes):
    ks = jax.random.split(key, 6)
    return {
        # conv weights in HWIO layout (3, 3, in, out), no bias (bias=False)
        "w1": 0.1 * jax.random.normal(ks[0], (3, 3, inplanes, planes), jnp.float32),
        "w2": 0.1 * jax.random.normal(ks[1], (3, 3, planes, planes), jnp.float32),
        "gamma1": 1.0 + 0.1 * jax.random.normal(ks[2], (planes,), jnp.float32),
        "beta1": 0.05 * jax.random.normal(ks[3], (planes,), jnp.float32),
        "mean1": 0.1 * jnp.arange(planes, dtype=jnp.float32),
        "var1": 1.0 + 0.05 * jnp.arange(planes, dtype=jnp.float32),
        "gamma2": 1.0 + 0.1 * jax.random.normal(ks[4], (planes,), jnp.float32),
        "beta2": 0.05 * jax.random.normal(ks[5], (planes,), jnp.float32),
        "mean2": -0.1 * jnp.arange(planes, dtype=jnp.float32),
        "var2": 1.0 + 0.03 * jnp.arange(planes, dtype=jnp.float32),
    }


if __name__ == "__main__":
    key = jax.random.PRNGKey(0)
    k_x, k_p = jax.random.split(key)

    B, C, Hs, Ws = 2, 4, 16, 16  # inplanes = planes = 4, stride = 1
    x = jax.random.normal(k_x, (B, C, Hs, Ws), jnp.float32)
    params = make_params(k_p, C, C)

    out = basic_block_pallas(x, params, no_relu=False)
    out = jax.block_until_ready(out)

    ref = jax.block_until_ready(basic_block_reference(x, params, no_relu=False))
    np.testing.assert_allclose(np.asarray(out), np.asarray(ref), rtol=1e-4, atol=1e-4)

    print("KERNEL_OK")
</pallas_src>

<mosaic_0001>
module attributes {stable_mosaic.version = 11 : i64} {
  func.func @basic_block_kernel(%arg0: i32, %arg1: memref<1x16x16x4xf32, #tpu.memory_space<vmem>>, %arg2: memref<3x3x4x4xf32, #tpu.memory_space<vmem>>, %arg3: memref<1x4xf32, #tpu.memory_space<vmem>>, %arg4: memref<3x3x4x4xf32, #tpu.memory_space<vmem>>, %arg5: memref<1x4xf32, #tpu.memory_space<vmem>>, %arg6: memref<1x16x16x4xf32, #tpu.memory_space<vmem>>, %arg7: memref<18x18x4xf32, #tpu.memory_space<vmem>>, %arg8: memref<18x18x4xf32, #tpu.memory_space<vmem>>) attributes {dimension_semantics = [#tpu.dimension_semantics<parallel>], iteration_bounds = array<i64: 2>, scalar_prefetch = 0 : i64, scratch_operands = 2 : i64, tpu.core_type = #tpu.core_type<tc>, window_params = [{transform_indices = @transform_0, window_bounds = array<i64: 1, 16, 16, 4>}, {pipeline_mode = #tpu.pipeline_mode<synchronous>, transform_indices = @transform_1, window_bounds = array<i64: 3, 3, 4, 4>}, {pipeline_mode = #tpu.pipeline_mode<synchronous>, transform_indices = @transform_2, window_bounds = array<i64: 1, 4>}, {pipeline_mode = #tpu.pipeline_mode<synchronous>, transform_indices = @transform_3, window_bounds = array<i64: 3, 3, 4, 4>}, {pipeline_mode = #tpu.pipeline_mode<synchronous>, transform_indices = @transform_4, window_bounds = array<i64: 1, 4>}, {transform_indices = @transform_5, window_bounds = array<i64: 1, 16, 16, 4>}]} {
    %cst = arith.constant 0.000000e+00 : f32
    %0 = vector.broadcast %cst : f32 to vector<18x4xf32>
    %cst_0 = arith.constant 0.000000e+00 : f32
    %1 = vector.broadcast %cst_0 : f32 to vector<18x1x4xf32>
    %c0 = arith.constant 0 : index
    %c0_1 = arith.constant 0 : index
    %c0_2 = arith.constant 0 : index
    %2 = vector.load %arg7[%c0, %c0_1, %c0_2] : memref<18x18x4xf32, #tpu.memory_space<vmem>>, vector<1x18x4xf32>
    %3 = vector.shape_cast %2 : vector<1x18x4xf32> to vector<18x4xf32>
    %4 = vector.shape_cast %0 : vector<18x4xf32> to vector<1x18x4xf32>
    tpu.vector_store %arg7[%c0, %c0_1, %c0_2], %4 {strides = array<i32>} : memref<18x18x4xf32, #tpu.memory_space<vmem>>, vector<1x18x4xf32>,
    %c17 = arith.constant 17 : index
    %c0_3 = arith.constant 0 : index
    %c0_4 = arith.constant 0 : index
    %5 = vector.load %arg7[%c17, %c0_3, %c0_4] : memref<18x18x4xf32, #tpu.memory_space<vmem>>, vector<1x18x4xf32>
    %6 = vector.shape_cast %5 : vector<1x18x4xf32> to vector<18x4xf32>
    %7 = vector.shape_cast %0 : vector<18x4xf32> to vector<1x18x4xf32>
    tpu.vector_store %arg7[%c17, %c0_3, %c0_4], %7 {strides = array<i32>} : memref<18x18x4xf32, #tpu.memory_space<vmem>>, vector<1x18x4xf32>,
    %c0_5 = arith.constant 0 : index
    %c0_6 = arith.constant 0 : index
    %c0_7 = arith.constant 0 : index
    %8 = vector.load %arg7[%c0_5, %c0_6, %c0_7] : memref<18x18x4xf32, #tpu.memory_space<vmem>>, vector<18x1x4xf32>
    tpu.vector_store %arg7[%c0_5, %c0_6, %c0_7], %1 {strides = array<i32>} : memref<18x18x4xf32, #tpu.memory_space<vmem>>, vector<18x1x4xf32>,
    %c0_8 = arith.constant 0 : index
    %c17_9 = arith.constant 17 : index
    %c0_10 = arith.constant 0 : index
    %9 = vector.load %arg7[%c0_8, %c17_9, %c0_10] : memref<18x18x4xf32, #tpu.memory_space<vmem>>, vector<18x1x4xf32>
    tpu.vector_store %arg7[%c0_8, %c17_9, %c0_10], %1 {strides = array<i32>} : memref<18x18x4xf32, #tpu.memory_space<vmem>>, vector<18x1x4xf32>,
    %cst_11 = arith.constant 0.000000e+00 : f32
    %10 = vector.broadcast %cst_11 : f32 to vector<18x4xf32>
    %cst_12 = arith.constant 0.000000e+00 : f32
    %11 = vector.broadcast %cst_12 : f32 to vector<18x1x4xf32>
    %c0_13 = arith.constant 0 : index
    %c0_14 = arith.constant 0 : index
    %c0_15 = arith.constant 0 : index
    %12 = vector.load %arg8[%c0_13, %c0_14, %c0_15] : memref<18x18x4xf32, #tpu.memory_space<vmem>>, vector<1x18x4xf32>
    %13 = vector.shape_cast %12 : vector<1x18x4xf32> to vector<18x4xf32>
    %14 = vector.shape_cast %10 : vector<18x4xf32> to vector<1x18x4xf32>
    tpu.vector_store %arg8[%c0_13, %c0_14, %c0_15], %14 {strides = array<i32>} : memref<18x18x4xf32, #tpu.memory_space<vmem>>, vector<1x18x4xf32>,
    %c17_16 = arith.constant 17 : index
    %c0_17 = arith.constant 0 : index
    %c0_18 = arith.constant 0 : index
    %15 = vector.load %arg8[%c17_16, %c0_17, %c0_18] : memref<18x18x4xf32, #tpu.memory_space<vmem>>, vector<1x18x4xf32>
    %16 = vector.shape_cast %15 : vector<1x18x4xf32> to vector<18x4xf32>
    %17 = vector.shape_cast %10 : vector<18x4xf32> to vector<1x18x4xf32>
    tpu.vector_store %arg8[%c17_16, %c0_17, %c0_18], %17 {strides = array<i32>} : memref<18x18x4xf32, #tpu.memory_space<vmem>>, vector<1x18x4xf32>,
    %c0_19 = arith.constant 0 : index
    %c0_20 = arith.constant 0 : index
    %c0_21 = arith.constant 0 : index
    %18 = vector.load %arg8[%c0_19, %c0_20, %c0_21] : memref<18x18x4xf32, #tpu.memory_space<vmem>>, vector<18x1x4xf32>
    tpu.vector_store %arg8[%c0_19, %c0_20, %c0_21], %11 {strides = array<i32>} : memref<18x18x4xf32, #tpu.memory_space<vmem>>, vector<18x1x4xf32>,
    %c0_22 = arith.constant 0 : index
    %c17_23 = arith.constant 17 : index
    %c0_24 = arith.constant 0 : index
    %19 = vector.load %arg8[%c0_22, %c17_23, %c0_24] : memref<18x18x4xf32, #tpu.memory_space<vmem>>, vector<18x1x4xf32>
    tpu.vector_store %arg8[%c0_22, %c17_23, %c0_24], %11 {strides = array<i32>} : memref<18x18x4xf32, #tpu.memory_space<vmem>>, vector<18x1x4xf32>,
    %c0_25 = arith.constant 0 : index
    %c0_26 = arith.constant 0 : index
    %c0_27 = arith.constant 0 : index
    %c0_28 = arith.constant 0 : index
    %20 = vector.load %arg1[%c0_25, %c0_26, %c0_27, %c0_28] : memref<1x16x16x4xf32, #tpu.memory_space<vmem>>, vector<1x16x16x4xf32>
    %21 = vector.shape_cast %20 : vector<1x16x16x4xf32> to vector<16x16x4xf32>
    %c1 = arith.constant 1 : index
    %c1_29 = arith.constant 1 : index
    %c0_30 = arith.constant 0 : index
    %22 = vector.load %arg7[%c1, %c1_29, %c0_30] : memref<18x18x4xf32, #tpu.memory_space<vmem>>, vector<16x16x4xf32>
    tpu.vector_store %arg7[%c1, %c1_29, %c0_30], %21 {strides = array<i32>} : memref<18x18x4xf32, #tpu.memory_space<vmem>>, vector<16x16x4xf32>,
    %c0_31 = arith.constant 0 : index
    %c0_32 = arith.constant 0 : index
    %c0_33 = arith.constant 0 : index
    %23 = vector.load %arg7[%c0_31, %c0_32, %c0_33] : memref<18x18x4xf32, #tpu.memory_space<vmem>>, vector<18x16x4xf32>
    %24 = vector.extract_strided_slice %23 {offsets = [0, 0, 0], sizes = [16, 16, 4], strides = [1, 1, 1]} : vector<18x16x4xf32> to vector<16x16x4xf32>
    %c0_34 = arith.constant 0 : index
    %c0_35 = arith.constant 0 : index
    %c0_36 = arith.constant 0 : index
    %c0_37 = arith.constant 0 : index
    %25 = vector.load %arg2[%c0_34, %c0_35, %c0_36, %c0_37] : memref<3x3x4x4xf32, #tpu.memory_space<vmem>>, vector<1x1x4x4xf32>
    %26 = vector.shape_cast %25 : vector<1x1x4x4xf32> to vector<4x4xf32>
    %cst_38 = arith.constant dense<0.000000e+00> : vector<16x16x4xf32>
    %27 = tpu.matmul %24, %26, %cst_38 {dimension_numbers = #tpu.dot_dimension_numbers<[2], [0], [0, 1], [1], [0, 0, 0, 1, 1, 1], [], []>} : vector<16x16x4xf32>, vector<4x4xf32>, vector<16x16x4xf32> -> vector<16x16x4xf32>
    %28 = vector.extract_strided_slice %23 {offsets = [1, 0, 0], sizes = [16, 16, 4], strides = [1, 1, 1]} : vector<18x16x4xf32> to vector<16x16x4xf32>
    %c1_39 = arith.constant 1 : index
    %c0_40 = arith.constant 0 : index
    %c0_41 = arith.constant 0 : index
    %c0_42 = arith.constant 0 : index
    %29 = vector.load %arg2[%c1_39, %c0_40, %c0_41, %c0_42] : memref<3x3x4x4xf32, #tpu.memory_space<vmem>>, vector<1x1x4x4xf32>
    %30 = vector.shape_cast %29 : vector<1x1x4x4xf32> to vector<4x4xf32>
    %cst_43 = arith.constant dense<0.000000e+00> : vector<16x16x4xf32>
    %31 = tpu.matmul %28, %30, %cst_43 {dimension_numbers = #tpu.dot_dimension_numbers<[2], [0], [0, 1], [1], [0, 0, 0, 1, 1, 1], [], []>} : vector<16x16x4xf32>, vector<4x4xf32>, vector<16x16x4xf32> -> vector<16x16x4xf32>
    %32 = arith.addf %27, %31 : vector<16x16x4xf32>
    %33 = vector.extract_strided_slice %23 {offsets = [2, 0, 0], sizes = [16, 16, 4], strides = [1, 1, 1]} : vector<18x16x4xf32> to vector<16x16x4xf32>
    %c2 = arith.constant 2 : index
    %c0_44 = arith.constant 0 : index
    %c0_45 = arith.constant 0 : index
    %c0_46 = arith.constant 0 : index
    %34 = vector.load %arg2[%c2, %c0_44, %c0_45, %c0_46] : memref<3x3x4x4xf32, #tpu.memory_space<vmem>>, vector<1x1x4x4xf32>
    %35 = vector.shape_cast %34 : vector<1x1x4x4xf32> to vector<4x4xf32>
    %cst_47 = arith.constant dense<0.000000e+00> : vector<16x16x4xf32>
    %36 = tpu.matmul %33, %35, %cst_47 {dimension_numbers = #tpu.dot_dimension_numbers<[2], [0], [0, 1], [1], [0, 0, 0, 1, 1, 1], [], []>} : vector<16x16x4xf32>, vector<4x4xf32>, vector<16x16x4xf32> -> vector<16x16x4xf32>
    %37 = arith.addf %32, %36 : vector<16x16x4xf32>
    %c0_48 = arith.constant 0 : index
    %c1_49 = arith.constant 1 : index
    %c0_50 = arith.constant 0 : index
    %38 = vector.load %arg7[%c0_48, %c1_49, %c0_50] : memref<18x18x4xf32, #tpu.memory_space<vmem>>, vector<18x16x4xf32>
    %39 = vector.extract_strided_slice %38 {offsets = [0, 0, 0], sizes = [16, 16, 4], strides = [1, 1, 1]} : vector<18x16x4xf32> to vector<16x16x4xf32>
    %c0_51 = arith.constant 0 : index
    %c1_52 = arith.constant 1 : index
    %c0_53 = arith.constant 0 : index
    %c0_54 = arith.constant 0 : index
    %40 = vector.load %arg2[%c0_51, %c1_52, %c0_53, %c0_54] : memref<3x3x4x4xf32, #tpu.memory_space<vmem>>, vector<1x1x4x4xf32>
    %41 = vector.shape_cast %40 : vector<1x1x4x4xf32> to vector<4x4xf32>
    %cst_55 = arith.constant dense<0.000000e+00> : vector<16x16x4xf32>
    %42 = tpu.matmul %39, %41, %cst_55 {dimension_numbers = #tpu.dot_dimension_numbers<[2], [0], [0, 1], [1], [0, 0, 0, 1, 1, 1], [], []>} : vector<16x16x4xf32>, vector<4x4xf32>, vector<16x16x4xf32> -> vector<16x16x4xf32>
    %43 = arith.addf %37, %42 : vector<16x16x4xf32>
    %44 = vector.extract_strided_slice %38 {offsets = [1, 0, 0], sizes = [16, 16, 4], strides = [1, 1, 1]} : vector<18x16x4xf32> to vector<16x16x4xf32>
    %c1_56 = arith.constant 1 : index
    %c1_57 = arith.constant 1 : index
    %c0_58 = arith.constant 0 : index
    %c0_59 = arith.constant 0 : index
    %45 = vector.load %arg2[%c1_56, %c1_57, %c0_58, %c0_59] : memref<3x3x4x4xf32, #tpu.memory_space<vmem>>, vector<1x1x4x4xf32>
    %46 = vector.shape_cast %45 : vector<1x1x4x4xf32> to vector<4x4xf32>
    %cst_60 = arith.constant dense<0.000000e+00> : vector<16x16x4xf32>
    %47 = tpu.matmul %44, %46, %cst_60 {dimension_numbers = #tpu.dot_dimension_numbers<[2], [0], [0, 1], [1], [0, 0, 0, 1, 1, 1], [], []>} : vector<16x16x4xf32>, vector<4x4xf32>, vector<16x16x4xf32> -> vector<16x16x4xf32>
    %48 = arith.addf %43, %47 : vector<16x16x4xf32>
    %49 = vector.extract_strided_slice %38 {offsets = [2, 0, 0], sizes = [16, 16, 4], strides = [1, 1, 1]} : vector<18x16x4xf32> to vector<16x16x4xf32>
    %c2_61 = arith.constant 2 : index
    %c1_62 = arith.constant 1 : index
    %c0_63 = arith.constant 0 : index
    %c0_64 = arith.constant 0 : index
    %50 = vector.load %arg2[%c2_61, %c1_62, %c0_63, %c0_64] : memref<3x3x4x4xf32, #tpu.memory_space<vmem>>, vector<1x1x4x4xf32>
    %51 = vector.shape_cast %50 : vector<1x1x4x4xf32> to vector<4x4xf32>
    %cst_65 = arith.constant dense<0.000000e+00> : vector<16x16x4xf32>
    %52 = tpu.matmul %49, %51, %cst_65 {dimension_numbers = #tpu.dot_dimension_numbers<[2], [0], [0, 1], [1], [0, 0, 0, 1, 1, 1], [], []>} : vector<16x16x4xf32>, vector<4x4xf32>, vector<16x16x4xf32> -> vector<16x16x4xf32>
    %53 = arith.addf %48, %52 : vector<16x16x4xf32>
    %c0_66 = arith.constant 0 : index
    %c2_67 = arith.constant 2 : index
    %c0_68 = arith.constant 0 : index
    %54 = vector.load %arg7[%c0_66, %c2_67, %c0_68] : memref<18x18x4xf32, #tpu.memory_space<vmem>>, vector<18x16x4xf32>
    %55 = vector.extract_strided_slice %54 {offsets = [0, 0, 0], sizes = [16, 16, 4], strides = [1, 1, 1]} : vector<18x16x4xf32> to vector<16x16x4xf32>
    %c0_69 = arith.constant 0 : index
    %c2_70 = arith.constant 2 : index
    %c0_71 = arith.constant 0 : index
    %c0_72 = arith.constant 0 : index
    %56 = vector.load %arg2[%c0_69, %c2_70, %c0_71, %c0_72] : memref<3x3x4x4xf32, #tpu.memory_space<vmem>>, vector<1x1x4x4xf32>
    %57 = vector.shape_cast %56 : vector<1x1x4x4xf32> to vector<4x4xf32>
    %cst_73 = arith.constant dense<0.000000e+00> : vector<16x16x4xf32>
    %58 = tpu.matmul %55, %57, %cst_73 {dimension_numbers = #tpu.dot_dimension_numbers<[2], [0], [0, 1], [1], [0, 0, 0, 1, 1, 1], [], []>} : vector<16x16x4xf32>, vector<4x4xf32>, vector<16x16x4xf32> -> vector<16x16x4xf32>
    %59 = arith.addf %53, %58 : vector<16x16x4xf32>
    %60 = vector.extract_strided_slice %54 {offsets = [1, 0, 0], sizes = [16, 16, 4], strides = [1, 1, 1]} : vector<18x16x4xf32> to vector<16x16x4xf32>
    %c1_74 = arith.constant 1 : index
    %c2_75 = arith.constant 2 : index
    %c0_76 = arith.constant 0 : index
    %c0_77 = arith.constant 0 : index
    %61 = vector.load %arg2[%c1_74, %c2_75, %c0_76, %c0_77] : memref<3x3x4x4xf32, #tpu.memory_space<vmem>>, vector<1x1x4x4xf32>
    %62 = vector.shape_cast %61 : vector<1x1x4x4xf32> to vector<4x4xf32>
    %cst_78 = arith.constant dense<0.000000e+00> : vector<16x16x4xf32>
    %63 = tpu.matmul %60, %62, %cst_78 {dimension_numbers = #tpu.dot_dimension_numbers<[2], [0], [0, 1], [1], [0, 0, 0, 1, 1, 1], [], []>} : vector<16x16x4xf32>, vector<4x4xf32>, vector<16x16x4xf32> -> vector<16x16x4xf32>
    %64 = arith.addf %59, %63 : vector<16x16x4xf32>
    %65 = vector.extract_strided_slice %54 {offsets = [2, 0, 0], sizes = [16, 16, 4], strides = [1, 1, 1]} : vector<18x16x4xf32> to vector<16x16x4xf32>
    %c2_79 = arith.constant 2 : index
    %c2_80 = arith.constant 2 : index
    %c0_81 = arith.constant 0 : index
    %c0_82 = arith.constant 0 : index
    %66 = vector.load %arg2[%c2_79, %c2_80, %c0_81, %c0_82] : memref<3x3x4x4xf32, #tpu.memory_space<vmem>>, vector<1x1x4x4xf32>
    %67 = vector.shape_cast %66 : vector<1x1x4x4xf32> to vector<4x4xf32>
    %cst_83 = arith.constant dense<0.000000e+00> : vector<16x16x4xf32>
    %68 = tpu.matmul %65, %67, %cst_83 {dimension_numbers = #tpu.dot_dimension_numbers<[2], [0], [0, 1], [1], [0, 0, 0, 1, 1, 1], [], []>} : vector<16x16x4xf32>, vector<4x4xf32>, vector<16x16x4xf32> -> vector<16x16x4xf32>
    %69 = arith.addf %64, %68 : vector<16x16x4xf32>
    %c0_84 = arith.constant 0 : index
    %c0_85 = arith.constant 0 : index
    %70 = vector.load %arg3[%c0_84, %c0_85] : memref<1x4xf32, #tpu.memory_space<vmem>>, vector<1x4xf32>
    %71 = vector.shape_cast %70 : vector<1x4xf32> to vector<1x1x4xf32>
    %72 = vector.broadcast %71 : vector<1x1x4xf32> to vector<16x16x4xf32>
    %73 = arith.addf %69, %72 : vector<16x16x4xf32>
    %cst_86 = arith.constant 0.000000e+00 : f32
    %74 = vector.broadcast %cst_86 : f32 to vector<16x16x4xf32>
    %75 = arith.maximumf %73, %74 : vector<16x16x4xf32>
    %c1_87 = arith.constant 1 : index
    %c1_88 = arith.constant 1 : index
    %c0_89 = arith.constant 0 : index
    %76 = vector.load %arg8[%c1_87, %c1_88, %c0_89] : memref<18x18x4xf32, #tpu.memory_space<vmem>>, vector<16x16x4xf32>
    tpu.vector_store %arg8[%c1_87, %c1_88, %c0_89], %75 {strides = array<i32>} : memref<18x18x4xf32, #tpu.memory_space<vmem>>, vector<16x16x4xf32>,
    %c0_90 = arith.constant 0 : index
    %c0_91 = arith.constant 0 : index
    %c0_92 = arith.constant 0 : index
    %77 = vector.load %arg8[%c0_90, %c0_91, %c0_92] : memref<18x18x4xf32, #tpu.memory_space<vmem>>, vector<18x16x4xf32>
    %78 = vector.extract_strided_slice %77 {offsets = [0, 0, 0], sizes = [16, 16, 4], strides = [1, 1, 1]} : vector<18x16x4xf32> to vector<16x16x4xf32>
    %c0_93 = arith.constant 0 : index
    %c0_94 = arith.constant 0 : index
    %c0_95 = arith.constant 0 : index
    %c0_96 = arith.constant 0 : index
    %79 = vector.load %arg4[%c0_93, %c0_94, %c0_95, %c0_96] : memref<3x3x4x4xf32, #tpu.memory_space<vmem>>, vector<1x1x4x4xf32>
    %80 = vector.shape_cast %79 : vector<1x1x4x4xf32> to vector<4x4xf32>
    %cst_97 = arith.constant dense<0.000000e+00> : vector<16x16x4xf32>
    %81 = tpu.matmul %78, %80, %cst_97 {dimension_numbers = #tpu.dot_dimension_numbers<[2], [0], [0, 1], [1], [0, 0, 0, 1, 1, 1], [], []>} : vector<16x16x4xf32>, vector<4x4xf32>, vector<16x16x4xf32> -> vector<16x16x4xf32>
    %82 = vector.extract_strided_slice %77 {offsets = [1, 0, 0], sizes = [16, 16, 4], strides = [1, 1, 1]} : vector<18x16x4xf32> to vector<16x16x4xf32>
    %c1_98 = arith.constant 1 : index
    %c0_99 = arith.constant 0 : index
    %c0_100 = arith.constant 0 : index
    %c0_101 = arith.constant 0 : index
    %83 = vector.load %arg4[%c1_98, %c0_99, %c0_100, %c0_101] : memref<3x3x4x4xf32, #tpu.memory_space<vmem>>, vector<1x1x4x4xf32>
    %84 = vector.shape_cast %83 : vector<1x1x4x4xf32> to vector<4x4xf32>
    %cst_102 = arith.constant dense<0.000000e+00> : vector<16x16x4xf32>
    %85 = tpu.matmul %82, %84, %cst_102 {dimension_numbers = #tpu.dot_dimension_numbers<[2], [0], [0, 1], [1], [0, 0, 0, 1, 1, 1], [], []>} : vector<16x16x4xf32>, vector<4x4xf32>, vector<16x16x4xf32> -> vector<16x16x4xf32>
    %86 = arith.addf %81, %85 : vector<16x16x4xf32>
    %87 = vector.extract_strided_slice %77 {offsets = [2, 0, 0], sizes = [16, 16, 4], strides = [1, 1, 1]} : vector<18x16x4xf32> to vector<16x16x4xf32>
    %c2_103 = arith.constant 2 : index
    %c0_104 = arith.constant 0 : index
    %c0_105 = arith.constant 0 : index
    %c0_106 = arith.constant 0 : index
    %88 = vector.load %arg4[%c2_103, %c0_104, %c0_105, %c0_106] : memref<3x3x4x4xf32, #tpu.memory_space<vmem>>, vector<1x1x4x4xf32>
    %89 = vector.shape_cast %88 : vector<1x1x4x4xf32> to vector<4x4xf32>
    %cst_107 = arith.constant dense<0.000000e+00> : vector<16x16x4xf32>
    %90 = tpu.matmul %87, %89, %cst_107 {dimension_numbers = #tpu.dot_dimension_numbers<[2], [0], [0, 1], [1], [0, 0, 0, 1, 1, 1], [], []>} : vector<16x16x4xf32>, vector<4x4xf32>, vector<16x16x4xf32> -> vector<16x16x4xf32>
    %91 = arith.addf %86, %90 : vector<16x16x4xf32>
    %c0_108 = arith.constant 0 : index
    %c1_109 = arith.constant 1 : index
    %c0_110 = arith.constant 0 : index
    %92 = vector.load %arg8[%c0_108, %c1_109, %c0_110] : memref<18x18x4xf32, #tpu.memory_space<vmem>>, vector<18x16x4xf32>
    %93 = vector.extract_strided_slice %92 {offsets = [0, 0, 0], sizes = [16, 16, 4], strides = [1, 1, 1]} : vector<18x16x4xf32> to vector<16x16x4xf32>
    %c0_111 = arith.constant 0 : index
    %c1_112 = arith.constant 1 : index
    %c0_113 = arith.constant 0 : index
    %c0_114 = arith.constant 0 : index
    %94 = vector.load %arg4[%c0_111, %c1_112, %c0_113, %c0_114] : memref<3x3x4x4xf32, #tpu.memory_space<vmem>>, vector<1x1x4x4xf32>
    %95 = vector.shape_cast %94 : vector<1x1x4x4xf32> to vector<4x4xf32>
    %cst_115 = arith.constant dense<0.000000e+00> : vector<16x16x4xf32>
    %96 = tpu.matmul %93, %95, %cst_115 {dimension_numbers = #tpu.dot_dimension_numbers<[2], [0], [0, 1], [1], [0, 0, 0, 1, 1, 1], [], []>} : vector<16x16x4xf32>, vector<4x4xf32>, vector<16x16x4xf32> -> vector<16x16x4xf32>
    %97 = arith.addf %91, %96 : vector<16x16x4xf32>
    %98 = vector.extract_strided_slice %92 {offsets = [1, 0, 0], sizes = [16, 16, 4], strides = [1, 1, 1]} : vector<18x16x4xf32> to vector<16x16x4xf32>
    %c1_116 = arith.constant 1 : index
    %c1_117 = arith.constant 1 : index
    %c0_118 = arith.constant 0 : index
    %c0_119 = arith.constant 0 : index
    %99 = vector.load %arg4[%c1_116, %c1_117, %c0_118, %c0_119] : memref<3x3x4x4xf32, #tpu.memory_space<vmem>>, vector<1x1x4x4xf32>
    %100 = vector.shape_cast %99 : vector<1x1x4x4xf32> to vector<4x4xf32>
    %cst_120 = arith.constant dense<0.000000e+00> : vector<16x16x4xf32>
    %101 = tpu.matmul %98, %100, %cst_120 {dimension_numbers = #tpu.dot_dimension_numbers<[2], [0], [0, 1], [1], [0, 0, 0, 1, 1, 1], [], []>} : vector<16x16x4xf32>, vector<4x4xf32>, vector<16x16x4xf32> -> vector<16x16x4xf32>
    %102 = arith.addf %97, %101 : vector<16x16x4xf32>
    %103 = vector.extract_strided_slice %92 {offsets = [2, 0, 0], sizes = [16, 16, 4], strides = [1, 1, 1]} : vector<18x16x4xf32> to vector<16x16x4xf32>
    %c2_121 = arith.constant 2 : index
    %c1_122 = arith.constant 1 : index
    %c0_123 = arith.constant 0 : index
    %c0_124 = arith.constant 0 : index
    %104 = vector.load %arg4[%c2_121, %c1_122, %c0_123, %c0_124] : memref<3x3x4x4xf32, #tpu.memory_space<vmem>>, vector<1x1x4x4xf32>
    %105 = vector.shape_cast %104 : vector<1x1x4x4xf32> to vector<4x4xf32>
    %cst_125 = arith.constant dense<0.000000e+00> : vector<16x16x4xf32>
    %106 = tpu.matmul %103, %105, %cst_125 {dimension_numbers = #tpu.dot_dimension_numbers<[2], [0], [0, 1], [1], [0, 0, 0, 1, 1, 1], [], []>} : vector<16x16x4xf32>, vector<4x4xf32>, vector<16x16x4xf32> -> vector<16x16x4xf32>
    %107 = arith.addf %102, %106 : vector<16x16x4xf32>
    %c0_126 = arith.constant 0 : index
    %c2_127 = arith.constant 2 : index
    %c0_128 = arith.constant 0 : index
    %108 = vector.load %arg8[%c0_126, %c2_127, %c0_128] : memref<18x18x4xf32, #tpu.memory_space<vmem>>, vector<18x16x4xf32>
    %109 = vector.extract_strided_slice %108 {offsets = [0, 0, 0], sizes = [16, 16, 4], strides = [1, 1, 1]} : vector<18x16x4xf32> to vector<16x16x4xf32>
    %c0_129 = arith.constant 0 : index
    %c2_130 = arith.constant 2 : index
    %c0_131 = arith.constant 0 : index
    %c0_132 = arith.constant 0 : index
    %110 = vector.load %arg4[%c0_129, %c2_130, %c0_131, %c0_132] : memref<3x3x4x4xf32, #tpu.memory_space<vmem>>, vector<1x1x4x4xf32>
    %111 = vector.shape_cast %110 : vector<1x1x4x4xf32> to vector<4x4xf32>
    %cst_133 = arith.constant dense<0.000000e+00> : vector<16x16x4xf32>
    %112 = tpu.matmul %109, %111, %cst_133 {dimension_numbers = #tpu.dot_dimension_numbers<[2], [0], [0, 1], [1], [0, 0, 0, 1, 1, 1], [], []>} : vector<16x16x4xf32>, vector<4x4xf32>, vector<16x16x4xf32> -> vector<16x16x4xf32>
    %113 = arith.addf %107, %112 : vector<16x16x4xf32>
    %114 = vector.extract_strided_slice %108 {offsets = [1, 0, 0], sizes = [16, 16, 4], strides = [1, 1, 1]} : vector<18x16x4xf32> to vector<16x16x4xf32>
    %c1_134 = arith.constant 1 : index
    %c2_135 = arith.constant 2 : index
    %c0_136 = arith.constant 0 : index
    %c0_137 = arith.constant 0 : index
    %115 = vector.load %arg4[%c1_134, %c2_135, %c0_136, %c0_137] : memref<3x3x4x4xf32, #tpu.memory_space<vmem>>, vector<1x1x4x4xf32>
    %116 = vector.shape_cast %115 : vector<1x1x4x4xf32> to vector<4x4xf32>
    %cst_138 = arith.constant dense<0.000000e+00> : vector<16x16x4xf32>
    %117 = tpu.matmul %114, %116, %cst_138 {dimension_numbers = #tpu.dot_dimension_numbers<[2], [0], [0, 1], [1], [0, 0, 0, 1, 1, 1], [], []>} : vector<16x16x4xf32>, vector<4x4xf32>, vector<16x16x4xf32> -> vector<16x16x4xf32>
    %118 = arith.addf %113, %117 : vector<16x16x4xf32>
    %119 = vector.extract_strided_slice %108 {offsets = [2, 0, 0], sizes = [16, 16, 4], strides = [1, 1, 1]} : vector<18x16x4xf32> to vector<16x16x4xf32>
    %c2_139 = arith.constant 2 : index
    %c2_140 = arith.constant 2 : index
    %c0_141 = arith.constant 0 : index
    %c0_142 = arith.constant 0 : index
    %120 = vector.load %arg4[%c2_139, %c2_140, %c0_141, %c0_142] : memref<3x3x4x4xf32, #tpu.memory_space<vmem>>, vector<1x1x4x4xf32>
    %121 = vector.shape_cast %120 : vector<1x1x4x4xf32> to vector<4x4xf32>
    %cst_143 = arith.constant dense<0.000000e+00> : vector<16x16x4xf32>
    %122 = tpu.matmul %119, %121, %cst_143 {dimension_numbers = #tpu.dot_dimension_numbers<[2], [0], [0, 1], [1], [0, 0, 0, 1, 1, 1], [], []>} : vector<16x16x4xf32>, vector<4x4xf32>, vector<16x16x4xf32> -> vector<16x16x4xf32>
    %123 = arith.addf %118, %122 : vector<16x16x4xf32>
    %c0_144 = arith.constant 0 : index
    %c0_145 = arith.constant 0 : index
    %124 = vector.load %arg5[%c0_144, %c0_145] : memref<1x4xf32, #tpu.memory_space<vmem>>, vector<1x4xf32>
    %125 = vector.shape_cast %124 : vector<1x4xf32> to vector<1x1x4xf32>
    %126 = vector.broadcast %125 : vector<1x1x4xf32> to vector<16x16x4xf32>
    %127 = arith.addf %123, %126 : vector<16x16x4xf32>
    %c0_146 = arith.constant 0 : index
    %c0_147 = arith.constant 0 : index
    %c0_148 = arith.constant 0 : index
    %c0_149 = arith.constant 0 : index
    %128 = vector.load %arg1[%c0_146, %c0_147, %c0_148, %c0_149] : memref<1x16x16x4xf32, #tpu.memory_space<vmem>>, vector<1x16x16x4xf32>
    %129 = vector.shape_cast %128 : vector<1x16x16x4xf32> to vector<16x16x4xf32>
    %130 = arith.addf %127, %129 : vector<16x16x4xf32>
    %cst_150 = arith.constant 0.000000e+00 : f32
    %131 = vector.broadcast %cst_150 : f32 to vector<16x16x4xf32>
    %132 = arith.maximumf %130, %131 : vector<16x16x4xf32>
    %c0_151 = arith.constant 0 : index
    %c0_152 = arith.constant 0 : index
    %c0_153 = arith.constant 0 : index
    %c0_154 = arith.constant 0 : index
    %133 = vector.load %arg6[%c0_151, %c0_152, %c0_153, %c0_154] : memref<1x16x16x4xf32, #tpu.memory_space<vmem>>, vector<1x16x16x4xf32>
    %134 = vector.shape_cast %133 : vector<1x16x16x4xf32> to vector<16x16x4xf32>
    %135 = vector.shape_cast %132 : vector<16x16x4xf32> to vector<1x16x16x4xf32>
    tpu.vector_store %arg6[%c0_151, %c0_152, %c0_153, %c0_154], %135 {strides = array<i32>} : memref<1x16x16x4xf32, #tpu.memory_space<vmem>>, vector<1x16x16x4xf32>,
    return
  }
  func.func @transform_0(%arg0: i32) -> (i32, i32, i32, i32) {
    %c0_i32 = arith.constant 0 : i32
    %c0_i32_0 = arith.constant 0 : i32
    %c0_i32_1 = arith.constant 0 : i32
    %c0_i32_2 = arith.constant 0 : i32
    return %arg0, %c0_i32, %c0_i32_0, %c0_i32_1 : i32, i32, i32, i32
  }
  func.func @transform_1(%arg0: i32) -> (i32, i32, i32, i32) {
    %c0_i32 = arith.constant 0 : i32
    %c0_i32_0 = arith.constant 0 : i32
    %c0_i32_1 = arith.constant 0 : i32
    %c0_i32_2 = arith.constant 0 : i32
    %c0_i32_3 = arith.constant 0 : i32
    return %c0_i32, %c0_i32_0, %c0_i32_1, %c0_i32_2 : i32, i32, i32, i32
  }
  func.func @transform_2(%arg0: i32) -> (i32, i32) {
    %c0_i32 = arith.constant 0 : i32
    %c0_i32_0 = arith.constant 0 : i32
    %c0_i32_1 = arith.constant 0 : i32
    return %c0_i32, %c0_i32_0 : i32, i32
  }
  func.func @transform_3(%arg0: i32) -> (i32, i32, i32, i32) {
    %c0_i32 = arith.constant 0 : i32
    %c0_i32_0 = arith.constant 0 : i32
    %c0_i32_1 = arith.constant 0 : i32
    %c0_i32_2 = arith.constant 0 : i32
    %c0_i32_3 = arith.constant 0 : i32
    return %c0_i32, %c0_i32_0, %c0_i32_1, %c0_i32_2 : i32, i32, i32, i32
  }
  func.func @transform_4(%arg0: i32) -> (i32, i32) {
    %c0_i32 = arith.constant 0 : i32
    %c0_i32_0 = arith.constant 0 : i32
    %c0_i32_1 = arith.constant 0 : i32
    return %c0_i32, %c0_i32_0 : i32, i32
  }
  func.func @transform_5(%arg0: i32) -> (i32, i32, i32, i32) {
    %c0_i32 = arith.constant 0 : i32
    %c0_i32_0 = arith.constant 0 : i32
    %c0_i32_1 = arith.constant 0 : i32
    %c0_i32_2 = arith.constant 0 : i32
    return %arg0, %c0_i32, %c0_i32_0, %c0_i32_1 : i32, i32, i32, i32
  }
}

</mosaic_0001>

<bundles_post_ra>
// kernel: tpu_custom_call.1
= control target key start
LH: loop header
LB: loop body
LE: loop exit
PB: predicated region body
PF: predicated region fallthrough
CT: control target
= control target key end

     0   :  { %s4810_s18 = smov 0   ;;  %s7316_s0 = inlined_call_operand.vmem [shape: f32[2,16,16,4], index: 0, kind: input, shape index: {}]   ;;  %s7317_s1 = inlined_call_operand.vmem [shape: f32[3,3,4,4], index: 1, kind: input, shape index: {}]   ;;  %s7318_s2 = inlined_call_operand.vmem [shape: f32[1,4], index: 2, kind: input, shape index: {}]   ;;  %s7319_s3 = inlined_call_operand.vmem [shape: f32[3,3,4,4], index: 3, kind: input, shape index: {}]   ;;  %s7320_s4 = inlined_call_operand.vmem [shape: f32[1,4], index: 4, kind: input, shape index: {}]   ;;  %s7321_s5 = inlined_call_operand.vmem [shape: f32[2,16,16,4], index: 5, kind: output, shape index: {}]  }
   0x1 LB: > { %s4134_s19 = sadd.s32 4294967295, %s4777_s18   ;;  %p4138_p0 = scmp.ge.s32.totalorder %s4777_s18, 1  ;;  %s4777_s18 = sphi %s4810_s18, %s15_s18  }
   0x2   : > { %p187_p1 = scmp.lt.s32.totalorder %s4777_s18, 3 }
   0x4   : > { %p188_p2 = pnand %p4138_p0, %p187_p1 }
   0x6   : > { %191 = sbr.rel (%p188_p2) target bundleno = 1526 (0x5f6), region = 40 }
   0xb   : > { %v4143_v0 = vld [vmem:[%s7317_s1 + $0xc] sm:$0xf]  ;;  %vm514_vm0 = vcmask 1043456   ;;  %v415_v1 = vld [vmem:[%s7317_s1] sm:$0xf]  ;;  %p215_p3 = scmp.lt.s32.totalorder %s4134_s19, 1 }
   0xc   : > { %4144 = vmatpush.msk.msra.mxu0 %vm514_vm0, %v4143_v0  ;;  %4757 = vmatpush.msk.msra.mxu2 %vm514_vm0, %v4143_v0  ;;  %vm234_vm1 = vcmask 24576   ;;  %vm225_vm2 = vcmask 31744   ;;  %v4779_v2 = vmov 0.0   ;;  %v4210_v5 = vld [vmem:[%s7317_s1 + $0x18] sm:$0xf]  ;;  %vm228_vm3 = vcmask 25600  }
   0xd   : > { %4758 = vmatpush.msk.msra.mxu3 %vm514_vm0, %v415_v1  ;;  %s7395_s19 = smov (!%p215_p3, %s4134_s19), 1  ;;  %236 = vst.msk [vmem:[#allocation2 + $0x18] sm:$0x1] %vm234_vm1, %v4779_v2  ;;  %4177 = vmatpush.msk.msra.mxu1 %vm514_vm0, %v415_v1  ;;  %v4244_v6 = vld [vmem:[%s7317_s1 + $0x4] sm:$0xf] }
   0xe   : > { %226 = vst.msk [vmem:[#allocation2] sm:$0xff] %vm225_vm2, %v4779_v2  ;;  %s4755_s24 = sshll.u32 %s7395_s19, 8  ;;  %4211 = vmatpush.msk.msrb.mxu2 %vm514_vm0, %v4210_v5  ;;  %v4278_v7 = vld [vmem:[%s7317_s1 + $0x10] sm:$0xf] }
   0xf   : > { %227 = vst.msk [vmem:[#allocation2 + $0x8] sm:$0xff] %vm225_vm2, %v4779_v2  ;;  %s4842_s27 = scalar_lea.vmem %s7316_s0, %s4755_s24  ;;  %4245 = vmatpush.msk.msrb.mxu3 %vm514_vm0, %v4244_v6  ;;  %4279 = vmatpush.msk.msrb.mxu0 %vm514_vm0, %v4278_v7  ;;  %v4346_v7 = vld [vmem:[%s7317_s1 + $0x8] sm:$0xf]  ;;  %s7038_s25 = scalar_lea.vmem %s7321_s5, %s4755_s24 }
  0x10   : > { %231 = vst.msk [vmem:[#allocation2 + $0x198] sm:$0xff] %vm225_vm2, %v4779_v2  ;;  %v314_v3 = vld [vmem:[%s4842_s27] sm:$0xff]  ;;  %v328_v9 = vld [vmem:[%s4842_s27 + $0x70] sm:$0xff]  ;;  %v315_v10 = vld [vmem:[%s4842_s27 + $0x8] sm:$0xff] }
  0x11   : > { %232 = vst.msk [vmem:[#allocation2 + $0x1a0] sm:$0xff] %vm225_vm2, %v4779_v2  ;;  %v330_v8 = vld [vmem:[%s4842_s27 + $0x80] sm:$0xff]  ;;  %v331_v11 = vld [vmem:[%s4842_s27 + $0x88] sm:$0xff]  ;;  %v329_v12 = vld [vmem:[%s4842_s27 + $0x78] sm:$0xff] }
  0x12   : > { %347 = vst.msk [vmem:[#allocation2 + $0x19] sm:$0xff] %vm225_vm2, %v314_v3  ;;  %v316_v13 = vld [vmem:[%s4842_s27 + $0x10] sm:$0xff]  ;;  %v317_v17 = vld [vmem:[%s4842_s27 + $0x18] sm:$0xff]  ;;  %v318_v19 = vld [vmem:[%s4842_s27 + $0x20] sm:$0xff] }
  0x13   : > { %237 = vst.msk [vmem:[#allocation2 + $0x30] sm:$0x1] %vm234_vm1, %v4779_v2  ;;  %v332_v15 = vld [vmem:[%s4842_s27 + $0x90] sm:$0xff]  ;;  %v333_v18 = vld [vmem:[%s4842_s27 + $0x98] sm:$0xff]  ;;  %v334_v20 = vld [vmem:[%s4842_s27 + $0xa0] sm:$0xff] }
  0x14   : > { %238 = vst.msk [vmem:[#allocation2 + $0x48] sm:$0x1] %vm234_vm1, %v4779_v2  ;;  %v319_v22 = vld [vmem:[%s4842_s27 + $0x28] sm:$0xff]  ;;  %v320_v29 = vld [vmem:[%s4842_s27 + $0x30] sm:$0xff]  ;;  %v321_v33 = vld [vmem:[%s4842_s27 + $0x38] sm:$0xff] }
  0x15   : > { %239 = vst.msk [vmem:[#allocation2 + $0x60] sm:$0x1] %vm234_vm1, %v4779_v2  ;;  %v335_v24 = vld [vmem:[%s4842_s27 + $0xa8] sm:$0xff]  ;;  %v336_v30 = vld [vmem:[%s4842_s27 + $0xb0] sm:$0xff]  ;;  %v337_v34 = vld [vmem:[%s4842_s27 + $0xb8] sm:$0xff] }
  0x16   : > { %240 = vst.msk [vmem:[#allocation2 + $0x78] sm:$0x1] %vm234_vm1, %v4779_v2  ;;  %v380_v26 = vld [vmem:[#allocation2 + $0x8] sm:$0xff]  ;;  %v322_v37 = vld [vmem:[%s4842_s27 + $0x40] sm:$0xff]  ;;  %v324_v45 = vld [vmem:[%s4842_s27 + $0x50] sm:$0xff] }
  0x17   : > { %241 = vst.msk [vmem:[#allocation2 + $0x90] sm:$0x1] %vm234_vm1, %v4779_v2  ;;  %v338_v38 = vld [vmem:[%s4842_s27 + $0xc0] sm:$0xff]  ;;  %v323_v41 = vld [vmem:[%s4842_s27 + $0x48] sm:$0xff]  ;;  %v340_v46 = vld [vmem:[%s4842_s27 + $0xd0] sm:$0xff] }
  0x18   : > { %242 = vst.msk [vmem:[#allocation2 + $0xa8] sm:$0x1] %vm234_vm1, %v4779_v2  ;;  %v339_v42 = vld [vmem:[%s4842_s27 + $0xc8] sm:$0xff]  ;;  %v325_v49 = vld [vmem:[%s4842_s27 + $0x58] sm:$0xff]  ;;  %v326_v53 = vld [vmem:[%s4842_s27 + $0x60] sm:$0xff] }
  0x19   : > { %v4862_v4 = vld [vmem:[#allocation2 + $0x18] sm:$0xff]  ;;  %243 = vst.msk [vmem:[#allocation2 + $0xc0] sm:$0x1] %vm234_vm1, %v4779_v2  ;;  %v342_v54 = vld [vmem:[%s4842_s27 + $0xe0] sm:$0xff]  ;;  %v327_v57 = vld [vmem:[%s4842_s27 + $0x68] sm:$0xff] }
  0x1a   : > { %4145 = vmatmul.msk.f32.vlgmr.msra.gmra.mxu0 %vm225_vm2, %v4862_v4  ;;  %244 = vst.msk [vmem:[#allocation2 + $0xd8] sm:$0x1] %vm234_vm1, %v4779_v2  ;;  %v341_v50 = vld [vmem:[%s4842_s27 + $0xd8] sm:$0xff]  ;;  %v343_v58 = vld [vmem:[%s4842_s27 + $0xe8] sm:$0xff]  ;;  %v344_v61 = vld [vmem:[%s4842_s27 + $0xf0] sm:$0xff] }
  0x1b   : > { %245 = vst.msk [vmem:[#allocation2 + $0xf0] sm:$0x1] %vm234_vm1, %v4779_v2  ;;  %v345_v0 = vld [vmem:[%s4842_s27 + $0xf8] sm:$0xff] }
  0x1c   : > { %246 = vst.msk [vmem:[#allocation2 + $0x108] sm:$0x1] %vm234_vm1, %v4779_v2 }
  0x1d   : > { %247 = vst.msk [vmem:[#allocation2 + $0x120] sm:$0x1] %vm234_vm1, %v4779_v2 }
  0x1e   : > { %248 = vst.msk [vmem:[#allocation2 + $0x138] sm:$0x1] %vm234_vm1, %v4779_v2 }
  0x1f   : > { %249 = vst.msk [vmem:[#allocation2 + $0x150] sm:$0x1] %vm234_vm1, %v4779_v2 }
  0x20   : > { %250 = vst.msk [vmem:[#allocation2 + $0x168] sm:$0x1] %vm234_vm1, %v4779_v2 }
  0x21   : > { %251 = vst.msk [vmem:[#allocation2 + $0x180] sm:$0x1] %vm234_vm1, %v4779_v2 }
  0x22   : > { %254 = vst.msk [vmem:[#allocation2 + $0x29] sm:$0x1] %vm234_vm1, %v4779_v2 }
  0x23   : > { %255 = vst.msk [vmem:[#allocation2 + $0x41] sm:$0x1] %vm234_vm1, %v4779_v2 }
  0x24   : > { %256 = vst.msk [vmem:[#allocation2 + $0x59] sm:$0x1] %vm234_vm1, %v4779_v2 }
  0x25   : > { %257 = vst.msk [vmem:[#allocation2 + $0x71] sm:$0x1] %vm234_vm1, %v4779_v2 }
  0x26   : > { %258 = vst.msk [vmem:[#allocation2 + $0x89] sm:$0x1] %vm234_vm1, %v4779_v2 }
  0x27   : > { %259 = vst.msk [vmem:[#allocation2 + $0xa1] sm:$0x1] %vm234_vm1, %v4779_v2 }
  0x28   : > { %260 = vst.msk [vmem:[#allocation2 + $0xb9] sm:$0x1] %vm234_vm1, %v4779_v2 }
  0x29   : > { %261 = vst.msk [vmem:[#allocation2 + $0xd1] sm:$0x1] %vm234_vm1, %v4779_v2 }
  0x2a   : > { %262 = vst.msk [vmem:[#allocation2 + $0xe9] sm:$0x1] %vm234_vm1, %v4779_v2 }
  0x2b   : > { %263 = vst.msk [vmem:[#allocation2 + $0x101] sm:$0x1] %vm234_vm1, %v4779_v2 }
  0x2c   : > { %264 = vst.msk [vmem:[#allocation2 + $0x119] sm:$0x1] %vm234_vm1, %v4779_v2 }
  0x2d   : > { %265 = vst.msk [vmem:[#allocation2 + $0x131] sm:$0x1] %vm234_vm1, %v4779_v2 }
  0x2e   : > { %266 = vst.msk [vmem:[#allocation2 + $0x149] sm:$0x1] %vm234_vm1, %v4779_v2 }
  0x2f   : > { %267 = vst.msk [vmem:[#allocation2 + $0x161] sm:$0x1] %vm234_vm1, %v4779_v2 }
  0x30   : > { %268 = vst.msk [vmem:[#allocation2 + $0x179] sm:$0x1] %vm234_vm1, %v4779_v2 }
  0x31   : > { %269 = vst.msk [vmem:[#allocation2 + $0x191] sm:$0x1] %vm234_vm1, %v4779_v2 }
  0x32   : > { %271 = vst.msk [vmem:[#allocation3] sm:$0xff] %vm225_vm2, %v4779_v2 }
  0x33   : > { %272 = vst.msk [vmem:[#allocation3 + $0x8] sm:$0xff] %vm225_vm2, %v4779_v2 }
  0x34   : > { %275 = vst.msk [vmem:[#allocation3 + $0x198] sm:$0xff] %vm225_vm2, %v4779_v2 }
  0x35   : > { %276 = vst.msk [vmem:[#allocation3 + $0x1a0] sm:$0xff] %vm225_vm2, %v4779_v2 }
  0x36   : > { %279 = vst.msk [vmem:[#allocation3 + $0x18] sm:$0x1] %vm234_vm1, %v4779_v2 }
  0x37   : > { %280 = vst.msk [vmem:[#allocation3 + $0x30] sm:$0x1] %vm234_vm1, %v4779_v2 }
  0x38   : > { %281 = vst.msk [vmem:[#allocation3 + $0x48] sm:$0x1] %vm234_vm1, %v4779_v2 }
  0x39   : > { %282 = vst.msk [vmem:[#allocation3 + $0x60] sm:$0x1] %vm234_vm1, %v4779_v2 }
  0x3a   : > { %283 = vst.msk [vmem:[#allocation3 + $0x78] sm:$0x1] %vm234_vm1, %v4779_v2 }
  0x3b   : > { %284 = vst.msk [vmem:[#allocation3 + $0x90] sm:$0x1] %vm234_vm1, %v4779_v2 }
  0x3c   : > { %285 = vst.msk [vmem:[#allocation3 + $0xa8] sm:$0x1] %vm234_vm1, %v4779_v2 }
  0x3d   : > { %286 = vst.msk [vmem:[#allocation3 + $0xc0] sm:$0x1] %vm234_vm1, %v4779_v2 }
  0x3e   : > { %287 = vst.msk [vmem:[#allocation3 + $0xd8] sm:$0x1] %vm234_vm1, %v4779_v2 }
  0x3f   : > { %288 = vst.msk [vmem:[#allocation3 + $0xf0] sm:$0x1] %vm234_vm1, %v4779_v2 }
  0x40   : > { %289 = vst.msk [vmem:[#allocation3 + $0x108] sm:$0x1] %vm234_vm1, %v4779_v2 }
  0x41   : > { %290 = vst.msk [vmem:[#allocation3 + $0x120] sm:$0x1] %vm234_vm1, %v4779_v2 }
  0x42   : > { %291 = vst.msk [vmem:[#allocation3 + $0x138] sm:$0x1] %vm234_vm1, %v4779_v2 }
  0x43   : > { %292 = vst.msk [vmem:[#allocation3 + $0x150] sm:$0x1] %vm234_vm1, %v4779_v2 }
  0x44   : > { %293 = vst.msk [vmem:[#allocation3 + $0x168] sm:$0x1] %vm234_vm1, %v4779_v2 }
  0x45   : > { %294 = vst.msk [vmem:[#allocation3 + $0x180] sm:$0x1] %vm234_vm1, %v4779_v2 }
  0x46   : > { %297 = vst.msk [vmem:[#allocation3 + $0x29] sm:$0x1] %vm234_vm1, %v4779_v2 }
  0x47   : > { %298 = vst.msk [vmem:[#allocation3 + $0x41] sm:$0x1] %vm234_vm1, %v4779_v2 }
  0x48   : > { %299 = vst.msk [vmem:[#allocation3 + $0x59] sm:$0x1] %vm234_vm1, %v4779_v2 }
  0x49   : > { %300 = vst.msk [vmem:[#allocation3 + $0x71] sm:$0x1] %vm234_vm1, %v4779_v2 }
  0x4a   : > { %301 = vst.msk [vmem:[#allocation3 + $0x89] sm:$0x1] %vm234_vm1, %v4779_v2 }
  0x4b   : > { %302 = vst.msk [vmem:[#allocation3 + $0xa1] sm:$0x1] %vm234_vm1, %v4779_v2 }
  0x4c   : > { %303 = vst.msk [vmem:[#allocation3 + $0xb9] sm:$0x1] %vm234_vm1, %v4779_v2 }
  0x4d   : > { %304 = vst.msk [vmem:[#allocation3 + $0xd1] sm:$0x1] %vm234_vm1, %v4779_v2 }
  0x4e   : > { %305 = vst.msk [vmem:[#allocation3 + $0xe9] sm:$0x1] %vm234_vm1, %v4779_v2 }
  0x4f   : > { %306 = vst.msk [vmem:[#allocation3 + $0x101] sm:$0x1] %vm234_vm1, %v4779_v2 }
  0x50   : > { %307 = vst.msk [vmem:[#allocation3 + $0x119] sm:$0x1] %vm234_vm1, %v4779_v2 }
  0x51   : > { %308 = vst.msk [vmem:[#allocation3 + $0x131] sm:$0x1] %vm234_vm1, %v4779_v2 }
  0x52   : > { %309 = vst.msk [vmem:[#allocation3 + $0x149] sm:$0x1] %vm234_vm1, %v4779_v2 }
  0x53   : > { %310 = vst.msk [vmem:[#allocation3 + $0x161] sm:$0x1] %vm234_vm1, %v4779_v2 }
  0x54   : > { %311 = vst.msk [vmem:[#allocation3 + $0x179] sm:$0x1] %vm234_vm1, %v4779_v2 }
  0x55   : > { %312 = vst.msk [vmem:[#allocation3 + $0x191] sm:$0x1] %vm234_vm1, %v4779_v2 }
  0x56   : > { %363 = vst.msk [vmem:[#allocation2 + $0xd9] sm:$0xff] %vm225_vm2, %v330_v8  ;;  %v4380_v8 = vld [vmem:[%s7317_s1 + $0x14] sm:$0xf] }
  0x57   : > { %235 = vst.msk [vmem:[#allocation2] sm:$0x1] %vm234_vm1, %v4779_v2 }
  0x58   : > { %252 = vst.msk [vmem:[#allocation2 + $0x198] sm:$0x1] %vm234_vm1, %v4779_v2 }
  0x59   : > { %278 = vst.msk [vmem:[#allocation3] sm:$0x1] %vm234_vm1, %v4779_v2 }
  0x5a   : > { %295 = vst.msk [vmem:[#allocation3 + $0x198] sm:$0x1] %vm234_vm1, %v4779_v2 }
  0x5b   : > { %361 = vst.msk [vmem:[#allocation2 + $0xc1] sm:$0xff] %vm225_vm2, %v328_v9 }
  0x5c   : > { %348 = vst.msk [vmem:[#allocation2 + $0x21] sm:$0xff] %vm225_vm2, %v315_v10  ;;  %v4414_v10 = vld [vmem:[%s7317_s1 + $0x20] sm:$0xf] }
  0x5d   : > { %v5017_v14 = vld [vmem:[#allocation2 + $0xd8] sm:$0xff]  ;;  %364 = vst.msk [vmem:[#allocation2 + $0xe1] sm:$0xff] %vm225_vm2, %v331_v11  ;;  %4415 = vmatpush.msk.msra.mxu0 %vm514_vm0, %v4414_v10 }
  0x5e   : > { %4161 = vmatmul.msk.f32.vlgmr.msra.gmra.mxu2 %vm225_vm2, %v5017_v14  ;;  %362 = vst.msk [vmem:[#allocation2 + $0xc9] sm:$0xff] %vm225_vm2, %v329_v12  ;;  %v379_v16 = vld [vmem:[#allocation2] sm:$0xff]  ;;  %v4312_v11 = vld [vmem:[%s7317_s1 + $0x1c] sm:$0xf] }
  0x5f   : > { %4178 = vmatmul.msk.f32.vlgmr.msra.gmra.mxu1 %vm225_vm2, %v379_v16  ;;  %349 = vst.msk [vmem:[#allocation2 + $0x31] sm:$0xff] %vm225_vm2, %v316_v13  ;;  %4347 = vmatpush.msk.msra.mxu2 %vm514_vm0, %v4346_v7  ;;  %v911_v13 = vld [vmem:[#allocation2 + $0x19] sm:$0xff] }
  0x60   : > { %365 = vst.msk [vmem:[#allocation2 + $0xf1] sm:$0xff] %vm225_vm2, %v332_v15  ;;  %4313 = vmatpush.msk.msrb.mxu1 %vm514_vm0, %v4312_v11 }
  0x61   : > { %350 = vst.msk [vmem:[#allocation2 + $0x39] sm:$0xff] %vm225_vm2, %v317_v17  ;;  %v909_v17 = vld [vmem:[#allocation2 + $0x1] sm:$0xff] }
  0x62   : > { %v5032_v21 = vld [vmem:[#allocation2 + $0xc0] sm:$0xff]  ;;  %366 = vst.msk [vmem:[#allocation2 + $0xf9] sm:$0xff] %vm225_vm2, %v333_v18 }
  0x63   : > { %4194 = vmatmul.msk.f32.vlgmr.msra.gmra.mxu3 %vm225_vm2, %v5032_v21  ;;  %v382_v23 = vld [vmem:[#allocation2 + $0x20] sm:$0xff]  ;;  %351 = vst.msk [vmem:[#allocation2 + $0x49] sm:$0xff] %vm225_vm2, %v318_v19 }
  0x64   : > { %4146 = vmatmul.msk.f32.gmra.mxu0 %vm225_vm2, %v382_v23  ;;  %v5041_v25 = vld [vmem:[#allocation2 + $0xe0] sm:$0xff]  ;;  %367 = vst.msk [vmem:[#allocation2 + $0x109] sm:$0xff] %vm225_vm2, %v334_v20  ;;  %4381 = vmatpush.msk.msra.mxu3 %vm514_vm0, %v4380_v8 }
  0x65   : > { %352 = vst.msk [vmem:[#allocation2 + $0x51] sm:$0xff] %vm225_vm2, %v319_v22  ;;  %v5049_v27 = vld [vmem:[#allocation2 + $0xc8] sm:$0xff] }
  0x66   : > { %4162 = vmatmul.msk.f32.gmra.mxu2 %vm225_vm2, %v5041_v25  ;;  %368 = vst.msk [vmem:[#allocation2 + $0x111] sm:$0xff] %vm225_vm2, %v335_v24  ;;  %v5051_v28 = vld [vmem:[#allocation2 + $0x30] sm:$0xff]  ;;  %v912_v20 = vld [vmem:[#allocation2 + $0x21] sm:$0xff] }
  0x67   : > { %4179 = vmatmul.msk.f32.gmra.mxu1 %vm225_vm2, %v380_v26  ;;  %v5057_v31 = vld [vmem:[#allocation2 + $0xf0] sm:$0xff]  ;;  %353 = vst.msk [vmem:[#allocation2 + $0x61] sm:$0xff] %vm225_vm2, %v320_v29 }
  0x68   : > { %369 = vst.msk [vmem:[#allocation2 + $0x121] sm:$0xff] %vm225_vm2, %v336_v30  ;;  %v5067_v32 = vld [vmem:[#allocation2 + $0x38] sm:$0xff] }
  0x69   : > { %v5073_v35 = vld [vmem:[#allocation2 + $0xf8] sm:$0xff]  ;;  %354 = vst.msk [vmem:[#allocation2 + $0x69] sm:$0xff] %vm225_vm2, %v321_v33 }
  0x6a   : > { %370 = vst.msk [vmem:[#allocation2 + $0x129] sm:$0xff] %vm225_vm2, %v337_v34  ;;  %v5082_v36 = vld [vmem:[#allocation2 + $0x48] sm:$0xff]  ;;  %v913_v16 = vld [vmem:[#allocation2 + $0x31] sm:$0xff] }
  0x6b   : > { %4195 = vmatmul.msk.f32.gmra.mxu3 %vm225_vm2, %v5049_v27  ;;  %v5088_v39 = vld [vmem:[#allocation2 + $0x108] sm:$0xff]  ;;  %355 = vst.msk [vmem:[#allocation2 + $0x79] sm:$0xff] %vm225_vm2, %v322_v37 }
  0x6c   : > { %4147 = vmatmul.msk.f32.gmra.mxu0 %vm225_vm2, %v5051_v28  ;;  %371 = vst.msk [vmem:[#allocation2 + $0x139] sm:$0xff] %vm225_vm2, %v338_v38  ;;  %v5098_v40 = vld [vmem:[#allocation2 + $0x50] sm:$0xff] }
  0x6d   : > { %v5104_v43 = vld [vmem:[#allocation2 + $0x110] sm:$0xff]  ;;  %356 = vst.msk [vmem:[#allocation2 + $0x81] sm:$0xff] %vm225_vm2, %v323_v41 }
  0x6e   : > { %4163 = vmatmul.msk.f32.gmra.mxu2 %vm225_vm2, %v5057_v31  ;;  %372 = vst.msk [vmem:[#allocation2 + $0x141] sm:$0xff] %vm225_vm2, %v339_v42  ;;  %v5114_v44 = vld [vmem:[#allocation2 + $0x60] sm:$0xff]  ;;  %v915_v34 = vld [vmem:[#allocation2 + $0x49] sm:$0xff] }
  0x6f   : > { %4180 = vmatmul.msk.f32.gmra.mxu1 %vm225_vm2, %v4862_v4  ;;  %v5120_v47 = vld [vmem:[#allocation2 + $0x120] sm:$0xff]  ;;  %357 = vst.msk [vmem:[#allocation2 + $0x91] sm:$0xff] %vm225_vm2, %v324_v45  ;;  %v916_v45 = vld [vmem:[#allocation2 + $0x51] sm:$0xff] }
  0x70   : > { %373 = vst.msk [vmem:[#allocation2 + $0x151] sm:$0xff] %vm225_vm2, %v340_v46  ;;  %v5130_v48 = vld [vmem:[#allocation2 + $0x68] sm:$0xff] }
  0x71   : > { %v5136_v51 = vld [vmem:[#allocation2 + $0x128] sm:$0xff]  ;;  %358 = vst.msk [vmem:[#allocation2 + $0x99] sm:$0xff] %vm225_vm2, %v325_v49 }
  0x72   : > { %374 = vst.msk [vmem:[#allocation2 + $0x159] sm:$0xff] %vm225_vm2, %v341_v50  ;;  %v5146_v52 = vld [vmem:[#allocation2 + $0x78] sm:$0xff]  ;;  %v918_v7 = vld [vmem:[#allocation2 + $0x69] sm:$0xff] }
  0x73   : > { %4196 = vmatmul.msk.f32.gmra.mxu3 %vm225_vm2, %v5017_v14  ;;  %v5152_v55 = vld [vmem:[#allocation2 + $0x138] sm:$0xff]  ;;  %359 = vst.msk [vmem:[#allocation2 + $0xa9] sm:$0xff] %vm225_vm2, %v326_v53 }
  0x74   : > { %4148 = vmatmul.msk.f32.gmra.mxu0 %vm225_vm2, %v5067_v32  ;;  %375 = vst.msk [vmem:[#allocation2 + $0x169] sm:$0xff] %vm225_vm2, %v342_v54  ;;  %v5162_v56 = vld [vmem:[#allocation2 + $0x80] sm:$0xff] }
  0x75   : > { %v5168_v59 = vld [vmem:[#allocation2 + $0x140] sm:$0xff]  ;;  %360 = vst.msk [vmem:[#allocation2 + $0xb1] sm:$0xff] %vm225_vm2, %v327_v57 }
  0x76   : > { %4164 = vmatmul.msk.f32.gmra.mxu2 %vm225_vm2, %v5073_v35  ;;  %376 = vst.msk [vmem:[#allocation2 + $0x171] sm:$0xff] %vm225_vm2, %v343_v58  ;;  %v5178_v60 = vld [vmem:[#allocation2 + $0x90] sm:$0xff]  ;;  %v917_v54 = vld [vmem:[#allocation2 + $0x61] sm:$0xff] }
  0x77   : > { %4181 = vmatmul.msk.f32.gmra.mxu1 %vm225_vm2, %v382_v23  ;;  %v5183_v62 = vld [vmem:[#allocation2 + $0x150] sm:$0xff]  ;;  %377 = vst.msk [vmem:[#allocation2 + $0x181] sm:$0xff] %vm225_vm2, %v344_v61  ;;  %v914_v23 = vld [vmem:[#allocation2 + $0x39] sm:$0xff] }
  0x78   : > { %v5192_v63 = vld [vmem:[#allocation2 + $0x98] sm:$0xff]  ;;  %378 = vst.msk [vmem:[#allocation2 + $0x189] sm:$0xff] %vm225_vm2, %v345_v0 }
  0x79   : > { %v5197_v1 = vld [vmem:[#allocation2 + $0x158] sm:$0xff]  ;;  %229 = vst.msk [vmem:[#allocation2 + $0x10] sm:$0x3] %vm228_vm3, %v4779_v2 }
  0x7a   : > { %v5206_v3 = vld [vmem:[#allocation2 + $0xa8] sm:$0xff]  ;;  %233 = vst.msk [vmem:[#allocation2 + $0x1a8] sm:$0x3] %vm228_vm3, %v4779_v2 }
  0x7b   : > { %4197 = vmatmul.msk.f32.gmra.mxu3 %vm225_vm2, %v5041_v25  ;;  %v5210_v4 = vld [vmem:[#allocation2 + $0x168] sm:$0xff]  ;;  %253 = vst.msk [vmem:[#allocation2 + $0x11] sm:$0x1] %vm234_vm1, %v4779_v2 }
  0x7c   : > { %4149 = vmatmul.msk.f32.gmra.mxu0 %vm225_vm2, %v5082_v36  ;;  %v5218_v5 = vld [vmem:[#allocation2 + $0xb0] sm:$0xff]  ;;  %273 = vst.msk [vmem:[#allocation3 + $0x10] sm:$0x3] %vm228_vm3, %v4779_v2 }
  0x7d   : > { %v5220_v6 = vld [vmem:[#allocation2 + $0x170] sm:$0xff]  ;;  %277 = vst.msk [vmem:[#allocation3 + $0x1a8] sm:$0x3] %vm228_vm3, %v4779_v2 }
  0x7e   : > { %4165 = vmatmul.msk.f32.gmra.mxu2 %vm225_vm2, %v5088_v39  ;;  %270 = vst.msk [vmem:[#allocation2 + $0x1a9] sm:$0x1] %vm234_vm1, %v4779_v2  ;;  %v5252_v9 = vld [vmem:[#allocation2 + $0x180] sm:$0xff] }
  0x7f   : > { %4182 = vmatmul.msk.f32.gmra.mxu1 %vm225_vm2, %v5051_v28  ;;  %296 = vst.msk [vmem:[#allocation3 + $0x11] sm:$0x1] %vm234_vm1, %v4779_v2 }
  0x80   : > { %313 = vst.msk [vmem:[#allocation3 + $0x1a9] sm:$0x1] %vm234_vm1, %v4779_v2  ;;  %v5270_v2 = vld [vmem:[#allocation2 + $0x188] sm:$0xff] }
  0x83   : > { %4198 = vmatmul.msk.f32.gmra.mxu3 %vm225_vm2, %v5057_v31 }
  0x84   : > { %4150 = vmatmul.msk.f32.gmra.mxu0 %vm225_vm2, %v5098_v40 }
  0x86   : > { %4166 = vmatmul.msk.f32.gmra.mxu2 %vm225_vm2, %v5104_v43 }
  0x87   : > { %4183 = vmatmul.msk.f32.gmra.mxu1 %vm225_vm2, %v5067_v32 }
  0x8b   : > { %4199 = vmatmul.msk.f32.gmra.mxu3 %vm225_vm2, %v5073_v35 }
  0x8c   : > { %4151 = vmatmul.msk.f32.gmra.mxu0 %vm225_vm2, %v5114_v44 }
  0x8e   : > { %4167 = vmatmul.msk.f32.gmra.mxu2 %vm225_vm2, %v5120_v47 }
  0x8f   : > { %4184 = vmatmul.msk.f32.gmra.mxu1 %vm225_vm2, %v5082_v36 }
  0x93   : > { %4200 = vmatmul.msk.f32.gmra.mxu3 %vm225_vm2, %v5088_v39 }
  0x94   : > { %4152 = vmatmul.msk.f32.gmra.mxu0 %vm225_vm2, %v5130_v48 }
  0x96   : > { %4168 = vmatmul.msk.f32.gmra.mxu2 %vm225_vm2, %v5136_v51 }
  0x97   : > { %4185 = vmatmul.msk.f32.gmra.mxu1 %vm225_vm2, %v5098_v40  ;;  %v5276_v12 = vpop.f32.mrf.mxu0 }
  0x9b   : > { %4201 = vmatmul.msk.f32.gmra.mxu3 %vm225_vm2, %v5104_v43 }
  0x9c   : > { %4153 = vmatmul.msk.f32.gmra.mxu0 %vm225_vm2, %v5146_v52 }
  0x9e   : > { %4169 = vmatmul.msk.f32.gmra.mxu2 %vm225_vm2, %v5152_v55 }
  0x9f   : > { %4186 = vmatmul.msk.f32.gmra.mxu1 %vm225_vm2, %v5114_v44 }
  0xa3   : > { %4202 = vmatmul.msk.f32.gmra.mxu3 %vm225_vm2, %v5120_v47 }
  0xa4   : > { %4154 = vmatmul.msk.f32.gmra.mxu0 %vm225_vm2, %v5162_v56 }
  0xa6   : > { %4170 = vmatmul.msk.f32.gmra.mxu2 %vm225_vm2, %v5168_v59 }
  0xa7   : > { %4187 = vmatmul.msk.f32.gmra.mxu1 %vm225_vm2, %v5130_v48 }
  0xab   : > { %4203 = vmatmul.msk.f32.gmra.mxu3 %vm225_vm2, %v5136_v51 }
  0xac   : > { %4155 = vmatmul.msk.f32.gmra.mxu0 %vm225_vm2, %v5178_v60 }
  0xae   : > { %4171 = vmatmul.msk.f32.gmra.mxu2 %vm225_vm2, %v5183_v62 }
  0xaf   : > { %4188 = vmatmul.msk.f32.gmra.mxu1 %vm225_vm2, %v5146_v52 }
  0xb3   : > { %4204 = vmatmul.msk.f32.gmra.mxu3 %vm225_vm2, %v5152_v55 }
  0xb4   : > { %4156 = vmatmul.msk.f32.gmra.mxu0 %vm225_vm2, %v5192_v63 }
  0xb6   : > { %4172 = vmatmul.msk.f32.gmra.mxu2 %vm225_vm2, %v5197_v1 }
  0xb7   : > { %4189 = vmatmul.msk.f32.gmra.mxu1 %vm225_vm2, %v5162_v56 }
  0xbb   : > { %4205 = vmatmul.msk.f32.gmra.mxu3 %vm225_vm2, %v5168_v59 }
  0xbc   : > { %4157 = vmatmul.msk.f32.gmra.mxu0 %vm225_vm2, %v5206_v3 }
  0xbe   : > { %4173 = vmatmul.msk.f32.gmra.mxu2 %vm225_vm2, %v5210_v4 }
  0xbf   : > { %4190 = vmatmul.msk.f32.gmra.mxu1 %vm225_vm2, %v5178_v60 }
  0xc3   : > { %4206 = vmatmul.msk.f32.gmra.mxu3 %vm225_vm2, %v5183_v62 }
  0xc4   : > { %4158 = vmatmul.msk.f32.gmra.mxu0 %vm225_vm2, %v5218_v5 }
  0xc6   : > { %4174 = vmatmul.msk.f32.gmra.mxu2 %vm225_vm2, %v5220_v6 }
  0xc7   : > { %4191 = vmatmul.msk.f32.gmra.mxu1 %vm225_vm2, %v5192_v63 }
  0xcb   : > { %4207 = vmatmul.msk.f32.gmra.mxu3 %vm225_vm2, %v5197_v1 }
  0xcc   : > { %4159 = vmatmul.msk.f32.gmra.mxu0 %vm225_vm2, %v5032_v21 }
  0xce   : > { %4175 = vmatmul.msk.f32.gmra.mxu2 %vm225_vm2, %v5252_v9 }
  0xcf   : > { %4192 = vmatmul.msk.f32.gmra.mxu1 %vm225_vm2, %v5206_v3 }
  0xd3   : > { %4208 = vmatmul.msk.f32.gmra.mxu3 %vm225_vm2, %v5210_v4 }
  0xd4   : > { %4160 = vmatmul.msk.f32.gmra.mxu0 %vm225_vm2, %v5049_v27 }
  0xd6   : > { %4176 = vmatmul.msk.f32.gmra.mxu2 %vm225_vm2, %v5270_v2 }
  0xd7   : > { %4193 = vmatmul.msk.f32.gmra.mxu1 %vm225_vm2, %v5218_v5 }
  0xdb   : > { %4209 = vmatmul.msk.f32.gmra.mxu3 %vm225_vm2, %v5220_v6 }
  0xdc   : > { %4280 = vmatmul.msk.f32.vlgmr.msrb.gmra.mxu0 %vm225_vm2, %v911_v13  ;;  %v5283_v15 = vpop.f32.mrf.mxu1 }
  0xde   : > { %4212 = vmatmul.msk.f32.vlgmr.msrb.gmra.mxu2 %vm225_vm2, %v5051_v28  ;;  %v910_v28 = vld [vmem:[#allocation2 + $0x9] sm:$0xff] }
  0xdf   : > { %4314 = vmatmul.msk.f32.vlgmr.msrb.gmra.mxu1 %vm225_vm2, %v913_v16 }
  0xe1   : > { %v583_v18 = vpop.f32.mrf.mxu2  ;;  %v5288_v19 = vpop.f32.mrf.mxu0 }
  0xe3   : > { %4246 = vmatmul.msk.f32.vlgmr.msrb.gmra.mxu3 %vm225_vm2, %v909_v17 }
  0xe4   : > { %4281 = vmatmul.msk.f32.gmra.mxu0 %vm225_vm2, %v912_v20  ;;  %v5292_v22 = vpop.f32.mrf.mxu1 }
  0xe6   : > { %v705_v24 = vpop.f32.mrf.mxu3  ;;  %4213 = vmatmul.msk.f32.gmra.mxu2 %vm225_vm2, %v5067_v32 }
  0xe7   : > { %v5296_v26 = vadd.f32 %v705_v24, %v583_v18  ;;  %4315 = vmatmul.msk.f32.gmra.mxu1 %vm225_vm2, %v914_v23  ;;  %v920_v24 = vld [vmem:[#allocation2 + $0x81] sm:$0xff] }
  0xe9   : > { %v586_v29 = vpop.f32.mrf.mxu2  ;;  %v5299_v30 = vpop.f32.mrf.mxu0 }
  0xeb   : > { %4247 = vmatmul.msk.f32.gmra.mxu3 %vm225_vm2, %v910_v28 }
  0xec   : > { %4282 = vmatmul.msk.f32.gmra.mxu0 %vm225_vm2, %v913_v16  ;;  %v5303_v33 = vpop.f32.mrf.mxu1 }
  0xee   : > { %v708_v37 = vpop.f32.mrf.mxu3  ;;  %4214 = vmatmul.msk.f32.gmra.mxu2 %vm225_vm2, %v5082_v36 }
  0xef   : > { %v5307_v32 = vadd.f32 %v708_v37, %v586_v29  ;;  %4316 = vmatmul.msk.f32.gmra.mxu1 %vm225_vm2, %v915_v34 }
  0xf1   : > { %7322 = vst [vmem:[#allocation4_spill] sm:$0xff] %v5307_v32  ;;  %v589_v38 = vpop.f32.mrf.mxu2  ;;  %v5310_v41 = vpop.f32.mrf.mxu0 }
  0xf3   : > { %4248 = vmatmul.msk.f32.gmra.mxu3 %vm225_vm2, %v911_v13 }
  0xf4   : > { %4283 = vmatmul.msk.f32.gmra.mxu0 %vm225_vm2, %v914_v23  ;;  %v5314_v42 = vpop.f32.mrf.mxu1 }
  0xf6   : > { %v711_v46 = vpop.f32.mrf.mxu3  ;;  %4215 = vmatmul.msk.f32.gmra.mxu2 %vm225_vm2, %v5098_v40 }
  0xf7   : > { %v5318_v49 = vadd.f32 %v711_v46, %v589_v38  ;;  %4317 = vmatmul.msk.f32.gmra.mxu1 %vm225_vm2, %v916_v45  ;;  %v921_v38 = vld [vmem:[#allocation2 + $0x91] sm:$0xff] }
  0xf9   : > { %7323 = vst [vmem:[#allocation5_spill] sm:$0xff] %v5318_v49  ;;  %v592_v36 = vpop.f32.mrf.mxu2  ;;  %v5321_v50 = vpop.f32.mrf.mxu0  ;;  %v5471_v49 = vld [vmem:[#allocation2 + $0xf9] sm:$0xff] }
  0xfb   : > { %4249 = vmatmul.msk.f32.gmra.mxu3 %vm225_vm2, %v912_v20 }
  0xfc   : > { %4284 = vmatmul.msk.f32.gmra.mxu0 %vm225_vm2, %v915_v34  ;;  %v5325_v53 = vpop.f32.mrf.mxu1 }
  0xfe   : > { %v714_v57 = vpop.f32.mrf.mxu3  ;;  %4216 = vmatmul.msk.f32.gmra.mxu2 %vm225_vm2, %v5114_v44 }
  0xff   : > { %v5329_v58 = vadd.f32 %v714_v57, %v592_v36  ;;  %4318 = vmatmul.msk.f32.gmra.mxu1 %vm225_vm2, %v917_v54 }
 0x101   : > { %7324 = vst [vmem:[#allocation6_spill] sm:$0xff] %v5329_v58  ;;  %v595_v40 = vpop.f32.mrf.mxu2  ;;  %v5332_v61 = vpop.f32.mrf.mxu0 }
 0x103   : > { %4250 = vmatmul.msk.f32.gmra.mxu3 %vm225_vm2, %v913_v16  ;;  %v919_v16 = vld [vmem:[#allocation2 + $0x79] sm:$0xff] }
 0x104   : > { %4285 = vmatmul.msk.f32.gmra.mxu0 %vm225_vm2, %v916_v45  ;;  %v5336_v0 = vpop.f32.mrf.mxu1 }
 0x106   : > { %v717_v8 = vpop.f32.mrf.mxu3  ;;  %4217 = vmatmul.msk.f32.gmra.mxu2 %vm225_vm2, %v5130_v48 }
 0x107   : > { %v5340_v10 = vadd.f32 %v717_v8, %v595_v40  ;;  %4319 = vmatmul.msk.f32.gmra.mxu1 %vm225_vm2, %v918_v7  ;;  %v922_v40 = vld [vmem:[#allocation2 + $0x99] sm:$0xff] }
 0x109   : > { %7325 = vst [vmem:[#allocation7_spill] sm:$0xff] %v5340_v10  ;;  %v598_v44 = vpop.f32.mrf.mxu2  ;;  %v5343_v11 = vpop.f32.mrf.mxu0 }
 0x10b   : > { %4251 = vmatmul.msk.f32.gmra.mxu3 %vm225_vm2, %v914_v23 }
 0x10c   : > { %4286 = vmatmul.msk.f32.gmra.mxu0 %vm225_vm2, %v917_v54  ;;  %v5347_v13 = vpop.f32.mrf.mxu1 }
 0x10e   : > { %v720_v17 = vpop.f32.mrf.mxu3  ;;  %4218 = vmatmul.msk.f32.gmra.mxu2 %vm225_vm2, %v5146_v52 }
 0x10f   : > { %v5351_v18 = vadd.f32 %v720_v17, %v598_v44  ;;  %4320 = vmatmul.msk.f32.gmra.mxu1 %vm225_vm2, %v919_v16 }
 0x111   : > { %7326 = vst [vmem:[#allocation8_spill] sm:$0xff] %v5351_v18  ;;  %v601_v48 = vpop.f32.mrf.mxu2  ;;  %v5354_v20 = vpop.f32.mrf.mxu0 }
 0x113   : > { %4252 = vmatmul.msk.f32.gmra.mxu3 %vm225_vm2, %v915_v34 }
 0x114   : > { %4287 = vmatmul.msk.f32.gmra.mxu0 %vm225_vm2, %v918_v7  ;;  %v5358_v23 = vpop.f32.mrf.mxu1 }
 0x116   : > { %v723_v28 = vpop.f32.mrf.mxu3  ;;  %4219 = vmatmul.msk.f32.gmra.mxu2 %vm225_vm2, %v5162_v56 }
 0x117   : > { %v5362_v29 = vadd.f32 %v723_v28, %v601_v48  ;;  %4321 = vmatmul.msk.f32.gmra.mxu1 %vm225_vm2, %v920_v24  ;;  %v923_v48 = vld [vmem:[#allocation2 + $0xa9] sm:$0xff] }
 0x119   : > { %7327 = vst [vmem:[#allocation9_spill] sm:$0xff] %v5362_v29  ;;  %v604_v52 = vpop.f32.mrf.mxu2  ;;  %v5365_v37 = vpop.f32.mrf.mxu0 }
 0x11b   : > { %4253 = vmatmul.msk.f32.gmra.mxu3 %vm225_vm2, %v916_v45 }
 0x11c   : > { %4288 = vmatmul.msk.f32.gmra.mxu0 %vm225_vm2, %v919_v16  ;;  %v5369_v34 = vpop.f32.mrf.mxu1 }
 0x11e   : > { %v726_v46 = vpop.f32.mrf.mxu3  ;;  %4220 = vmatmul.msk.f32.gmra.mxu2 %vm225_vm2, %v5178_v60 }
 0x11f   : > { %v5373_v36 = vadd.f32 %v726_v46, %v604_v52  ;;  %4322 = vmatmul.msk.f32.gmra.mxu1 %vm225_vm2, %v921_v38 }
 0x121   : > { %7328 = vst [vmem:[#allocation10_spill] sm:$0xff] %v5373_v36  ;;  %v607_v56 = vpop.f32.mrf.mxu2  ;;  %v5376_v57 = vpop.f32.mrf.mxu0 }
 0x123   : > { %4254 = vmatmul.msk.f32.gmra.mxu3 %vm225_vm2, %v917_v54 }
 0x124   : > { %4289 = vmatmul.msk.f32.gmra.mxu0 %vm225_vm2, %v920_v24  ;;  %v5380_v45 = vpop.f32.mrf.mxu1 }
 0x126   : > { %v729_v8 = vpop.f32.mrf.mxu3  ;;  %4221 = vmatmul.msk.f32.gmra.mxu2 %vm225_vm2, %v5192_v63 }
 0x127   : > { %v5384_v44 = vadd.f32 %v729_v8, %v607_v56  ;;  %4323 = vmatmul.msk.f32.gmra.mxu1 %vm225_vm2, %v922_v40  ;;  %v924_v56 = vld [vmem:[#allocation2 + $0xb1] sm:$0xff] }
 0x129   : > { %7329 = vst [vmem:[#allocation11_spill] sm:$0xff] %v5384_v44  ;;  %v610_v60 = vpop.f32.mrf.mxu2  ;;  %v5387_v17 = vpop.f32.mrf.mxu0 }
 0x12b   : > { %4255 = vmatmul.msk.f32.gmra.mxu3 %vm225_vm2, %v918_v7 }
 0x12c   : > { %4290 = vmatmul.msk.f32.gmra.mxu0 %vm225_vm2, %v921_v38  ;;  %v5391_v54 = vpop.f32.mrf.mxu1 }
 0x12e   : > { %v732_v28 = vpop.f32.mrf.mxu3  ;;  %4222 = vmatmul.msk.f32.gmra.mxu2 %vm225_vm2, %v5206_v3 }
 0x12f   : > { %v5395_v52 = vadd.f32 %v732_v28, %v610_v60  ;;  %4324 = vmatmul.msk.f32.gmra.mxu1 %vm225_vm2, %v923_v48  ;;  %v925_v28 = vld [vmem:[#allocation2 + $0xc1] sm:$0xff] }
 0x131   : > { %7330 = vst [vmem:[#allocation12_spill] sm:$0xff] %v5395_v52  ;;  %v613_v63 = vpop.f32.mrf.mxu2  ;;  %v5398_v46 = vpop.f32.mrf.mxu0 }
 0x133   : > { %4256 = vmatmul.msk.f32.gmra.mxu3 %vm225_vm2, %v919_v16 }
 0x134   : > { %4291 = vmatmul.msk.f32.gmra.mxu0 %vm225_vm2, %v922_v40  ;;  %v5402_v7 = vpop.f32.mrf.mxu1 }
 0x136   : > { %v735_v8 = vpop.f32.mrf.mxu3  ;;  %4223 = vmatmul.msk.f32.gmra.mxu2 %vm225_vm2, %v5218_v5 }
 0x137   : > { %v5406_v44 = vadd.f32 %v735_v8, %v613_v63  ;;  %4325 = vmatmul.msk.f32.gmra.mxu1 %vm225_vm2, %v924_v56  ;;  %v926_v8 = vld [vmem:[#allocation2 + $0xc9] sm:$0xff] }
 0x139   : > { %7331 = vst [vmem:[#allocation13_spill] sm:$0xff] %v5406_v44  ;;  %v616_v3 = vpop.f32.mrf.mxu2  ;;  %v5409_v60 = vpop.f32.mrf.mxu0 }
 0x13b   : > { %4257 = vmatmul.msk.f32.gmra.mxu3 %vm225_vm2, %v920_v24 }
 0x13c   : > { %4292 = vmatmul.msk.f32.gmra.mxu0 %vm225_vm2, %v923_v48  ;;  %v5413_v16 = vpop.f32.mrf.mxu1 }
 0x13e   : > { %v738_v52 = vpop.f32.mrf.mxu3  ;;  %4224 = vmatmul.msk.f32.gmra.mxu2 %vm225_vm2, %v5032_v21 }
 0x13f   : > { %v5417_v36 = vadd.f32 %v738_v52, %v616_v3  ;;  %4326 = vmatmul.msk.f32.gmra.mxu1 %vm225_vm2, %v925_v28  ;;  %v927_v3 = vld [vmem:[#allocation2 + $0xd9] sm:$0xff] }
 0x141   : > { %7332 = vst [vmem:[#allocation14_spill] sm:$0xff] %v5417_v36  ;;  %v619_v5 = vpop.f32.mrf.mxu2  ;;  %v5420_v63 = vpop.f32.mrf.mxu0 }
 0x143   : > { %4258 = vmatmul.msk.f32.gmra.mxu3 %vm225_vm2, %v921_v38 }
 0x144   : > { %4293 = vmatmul.msk.f32.gmra.mxu0 %vm225_vm2, %v924_v56  ;;  %v5424_v24 = vpop.f32.mrf.mxu1 }
 0x146   : > { %v741_v44 = vpop.f32.mrf.mxu3  ;;  %4225 = vmatmul.msk.f32.gmra.mxu2 %vm225_vm2, %v5049_v27 }
 0x147   : > { %v5428_v29 = vadd.f32 %v741_v44, %v619_v5  ;;  %4327 = vmatmul.msk.f32.gmra.mxu1 %vm225_vm2, %v926_v8  ;;  %v928_v5 = vld [vmem:[#allocation2 + $0xe1] sm:$0xff] }
 0x149   : > { %7333 = vst [vmem:[#allocation15_spill] sm:$0xff] %v5428_v29  ;;  %v622_v21 = vpop.f32.mrf.mxu2  ;;  %v5431_v52 = vpop.f32.mrf.mxu0 }
 0x14b   : > { %4259 = vmatmul.msk.f32.gmra.mxu3 %vm225_vm2, %v922_v40 }
 0x14c   : > { %4294 = vmatmul.msk.f32.gmra.mxu0 %vm225_vm2, %v925_v28  ;;  %v5435_v38 = vpop.f32.mrf.mxu1 }
 0x14e   : > { %v744_v36 = vpop.f32.mrf.mxu3  ;;  %4226 = vmatmul.msk.f32.gmra.mxu2 %vm225_vm2, %v5017_v14  ;;  %v4448_v14 = vld [vmem:[%s7319_s3 + $0xc] sm:$0xf] }
 0x14f   : > { %v5439_v18 = vadd.f32 %v744_v36, %v622_v21  ;;  %4328 = vmatmul.msk.f32.gmra.mxu1 %vm225_vm2, %v927_v3 }
 0x150   : > { %4449 = vmatpush.msk.msra.mxu1 %vm514_vm0, %v4448_v14 }
 0x151   : > { %7334 = vst [vmem:[#allocation16_spill] sm:$0xff] %v5439_v18  ;;  %v625_v27 = vpop.f32.mrf.mxu2  ;;  %v5442_v44 = vpop.f32.mrf.mxu0  ;;  %v5459_v18 = vld [vmem:[#allocation2 + $0xf1] sm:$0xff] }
 0x153   : > { %4260 = vmatmul.msk.f32.gmra.mxu3 %vm225_vm2, %v923_v48 }
 0x154   : > { %4295 = vmatmul.msk.f32.gmra.mxu0 %vm225_vm2, %v926_v8  ;;  %v5446_v40 = vpop.f32.mrf.mxu1 }
 0x156   : > { %v747_v29 = vpop.f32.mrf.mxu3  ;;  %4227 = vmatmul.msk.f32.gmra.mxu2 %vm225_vm2, %v5041_v25 }
 0x157   : > { %v5450_v10 = vadd.f32 %v747_v29, %v625_v27  ;;  %4329 = vmatmul.msk.f32.gmra.mxu1 %vm225_vm2, %v928_v5  ;;  %v658_v27 = vadd.f32 %v5283_v15, %v5276_v12  ;;  %v661_v12 = vadd.f32 %v5292_v22, %v5288_v19  ;;  %v664_v19 = vadd.f32 %v5303_v33, %v5299_v30 }
 0x158   : > { %v667_v30 = vadd.f32 %v5314_v42, %v5310_v41  ;;  %v670_v41 = vadd.f32 %v5325_v53, %v5321_v50  ;;  %v673_v53 = vadd.f32 %v5336_v0, %v5332_v61  ;;  %v676_v0 = vadd.f32 %v5347_v13, %v5343_v11 }
 0x159   : > { %7335 = vst [vmem:[#allocation17_spill] sm:$0xff] %v5450_v10  ;;  %v628_v36 = vpop.f32.mrf.mxu2  ;;  %v1219_v48 = vpop.f32.mrf.mxu0  ;;  %v679_v11 = vadd.f32 %v5358_v23, %v5354_v20  ;;  %v682_v20 = vadd.f32 %v5369_v34, %v5365_v37  ;;  %v685_v37 = vadd.f32 %v5380_v45, %v5376_v57  ;;  %v688_v57 = vadd.f32 %v5391_v54, %v5387_v17 }
 0x15a   : > { %v691_v17 = vadd.f32 %v5402_v7, %v5398_v46  ;;  %v694_v46 = vadd.f32 %v5413_v16, %v5409_v60  ;;  %v697_v60 = vadd.f32 %v5424_v24, %v5420_v63  ;;  %v700_v63 = vadd.f32 %v5435_v38, %v5431_v52 }
 0x15b   : > { %4261 = vmatmul.msk.f32.gmra.mxu3 %vm225_vm2, %v924_v56  ;;  %v703_v52 = vadd.f32 %v5446_v40, %v5442_v44  ;;  %v1508_v40 = vld [vmem:[#allocation2 + $0x3a] sm:$0xff] }
 0x15c   : > { %4296 = vmatmul.msk.f32.gmra.mxu0 %vm225_vm2, %v927_v3  ;;  %v1375_v21 = vpop.f32.mrf.mxu1 }
 0x15e   : > { %v750_v25 = vpop.f32.mrf.mxu3  ;;  %4228 = vmatmul.msk.f32.gmra.mxu2 %vm225_vm2, %v5057_v31 }
 0x15f   : > { %v5463_v29 = vadd.f32 %v750_v25, %v628_v36  ;;  %4330 = vmatmul.msk.f32.gmra.mxu1 %vm225_vm2, %v5459_v18 }
 0x161   : > { %v781_v14 = vpop.f32.mrf.mxu2  ;;  %v1222_v10 = vpop.f32.mrf.mxu0 }
 0x162   : > { %v877_v56 = vadd.f32 %v781_v14, %v658_v27  ;;  %v5484_v14 = vld [vmem:[#allocation2 + $0x109] sm:$0xff] }
 0x163   : > { %4262 = vmatmul.msk.f32.gmra.mxu3 %vm225_vm2, %v925_v28 }
 0x164   : > { %4297 = vmatmul.msk.f32.gmra.mxu0 %vm225_vm2, %v928_v5  ;;  %v1378_v58 = vpop.f32.mrf.mxu1 }
 0x166   : > { %v1063_v32 = vpop.f32.mrf.mxu3  ;;  %4229 = vmatmul.msk.f32.gmra.mxu2 %vm225_vm2, %v5073_v35 }
 0x167   : > { %v1159_v31 = vadd.f32 %v1063_v32, %v877_v56  ;;  %4331 = vmatmul.msk.f32.gmra.mxu1 %vm225_vm2, %v5471_v49 }
 0x169   : > { %v1315_v15 = vadd.f32 %v1219_v48, %v1159_v31  ;;  %v784_v36 = vpop.f32.mrf.mxu2  ;;  %v1225_v25 = vpop.f32.mrf.mxu0 }
 0x16a   : > { %v878_v28 = vadd.f32 %v784_v36, %v661_v12 }
 0x16b   : > { %4263 = vmatmul.msk.f32.gmra.mxu3 %vm225_vm2, %v926_v8  ;;  %v5480_v27 = vadd.f32 %v1375_v21, %v1315_v15 }
 0x16c   : > { %4298 = vmatmul.msk.f32.gmra.mxu0 %vm225_vm2, %v5459_v18  ;;  %v1381_v32 = vpop.f32.mrf.mxu1 }
 0x16e   : > { %v1066_v35 = vpop.f32.mrf.mxu3  ;;  %4230 = vmatmul.msk.f32.gmra.mxu2 %vm225_vm2, %v5088_v39  ;;  %v5497_v39 = vld [vmem:[#allocation2 + $0x111] sm:$0xff] }
 0x16f   : > { %v1160_v56 = vadd.f32 %v1066_v35, %v878_v28  ;;  %4332 = vmatmul.msk.f32.gmra.mxu1 %vm225_vm2, %v5484_v14 }
 0x171   : > { %v1316_v22 = vadd.f32 %v1222_v10, %v1160_v56  ;;  %v787_v8 = vpop.f32.mrf.mxu2  ;;  %v1228_v48 = vpop.f32.mrf.mxu0 }
 0x172   : > { %v879_v21 = vadd.f32 %v787_v8, %v664_v19 }
 0x173   : > { %4264 = vmatmul.msk.f32.gmra.mxu3 %vm225_vm2, %v927_v3  ;;  %v5493_v31 = vadd.f32 %v1378_v58, %v1316_v22 }
 0x174   : > { %4299 = vmatmul.msk.f32.gmra.mxu0 %vm225_vm2, %v5471_v49  ;;  %v1384_v33 = vpop.f32.mrf.mxu1 }
 0x176   : > { %v1069_v12 = vpop.f32.mrf.mxu3  ;;  %4231 = vmatmul.msk.f32.gmra.mxu2 %vm225_vm2, %v5104_v43  ;;  %v5510_v43 = vld [vmem:[#allocation2 + $0x121] sm:$0xff] }
 0x177   : > { %v1161_v15 = vadd.f32 %v1069_v12, %v879_v21  ;;  %4333 = vmatmul.msk.f32.gmra.mxu1 %vm225_vm2, %v5497_v39 }
 0x179   : > { %v1317_v10 = vadd.f32 %v1225_v25, %v1161_v15  ;;  %v790_v58 = vpop.f32.mrf.mxu2  ;;  %v1231_v3 = vpop.f32.mrf.mxu0 }
 0x17a   : > { %v880_v36 = vadd.f32 %v790_v58, %v667_v30  ;;  %v5538_v30 = vld [vmem:[#allocation2 + $0x139] sm:$0xff] }
 0x17b   : > { %4265 = vmatmul.msk.f32.gmra.mxu3 %vm225_vm2, %v928_v5  ;;  %v5506_v28 = vadd.f32 %v1381_v32, %v1317_v10 }
 0x17c   : > { %4300 = vmatmul.msk.f32.gmra.mxu0 %vm225_vm2, %v5484_v14  ;;  %v1387_v19 = vpop.f32.mrf.mxu1 }
 0x17e   : > { %v1072_v35 = vpop.f32.mrf.mxu3  ;;  %4232 = vmatmul.msk.f32.gmra.mxu2 %vm225_vm2, %v5120_v47  ;;  %v5524_v47 = vld [vmem:[#allocation2 + $0x129] sm:$0xff] }
 0x17f   : > { %v1162_v56 = vadd.f32 %v1072_v35, %v880_v36  ;;  %4334 = vmatmul.msk.f32.gmra.mxu1 %vm225_vm2, %v5510_v43 }
 0x181   : > { %v1318_v42 = vadd.f32 %v1228_v48, %v1162_v56  ;;  %v793_v5 = vpop.f32.mrf.mxu2  ;;  %v1234_v25 = vpop.f32.mrf.mxu0 }
 0x182   : > { %v881_v32 = vadd.f32 %v793_v5, %v670_v41 }
 0x183   : > { %4266 = vmatmul.msk.f32.gmra.mxu3 %vm225_vm2, %v5459_v18  ;;  %v5520_v22 = vadd.f32 %v1384_v33, %v1318_v42 }
 0x184   : > { %4301 = vmatmul.msk.f32.gmra.mxu0 %vm225_vm2, %v5497_v39 }
 0x186   : > { %v1075_v8 = vpop.f32.mrf.mxu3  ;;  %4233 = vmatmul.msk.f32.gmra.mxu2 %vm225_vm2, %v5136_v51  ;;  %v1390_v51 = vpop.f32.mrf.mxu1 }
 0x187   : > { %v1163_v50 = vadd.f32 %v1075_v8, %v881_v32  ;;  %4335 = vmatmul.msk.f32.gmra.mxu1 %vm225_vm2, %v5524_v47 }
 0x189   : > { %v1319_v48 = vadd.f32 %v1231_v3, %v1163_v50  ;;  %v796_v18 = vpop.f32.mrf.mxu2  ;;  %v1237_v21 = vpop.f32.mrf.mxu0 }
 0x18a   : > { %v882_v12 = vadd.f32 %v796_v18, %v673_v53  ;;  %v938_v18 = vld [vmem:[#allocation2 + $0x159] sm:$0xff] }
 0x18b   : > { %4267 = vmatmul.msk.f32.gmra.mxu3 %vm225_vm2, %v5471_v49  ;;  %v5534_v15 = vadd.f32 %v1387_v19, %v1319_v48 }
 0x18c   : > { %4302 = vmatmul.msk.f32.gmra.mxu0 %vm225_vm2, %v5510_v43 }
 0x18e   : > { %v1078_v33 = vpop.f32.mrf.mxu3  ;;  %4234 = vmatmul.msk.f32.gmra.mxu2 %vm225_vm2, %v5152_v55  ;;  %v936_v55 = vld [vmem:[#allocation2 + $0x141] sm:$0xff]  ;;  %v1393_v56 = vpop.f32.mrf.mxu1 }
 0x18f   : > { %v1164_v61 = vadd.f32 %v1078_v33, %v882_v12  ;;  %4336 = vmatmul.msk.f32.gmra.mxu1 %vm225_vm2, %v5538_v30  ;;  %v939_v33 = vld [vmem:[#allocation2 + $0x169] sm:$0xff] }
 0x191   : > { %v1320_v49 = vadd.f32 %v1234_v25, %v1164_v61  ;;  %v799_v10 = vpop.f32.mrf.mxu2  ;;  %v1240_v58 = vpop.f32.mrf.mxu0 }
 0x192   : > { %v883_v3 = vadd.f32 %v799_v10, %v676_v0 }
 0x193   : > { %4268 = vmatmul.msk.f32.gmra.mxu3 %vm225_vm2, %v5484_v14  ;;  %v5548_v36 = vadd.f32 %v1390_v51, %v1320_v49 }
 0x194   : > { %4303 = vmatmul.msk.f32.gmra.mxu0 %vm225_vm2, %v5524_v47 }
 0x196   : > { %v1081_v35 = vpop.f32.mrf.mxu3  ;;  %4235 = vmatmul.msk.f32.gmra.mxu2 %vm225_vm2, %v5168_v59  ;;  %v937_v59 = vld [vmem:[#allocation2 + $0x151] sm:$0xff]  ;;  %v1396_v23 = vpop.f32.mrf.mxu1 }
 0x197   : > { %v1165_v41 = vadd.f32 %v1081_v35, %v883_v3  ;;  %4337 = vmatmul.msk.f32.gmra.mxu1 %vm225_vm2, %v936_v55 }
 0x199   : > { %v1321_v13 = vadd.f32 %v1237_v21, %v1165_v41  ;;  %v802_v42 = vpop.f32.mrf.mxu2  ;;  %v1243_v14 = vpop.f32.mrf.mxu0 }
 0x19a   : > { %v884_v5 = vadd.f32 %v802_v42, %v679_v11 }
 0x19b   : > { %4269 = vmatmul.msk.f32.gmra.mxu3 %vm225_vm2, %v5497_v39  ;;  %v5559_v25 = vadd.f32 %v1393_v56, %v1321_v13 }
 0x19c   : > { %4304 = vmatmul.msk.f32.gmra.mxu0 %vm225_vm2, %v5538_v30 }
 0x19e   : > { %v1084_v32 = vpop.f32.mrf.mxu3  ;;  %4236 = vmatmul.msk.f32.gmra.mxu2 %vm225_vm2, %v5183_v62 }
 0x19f   : > { %v1166_v19 = vadd.f32 %v1084_v32, %v884_v5  ;;  %4338 = vmatmul.msk.f32.gmra.mxu1 %vm225_vm2, %v937_v59 }
 0x1a1   : > { %v1322_v8 = vadd.f32 %v1240_v58, %v1166_v19  ;;  %v805_v50 = vpop.f32.mrf.mxu2  ;;  %v1246_v39 = vpop.f32.mrf.mxu0 }
 0x1a2   : > { %v885_v53 = vadd.f32 %v805_v50, %v682_v20  ;;  %v943_v20 = vld [vmem:[#allocation2 + $0x199] sm:$0xff] }
 0x1a3   : > { %4270 = vmatmul.msk.f32.gmra.mxu3 %vm225_vm2, %v5510_v43  ;;  %v5570_v48 = vadd.f32 %v1396_v23, %v1322_v8 }
 0x1a4   : > { %4305 = vmatmul.msk.f32.gmra.mxu0 %vm225_vm2, %v936_v55 }
 0x1a6   : > { %v1087_v62 = vpop.f32.mrf.mxu3  ;;  %4237 = vmatmul.msk.f32.gmra.mxu2 %vm225_vm2, %v5197_v1 }
 0x1a7   : > { %v1167_v21 = vadd.f32 %v1087_v62, %v885_v53  ;;  %4339 = vmatmul.msk.f32.gmra.mxu1 %vm225_vm2, %v938_v18  ;;  %v414_v53 = vld [vmem:[#allocation2 + $0x1a0] sm:$0xff] }
 0x1a9   : > { %v5578_v34 = vadd.f32 %v1243_v14, %v1167_v21  ;;  %v808_v12 = vpop.f32.mrf.mxu2  ;;  %v1249_v51 = vpop.f32.mrf.mxu0 }
 0x1aa   : > { %v886_v43 = vadd.f32 %v808_v12, %v685_v37 }
 0x1ab   : > { %4271 = vmatmul.msk.f32.gmra.mxu3 %vm225_vm2, %v5524_v47  ;;  %v940_v47 = vld [vmem:[#allocation2 + $0x171] sm:$0xff] }
 0x1ac   : > { %4306 = vmatmul.msk.f32.gmra.mxu0 %vm225_vm2, %v937_v59 }
 0x1ae   : > { %v1090_v61 = vpop.f32.mrf.mxu3  ;;  %4238 = vmatmul.msk.f32.gmra.mxu2 %vm225_vm2, %v5210_v4 }
 0x1af   : > { %v1168_v1 = vadd.f32 %v1090_v61, %v886_v43  ;;  %4340 = vmatmul.msk.f32.gmra.mxu1 %vm225_vm2, %v939_v33 }
 0x1b1   : > { %v5588_v45 = vadd.f32 %v1246_v39, %v1168_v1  ;;  %v811_v0 = vpop.f32.mrf.mxu2  ;;  %v1252_v49 = vpop.f32.mrf.mxu0 }
 0x1b2   : > { %v887_v10 = vadd.f32 %v811_v0, %v688_v57  ;;  %v1505_v57 = vld [vmem:[#allocation2 + $0x1a] sm:$0xff] }
 0x1b3   : > { %4272 = vmatmul.msk.f32.gmra.mxu3 %vm225_vm2, %v5538_v30  ;;  %v941_v30 = vld [vmem:[#allocation2 + $0x181] sm:$0xff] }
 0x1b4   : > { %4307 = vmatmul.msk.f32.gmra.mxu0 %vm225_vm2, %v938_v18 }
 0x1b6   : > { %v1093_v58 = vpop.f32.mrf.mxu3  ;;  %4239 = vmatmul.msk.f32.gmra.mxu2 %vm225_vm2, %v5220_v6 }
 0x1b7   : > { %v1169_v4 = vadd.f32 %v1093_v58, %v887_v10  ;;  %4341 = vmatmul.msk.f32.gmra.mxu1 %vm225_vm2, %v940_v47  ;;  %v1504_v58 = vld [vmem:[#allocation2 + $0xa] sm:$0xff] }
 0x1b9   : > { %v5598_v54 = vadd.f32 %v1249_v51, %v1169_v4  ;;  %v814_v3 = vpop.f32.mrf.mxu2  ;;  %v1255_v35 = vpop.f32.mrf.mxu0  ;;  %v1507_v51 = vld [vmem:[#allocation2 + $0x32] sm:$0xff] }
 0x1ba   : > { %v888_v56 = vadd.f32 %v814_v3, %v691_v17  ;;  %v1506_v17 = vld [vmem:[#allocation2 + $0x22] sm:$0xff] }
 0x1bb   : > { %4273 = vmatmul.msk.f32.gmra.mxu3 %vm225_vm2, %v936_v55  ;;  %v942_v55 = vld [vmem:[#allocation2 + $0x189] sm:$0xff] }
 0x1bc   : > { %4308 = vmatmul.msk.f32.gmra.mxu0 %vm225_vm2, %v939_v33 }
 0x1be   : > { %v1096_v41 = vpop.f32.mrf.mxu3  ;;  %4240 = vmatmul.msk.f32.gmra.mxu2 %vm225_vm2, %v5252_v9 }
 0x1bf   : > { %v1170_v6 = vadd.f32 %v1096_v41, %v888_v56  ;;  %4342 = vmatmul.msk.f32.gmra.mxu1 %vm225_vm2, %v941_v30  ;;  %v7336_v41 = vld [vmem:[#allocation4_spill] sm:$0xff] }
 0x1c1   : > { %v5607_v7 = vadd.f32 %v1252_v49, %v1170_v6  ;;  %v817_v11 = vpop.f32.mrf.mxu2  ;;  %v1258_v13 = vpop.f32.mrf.mxu0 }
 0x1c2   : > { %v889_v42 = vadd.f32 %v817_v11, %v694_v46 }
 0x1c3   : > { %4274 = vmatmul.msk.f32.gmra.mxu3 %vm225_vm2, %v937_v59  ;;  %v413_v59 = vld [vmem:[#allocation2 + $0x198] sm:$0xff] }
 0x1c4   : > { %4309 = vmatmul.msk.f32.gmra.mxu0 %vm225_vm2, %v940_v47 }
 0x1c6   : > { %v1099_v14 = vpop.f32.mrf.mxu3  ;;  %4241 = vmatmul.msk.f32.gmra.mxu2 %vm225_vm2, %v5270_v2 }
 0x1c7   : > { %v1171_v9 = vadd.f32 %v1099_v14, %v889_v42  ;;  %4343 = vmatmul.msk.f32.gmra.mxu1 %vm225_vm2, %v942_v55  ;;  %v7337_v14 = vld [vmem:[#allocation5_spill] sm:$0xff] }
 0x1c9   : > { %v5616_v16 = vadd.f32 %v1255_v35, %v1171_v9  ;;  %v820_v5 = vpop.f32.mrf.mxu2  ;;  %v1261_v32 = vpop.f32.mrf.mxu0 }
 0x1ca   : > { %v890_v19 = vadd.f32 %v820_v5, %v697_v60 }
 0x1cb   : > { %4275 = vmatmul.msk.f32.gmra.mxu3 %vm225_vm2, %v938_v18  ;;  %v944_v18 = vld [vmem:[#allocation2 + $0x1a1] sm:$0xff] }
 0x1cc   : > { %4310 = vmatmul.msk.f32.gmra.mxu0 %vm225_vm2, %v941_v30  ;;  %v1509_v30 = vld [vmem:[#allocation2 + $0x4a] sm:$0xff] }
 0x1ce   : > { %v1102_v23 = vpop.f32.mrf.mxu3  ;;  %4242 = vmatmul.msk.f32.gmra.mxu2 %vm225_vm2, %v413_v59 }
 0x1cf   : > { %v1172_v2 = vadd.f32 %v1102_v23, %v890_v19  ;;  %4344 = vmatmul.msk.f32.gmra.mxu1 %vm225_vm2, %v943_v20  ;;  %v1511_v20 = vld [vmem:[#allocation2 + $0x62] sm:$0xff]  ;;  %v7338_v23 = vld [vmem:[#allocation6_spill] sm:$0xff] }
 0x1d1   : > { %v5624_v24 = vadd.f32 %v1258_v13, %v1172_v2  ;;  %v823_v8 = vpop.f32.mrf.mxu2  ;;  %v1264_v50 = vpop.f32.mrf.mxu0 }
 0x1d2   : > { %v891_v39 = vadd.f32 %v823_v8, %v700_v63 }
 0x1d3   : > { %4276 = vmatmul.msk.f32.gmra.mxu3 %vm225_vm2, %v939_v33  ;;  %v1503_v33 = vld [vmem:[#allocation2 + $0x2] sm:$0xff] }
 0x1d4   : > { %4311 = vmatmul.msk.f32.gmra.mxu0 %vm225_vm2, %v942_v55  ;;  %v1510_v55 = vld [vmem:[#allocation2 + $0x52] sm:$0xff] }
 0x1d6   : > { %v1105_v62 = vpop.f32.mrf.mxu3  ;;  %4243 = vmatmul.msk.f32.gmra.mxu2 %vm225_vm2, %v414_v53 }
 0x1d7   : > { %v1173_v21 = vadd.f32 %v1105_v62, %v891_v39  ;;  %4345 = vmatmul.msk.f32.gmra.mxu1 %vm225_vm2, %v944_v18  ;;  %v1512_v18 = vld [vmem:[#allocation2 + $0x6a] sm:$0xff]  ;;  %v7339_v62 = vld [vmem:[#allocation7_spill] sm:$0xff] }
 0x1d9   : > { %v5632_v38 = vadd.f32 %v1261_v32, %v1173_v21  ;;  %v826_v37 = vpop.f32.mrf.mxu2  ;;  %v1267_v12 = vpop.f32.mrf.mxu0 }
 0x1da   : > { %v892_v43 = vadd.f32 %v826_v37, %v703_v52  ;;  %v5666_v52 = vpop.f32.mrf.mxu1 }
 0x1db   : > { %4277 = vmatmul.msk.f32.gmra.mxu3 %vm225_vm2, %v940_v47 }
 0x1dc   : > { %4416 = vmatmul.msk.f32.vlgmr.msra.gmra.mxu0 %vm225_vm2, %v1507_v51 }
 0x1de   : > { %v1108_v61 = vpop.f32.mrf.mxu3  ;;  %4348 = vmatmul.msk.f32.vlgmr.msra.gmra.mxu2 %vm225_vm2, %v1503_v33 }
 0x1df   : > { %v1174_v1 = vadd.f32 %v1108_v61, %v892_v43  ;;  %v1513_v61 = vld [vmem:[#allocation2 + $0x7a] sm:$0xff] }
 0x1e1   : > { %v5637_v0 = vadd.f32 %v1264_v50, %v1174_v1  ;;  %v829_v49 = vpop.f32.mrf.mxu2  ;;  %v1270_v44 = vpop.f32.mrf.mxu0  ;;  %v7340_v1 = vld [vmem:[#allocation8_spill] sm:$0xff] }
 0x1e2   : > { %v893_v10 = vadd.f32 %v829_v49, %v5296_v26 }
 0x1e3   : > { %4382 = vmatmul.msk.f32.vlgmr.msra.gmra.mxu3 %vm225_vm2, %v1505_v57 }
 0x1e4   : > { %4417 = vmatmul.msk.f32.gmra.mxu0 %vm225_vm2, %v1508_v40 }
 0x1e6   : > { %v1111_v47 = vpop.f32.mrf.mxu3  ;;  %4349 = vmatmul.msk.f32.gmra.mxu2 %vm225_vm2, %v1504_v58 }
 0x1e7   : > { %v1175_v4 = vadd.f32 %v1111_v47, %v893_v10  ;;  %v5675_v10 = vpop.f32.mrf.mxu1 }
 0x1e9   : > { %v5643_v3 = vadd.f32 %v1267_v12, %v1175_v4  ;;  %v832_v35 = vpop.f32.mrf.mxu2  ;;  %v1273_v56 = vpop.f32.mrf.mxu0  ;;  %v1514_v4 = vld [vmem:[#allocation2 + $0x82] sm:$0xff] }
 0x1ea   : > { %v894_v6 = vadd.f32 %v832_v35, %v7336_v41 }
 0x1eb   : > { %4383 = vmatmul.msk.f32.gmra.mxu3 %vm225_vm2, %v1506_v17 }
 0x1ec   : > { %4418 = vmatmul.msk.f32.gmra.mxu0 %vm225_vm2, %v1509_v30 }
 0x1ee   : > { %v1114_v26 = vpop.f32.mrf.mxu3  ;;  %4350 = vmatmul.msk.f32.gmra.mxu2 %vm225_vm2, %v1505_v57 }
 0x1ef   : > { %v1176_v46 = vadd.f32 %v1114_v26, %v894_v6 }
 0x1f1   : > { %v5649_v11 = vadd.f32 %v1270_v44, %v1176_v46  ;;  %v835_v13 = vpop.f32.mrf.mxu2  ;;  %v1276_v42 = vpop.f32.mrf.mxu0  ;;  %v1515_v46 = vld [vmem:[#allocation2 + $0x92] sm:$0xff] }
 0x1f2   : > { %v895_v9 = vadd.f32 %v835_v13, %v7337_v14  ;;  %v5685_v13 = vpop.f32.mrf.mxu1 }
 0x1f3   : > { %4384 = vmatmul.msk.f32.gmra.mxu3 %vm225_vm2, %v1507_v51 }
 0x1f4   : > { %4419 = vmatmul.msk.f32.gmra.mxu0 %vm225_vm2, %v1510_v55 }
 0x1f6   : > { %v1117_v60 = vpop.f32.mrf.mxu3  ;;  %4351 = vmatmul.msk.f32.gmra.mxu2 %vm225_vm2, %v1506_v17  ;;  %v7341_v17 = vld [vmem:[#allocation9_spill] sm:$0xff] }
 0x1f7   : > { %v1177_v5 = vadd.f32 %v1117_v60, %v895_v9 }
 0x1f9   : > { %v5655_v32 = vadd.f32 %v1273_v56, %v1177_v5  ;;  %v838_v19 = vpop.f32.mrf.mxu2  ;;  %v1279_v59 = vpop.f32.mrf.mxu0 }
 0x1fa   : > { %v896_v2 = vadd.f32 %v838_v19, %v7338_v23  ;;  %v7343_v23 = vld [vmem:[#allocation11_spill] sm:$0xff] }
 0x1fb   : > { %4385 = vmatmul.msk.f32.gmra.mxu3 %vm225_vm2, %v1508_v40 }
 0x1fc   : > { %4420 = vmatmul.msk.f32.gmra.mxu0 %vm225_vm2, %v1511_v20 }
 0x1fe   : > { %v1120_v63 = vpop.f32.mrf.mxu3  ;;  %4352 = vmatmul.msk.f32.gmra.mxu2 %vm225_vm2, %v1507_v51 }
 0x1ff   : > { %v1178_v8 = vadd.f32 %v1120_v63, %v896_v2  ;;  %v5695_v63 = vpop.f32.mrf.mxu1 }
 0x201   : > { %v5661_v50 = vadd.f32 %v1276_v42, %v1178_v8  ;;  %v841_v39 = vpop.f32.mrf.mxu2  ;;  %v1282_v53 = vpop.f32.mrf.mxu0  ;;  %v7342_v42 = vld [vmem:[#allocation10_spill] sm:$0xff] }
 0x202   : > { %v897_v21 = vadd.f32 %v841_v39, %v7339_v62 }
 0x203   : > { %4386 = vmatmul.msk.f32.gmra.mxu3 %vm225_vm2, %v1509_v30 }
 0x204   : > { %4421 = vmatmul.msk.f32.gmra.mxu0 %vm225_vm2, %v1512_v18 }
 0x206   : > { %v1123_v37 = vpop.f32.mrf.mxu3  ;;  %4353 = vmatmul.msk.f32.gmra.mxu2 %vm225_vm2, %v1508_v40 }
 0x207   : > { %v1179_v12 = vadd.f32 %v1123_v37, %v897_v21  ;;  %v1517_v21 = vld [vmem:[#allocation2 + $0xaa] sm:$0xff]  ;;  %v7344_v37 = vld [vmem:[#allocation12_spill] sm:$0xff] }
 0x209   : > { %v5669_v43 = vadd.f32 %v1279_v59, %v1179_v12  ;;  %v844_v51 = vpop.f32.mrf.mxu2  ;;  %v1285_v33 = vpop.f32.mrf.mxu0  ;;  %v1516_v59 = vld [vmem:[#allocation2 + $0x9a] sm:$0xff] }
 0x20a   : > { %v898_v57 = vadd.f32 %v844_v51, %v7340_v1  ;;  %v5704_v51 = vpop.f32.mrf.mxu1 }
 0x20b   : > { %4387 = vmatmul.msk.f32.gmra.mxu3 %vm225_vm2, %v1510_v55 }
 0x20c   : > { %4422 = vmatmul.msk.f32.gmra.mxu0 %vm225_vm2, %v1513_v61 }
 0x20e   : > { %v1126_v49 = vpop.f32.mrf.mxu3  ;;  %4354 = vmatmul.msk.f32.gmra.mxu2 %vm225_vm2, %v1509_v30 }
 0x20f   : > { %v1180_v44 = vadd.f32 %v1126_v49, %v898_v57 }
 0x211   : > { %v5677_v58 = vadd.f32 %v1282_v53, %v1180_v44  ;;  %v847_v40 = vpop.f32.mrf.mxu2  ;;  %v1288_v47 = vpop.f32.mrf.mxu0  ;;  %v1518_v44 = vld [vmem:[#allocation2 + $0xb2] sm:$0xff] }
 0x212   : > { %v899_v35 = vadd.f32 %v847_v40, %v7341_v17  ;;  %v7345_v40 = vld [vmem:[#allocation13_spill] sm:$0xff] }
 0x213   : > { %4388 = vmatmul.msk.f32.gmra.mxu3 %vm225_vm2, %v1511_v20 }
 0x214   : > { %4423 = vmatmul.msk.f32.gmra.mxu0 %vm225_vm2, %v1514_v4 }
 0x216   : > { %v1129_v56 = vpop.f32.mrf.mxu3  ;;  %4355 = vmatmul.msk.f32.gmra.mxu2 %vm225_vm2, %v1510_v55 }
 0x217   : > { %v1181_v41 = vadd.f32 %v1129_v56, %v899_v35  ;;  %v5713_v56 = vpop.f32.mrf.mxu1 }
 0x219   : > { %v5683_v6 = vadd.f32 %v1285_v33, %v1181_v41  ;;  %v850_v30 = vpop.f32.mrf.mxu2  ;;  %v1291_v26 = vpop.f32.mrf.mxu0 }
 0x21a   : > { %v900_v14 = vadd.f32 %v850_v30, %v7342_v42  ;;  %v7346_v42 = vld [vmem:[#allocation14_spill] sm:$0xff] }
 0x21b   : > { %4389 = vmatmul.msk.f32.gmra.mxu3 %vm225_vm2, %v1512_v18 }
 0x21c   : > { %4424 = vmatmul.msk.f32.gmra.mxu0 %vm225_vm2, %v1515_v46 }
 0x21e   : > { %v1132_v9 = vpop.f32.mrf.mxu3  ;;  %4356 = vmatmul.msk.f32.gmra.mxu2 %vm225_vm2, %v1511_v20 }
 0x21f   : > { %v1182_v60 = vadd.f32 %v1132_v9, %v900_v14 }
 0x221   : > { %v5691_v5 = vadd.f32 %v1288_v47, %v1182_v60  ;;  %v853_v55 = vpop.f32.mrf.mxu2  ;;  %v1294_v19 = vpop.f32.mrf.mxu0 }
 0x222   : > { %v901_v2 = vadd.f32 %v853_v55, %v7343_v23  ;;  %v1520_v23 = vld [vmem:[#allocation2 + $0xca] sm:$0xff] }
 0x223   : > { %4390 = vmatmul.msk.f32.gmra.mxu3 %vm225_vm2, %v1513_v61 }
 0x224   : > { %4425 = vmatmul.msk.f32.gmra.mxu0 %vm225_vm2, %v1516_v59 }
 0x226   : > { %v1135_v8 = vpop.f32.mrf.mxu3  ;;  %4357 = vmatmul.msk.f32.gmra.mxu2 %vm225_vm2, %v1512_v18 }
 0x227   : > { %v1183_v39 = vadd.f32 %v1135_v8, %v901_v2  ;;  %v5723_v2 = vpop.f32.mrf.mxu1  ;;  %v7347_v8 = vld [vmem:[#allocation15_spill] sm:$0xff] }
 0x229   : > { %v5699_v53 = vadd.f32 %v1291_v26, %v1183_v39  ;;  %v856_v20 = vpop.f32.mrf.mxu2  ;;  %v1297_v62 = vpop.f32.mrf.mxu0  ;;  %v1519_v26 = vld [vmem:[#allocation2 + $0xc2] sm:$0xff] }
 0x22a   : > { %v902_v12 = vadd.f32 %v856_v20, %v7344_v37 }
 0x22b   : > { %4391 = vmatmul.msk.f32.gmra.mxu3 %vm225_vm2, %v1514_v4 }
 0x22c   : > { %4426 = vmatmul.msk.f32.gmra.mxu0 %vm225_vm2, %v1517_v21 }
 0x22e   : > { %v1138_v33 = vpop.f32.mrf.mxu3  ;;  %4358 = vmatmul.msk.f32.gmra.mxu2 %vm225_vm2, %v1513_v61 }
 0x22f   : > { %v1184_v1 = vadd.f32 %v1138_v33, %v902_v12  ;;  %v1521_v33 = vld [vmem:[#allocation2 + $0xda] sm:$0xff] }
 0x231   : > { %v5707_v57 = vadd.f32 %v1294_v19, %v1184_v1  ;;  %v859_v18 = vpop.f32.mrf.mxu2  ;;  %v1300_v49 = vpop.f32.mrf.mxu0  ;;  %v7348_v1 = vld [vmem:[#allocation16_spill] sm:$0xff] }
 0x232   : > { %v903_v47 = vadd.f32 %v859_v18, %v7345_v40 }
 0x233   : > { %4392 = vmatmul.msk.f32.gmra.mxu3 %vm225_vm2, %v1515_v46 }
 0x234   : > { %4427 = vmatmul.msk.f32.gmra.mxu0 %vm225_vm2, %v1518_v44 }
 0x236   : > { %v1141_v17 = vpop.f32.mrf.mxu3  ;;  %4359 = vmatmul.msk.f32.gmra.mxu2 %vm225_vm2, %v1514_v4 }
 0x237   : > { %v1185_v35 = vadd.f32 %v1141_v17, %v903_v47 }
 0x239   : > { %v5715_v41 = vadd.f32 %v1297_v62, %v1185_v35  ;;  %v862_v61 = vpop.f32.mrf.mxu2  ;;  %v1303_v30 = vpop.f32.mrf.mxu0 }
 0x23a   : > { %v904_v14 = vadd.f32 %v862_v61, %v7346_v42  ;;  %v7349_v42 = vld [vmem:[#allocation17_spill] sm:$0xff] }
 0x23b   : > { %4393 = vmatmul.msk.f32.gmra.mxu3 %vm225_vm2, %v1516_v59 }
 0x23c   : > { %4428 = vmatmul.msk.f32.gmra.mxu0 %vm225_vm2, %v1519_v26 }
 0x23e   : > { %v1144_v9 = vpop.f32.mrf.mxu3  ;;  %4360 = vmatmul.msk.f32.gmra.mxu2 %vm225_vm2, %v1515_v46 }
 0x23f   : > { %v1186_v60 = vadd.f32 %v1144_v9, %v904_v14 }
 0x241   : > { %v5721_v55 = vadd.f32 %v1300_v49, %v1186_v60  ;;  %v865_v4 = vpop.f32.mrf.mxu2  ;;  %v1306_v19 = vpop.f32.mrf.mxu0 }
 0x242   : > { %v905_v39 = vadd.f32 %v865_v4, %v7347_v8  ;;  %v5733_v49 = vpop.f32.mrf.mxu1  ;;  %v4515_v4 = vld [vmem:[%s7319_s3 + $0x18] sm:$0xf] }
 0x243   : > { %4394 = vmatmul.msk.f32.gmra.mxu3 %vm225_vm2, %v1517_v21 }
 0x244   : > { %4429 = vmatmul.msk.f32.gmra.mxu0 %vm225_vm2, %v1520_v23  ;;  %4516 = vmatpush.msk.msrb.mxu3 %vm514_vm0, %v4515_v4  ;;  %v5786_v4 = vld [vmem:[#allocation2 + $0x10a] sm:$0xff] }
 0x246   : > { %v1147_v20 = vpop.f32.mrf.mxu3  ;;  %4361 = vmatmul.msk.f32.gmra.mxu2 %vm225_vm2, %v1516_v59  ;;  %v2234_v59 = vld [vmem:[%s7319_s3] sm:$0xf] }
 0x247   : > { %v1187_v62 = vadd.f32 %v1147_v20, %v905_v39  ;;  %4482 = vmatpush.msk.msrb.mxu2 %vm514_vm0, %v2234_v59  ;;  %v5755_v20 = vld [vmem:[#allocation2 + $0xf2] sm:$0xff] }
 0x249   : > { %v5729_v37 = vadd.f32 %v1303_v30, %v1187_v62  ;;  %v868_v46 = vpop.f32.mrf.mxu2  ;;  %v1309_v12 = vpop.f32.mrf.mxu0  ;;  %v1522_v30 = vld [vmem:[#allocation2 + $0xe2] sm:$0xff] }
 0x24a   : > { %v906_v18 = vadd.f32 %v868_v46, %v7348_v1  ;;  %v5746_v9 = vpop.f32.mrf.mxu1  ;;  %v4583_v1 = vld [vmem:[%s7319_s3 + $0x10] sm:$0xf] }
 0x24b   : > { %4395 = vmatmul.msk.f32.gmra.mxu3 %vm225_vm2, %v1518_v44  ;;  %4584 = vmatpush.msk.msrb.mxu1 %vm514_vm0, %v4583_v1 }
 0x24c   : > { %4430 = vmatmul.msk.f32.gmra.mxu0 %vm225_vm2, %v1521_v33 }
 0x24e   : > { %v1150_v40 = vpop.f32.mrf.mxu3  ;;  %4362 = vmatmul.msk.f32.gmra.mxu2 %vm225_vm2, %v1517_v21 }
 0x24f   : > { %v1188_v47 = vadd.f32 %v1150_v40, %v906_v18 }
 0x251   : > { %v5741_v17 = vadd.f32 %v1306_v19, %v1188_v47  ;;  %v871_v35 = vpop.f32.mrf.mxu2  ;;  %v1312_v61 = vpop.f32.mrf.mxu0 }
 0x252   : > { %v907_v14 = vadd.f32 %v871_v35, %v7349_v42  ;;  %v5768_v18 = vpop.f32.mrf.mxu1 }
 0x253   : > { %4396 = vmatmul.msk.f32.gmra.mxu3 %vm225_vm2, %v1519_v26 }
 0x254   : > { %4431 = vmatmul.msk.f32.gmra.mxu0 %vm225_vm2, %v1522_v30 }
 0x256   : > { %v1153_v21 = vpop.f32.mrf.mxu3  ;;  %4363 = vmatmul.msk.f32.gmra.mxu2 %vm225_vm2, %v1518_v44 }
 0x257   : > { %v1189_v60 = vadd.f32 %v1153_v21, %v907_v14 }
 0x259   : > { %v5753_v19 = vadd.f32 %v1309_v12, %v1189_v60  ;;  %v874_v8 = vpop.f32.mrf.mxu2  ;;  %v1969_v39 = vpop.f32.mrf.mxu0  ;;  %v4549_v12 = vld [vmem:[%s7319_s3 + $0x4] sm:$0xf] }
 0x25a   : > { %v908_v62 = vadd.f32 %v874_v8, %v5463_v29  ;;  %4550 = vmatpush.msk.msrb.mxu0 %vm514_vm0, %v4549_v12  ;;  %v5788_v8 = vpop.f32.mrf.mxu1 }
 0x25b   : > { %4397 = vmatmul.msk.f32.gmra.mxu3 %vm225_vm2, %v1520_v23 }
 0x25c   : > { %4432 = vmatmul.msk.f32.gmra.mxu0 %vm225_vm2, %v5755_v20 }
 0x25e   : > { %v1156_v44 = vpop.f32.mrf.mxu3  ;;  %4364 = vmatmul.msk.f32.gmra.mxu2 %vm225_vm2, %v1519_v26  ;;  %v5774_v26 = vld [vmem:[#allocation2 + $0xfa] sm:$0xff] }
 0x25f   : > { %v1190_v46 = vadd.f32 %v1156_v44, %v908_v62 }
 0x261   : > { %v5772_v29 = vadd.f32 %v1312_v61, %v1190_v46  ;;  %v1657_v40 = vpop.f32.mrf.mxu2  ;;  %v1972_v47 = vpop.f32.mrf.mxu0  ;;  %v5784_v61 = vld [vmem:[%s7318_s2] ss:$0 sm:$0xff] }
 0x262   : > { %v1753_v59 = vadd.f32 %v1657_v40, %v5480_v27  ;;  %v5797_v40 = vld [vmem:[#allocation2 + $0x112] sm:$0xff] }
 0x263   : > { %7350 = vst [vmem:[#allocation4_spill] sm:$0xff] %v5772_v29  ;;  %4398 = vmatmul.msk.f32.gmra.mxu3 %vm225_vm2, %v1521_v33 }
 0x264   : > { %4433 = vmatmul.msk.f32.gmra.mxu0 %vm225_vm2, %v5774_v26 }
 0x266   : > { %v1813_v35 = vpop.f32.mrf.mxu3  ;;  %4365 = vmatmul.msk.f32.gmra.mxu2 %vm225_vm2, %v1520_v23 }
 0x267   : > { %v1909_v42 = vadd.f32 %v1813_v35, %v1753_v59  ;;  %v5803_v35 = vpop.f32.mrf.mxu1 }
 0x269   : > { %v2065_v14 = vadd.f32 %v1969_v39, %v1909_v42  ;;  %v1660_v21 = vpop.f32.mrf.mxu2  ;;  %v1975_v60 = vpop.f32.mrf.mxu0 }
 0x26a   : > { %v1754_v62 = vadd.f32 %v1660_v21, %v5493_v31 }
 0x26b   : > { %v2101_v27 = vadd.f32 %v5784_v61, %v2065_v14  ;;  %4399 = vmatmul.msk.f32.gmra.mxu3 %vm225_vm2, %v1522_v30 }
 0x26c   : > { %4434 = vmatmul.msk.f32.gmra.mxu0 %vm225_vm2, %v5786_v4 }
 0x26d   : > { %v2133_v23 = vmax.f32 %v2101_v27, 0.0 }
 0x26e   : > { %v1816_v44 = vpop.f32.mrf.mxu3  ;;  %4366 = vmatmul.msk.f32.gmra.mxu2 %vm225_vm2, %v1521_v33 }
 0x26f   : > { %2166 = vst.msk [vmem:[#allocation3 + $0x19] sm:$0xff] %vm225_vm2, %v2133_v23  ;;  %v1910_v39 = vadd.f32 %v1816_v44, %v1754_v62  ;;  %v5813_v62 = vld [vmem:[#allocation2 + $0x122] sm:$0xff] }
 0x271   : > { %v2066_v46 = vadd.f32 %v1972_v47, %v1910_v39  ;;  %v1663_v12 = vpop.f32.mrf.mxu2  ;;  %v1978_v1 = vpop.f32.mrf.mxu0 }
 0x272   : > { %v1755_v31 = vadd.f32 %v1663_v12, %v5506_v28  ;;  %v5821_v39 = vpop.f32.mrf.mxu1 }
 0x273   : > { %v2102_v59 = vadd.f32 %v5784_v61, %v2066_v46  ;;  %4400 = vmatmul.msk.f32.gmra.mxu3 %vm225_vm2, %v5755_v20 }
 0x274   : > { %4435 = vmatmul.msk.f32.gmra.mxu0 %vm225_vm2, %v5797_v40 }
 0x275   : > { %v2134_v33 = vmax.f32 %v2102_v59, 0.0 }
 0x276   : > { %v1819_v42 = vpop.f32.mrf.mxu3  ;;  %v5807_v14 = vld [vmem:[#allocation3 + $0x18] sm:$0xff]  ;;  %4367 = vmatmul.msk.f32.gmra.mxu2 %vm225_vm2, %v1522_v30 }
 0x277   : > { %2167 = vst.msk [vmem:[#allocation3 + $0x21] sm:$0xff] %vm225_vm2, %v2134_v33  ;;  %v1911_v47 = vadd.f32 %v1819_v42, %v1755_v31  ;;  %4450 = vmatmul.msk.f32.vlgmr.msra.gmra.mxu1 %vm225_vm2, %v5807_v14  ;;  %v5830_v33 = vld [vmem:[#allocation2 + $0x12a] sm:$0xff] }
 0x279   : > { %v2067_v21 = vadd.f32 %v1975_v60, %v1911_v47  ;;  %v1666_v27 = vpop.f32.mrf.mxu2  ;;  %v1981_v28 = vpop.f32.mrf.mxu0 }
 0x27a   : > { %v1756_v44 = vadd.f32 %v1666_v27, %v5520_v22 }
 0x27b   : > { %v2103_v23 = vadd.f32 %v5784_v61, %v2067_v21  ;;  %4401 = vmatmul.msk.f32.gmra.mxu3 %vm225_vm2, %v5774_v26 }
 0x27c   : > { %4436 = vmatmul.msk.f32.gmra.mxu0 %vm225_vm2, %v5813_v62 }
 0x27d   : > { %v2135_v30 = vmax.f32 %v2103_v23, 0.0  ;;  %v5845_v23 = vpop.f32.mrf.mxu1 }
 0x27e   : > { %v1822_v46 = vpop.f32.mrf.mxu3  ;;  %v5823_v12 = vld [vmem:[#allocation3 + $0x20] sm:$0xff]  ;;  %4368 = vmatmul.msk.f32.gmra.mxu2 %vm225_vm2, %v5755_v20 }
 0x27f   : > { %2168 = vst.msk [vmem:[#allocation3 + $0x31] sm:$0xff] %vm225_vm2, %v2135_v30  ;;  %v1912_v60 = vadd.f32 %v1822_v46, %v1756_v44  ;;  %4451 = vmatmul.msk.f32.gmra.mxu1 %vm225_vm2, %v5823_v12  ;;  %v5847_v46 = vld [vmem:[#allocation2 + $0x13a] sm:$0xff] }
 0x281   : > { %v2068_v59 = vadd.f32 %v1978_v1, %v1912_v60  ;;  %v1669_v22 = vpop.f32.mrf.mxu2  ;;  %v1984_v31 = vpop.f32.mrf.mxu0 }
 0x282   : > { %v1757_v47 = vadd.f32 %v1669_v22, %v5534_v15 }
 0x283   : > { %v2104_v42 = vadd.f32 %v5784_v61, %v2068_v59  ;;  %4402 = vmatmul.msk.f32.gmra.mxu3 %vm225_vm2, %v5786_v4 }
 0x284   : > { %4437 = vmatmul.msk.f32.gmra.mxu0 %vm225_vm2, %v5830_v33 }
 0x285   : > { %v2136_v20 = vmax.f32 %v2104_v42, 0.0 }
 0x286   : > { %v1825_v21 = vpop.f32.mrf.mxu3  ;;  %v5838_v27 = vld [vmem:[#allocation3 + $0x30] sm:$0xff]  ;;  %4369 = vmatmul.msk.f32.gmra.mxu2 %vm225_vm2, %v5774_v26 }
 0x287   : > { %2169 = vst.msk [vmem:[#allocation3 + $0x39] sm:$0xff] %vm225_vm2, %v2136_v20  ;;  %v1913_v1 = vadd.f32 %v1825_v21, %v1757_v47  ;;  %4452 = vmatmul.msk.f32.gmra.mxu1 %vm225_vm2, %v5838_v27 }
 0x289   : > { %v2069_v44 = vadd.f32 %v1981_v28, %v1913_v1  ;;  %v1672_v15 = vpop.f32.mrf.mxu2  ;;  %v1987_v30 = vpop.f32.mrf.mxu0 }
 0x28a   : > { %v1758_v26 = vadd.f32 %v1672_v15, %v5548_v36  ;;  %v5862_v36 = vld [vmem:[#allocation2 + $0x142] sm:$0xff]  ;;  %v5864_v1 = vpop.f32.mrf.mxu1 }
 0x28b   : > { %v2105_v60 = vadd.f32 %v5784_v61, %v2069_v44  ;;  %4403 = vmatmul.msk.f32.gmra.mxu3 %vm225_vm2, %v5797_v40 }
 0x28c   : > { %4438 = vmatmul.msk.f32.gmra.mxu0 %vm225_vm2, %v5847_v46 }
 0x28d   : > { %v2137_v59 = vmax.f32 %v2105_v60, 0.0 }
 0x28e   : > { %v1828_v22 = vpop.f32.mrf.mxu3  ;;  %v5855_v42 = vld [vmem:[#allocation3 + $0x38] sm:$0xff]  ;;  %4370 = vmatmul.msk.f32.gmra.mxu2 %vm225_vm2, %v5786_v4 }
 0x28f   : > { %2170 = vst.msk [vmem:[#allocation3 + $0x49] sm:$0xff] %vm225_vm2, %v2137_v59  ;;  %v1914_v28 = vadd.f32 %v1828_v22, %v1758_v26  ;;  %4453 = vmatmul.msk.f32.gmra.mxu1 %vm225_vm2, %v5855_v42 }
 0x291   : > { %v2070_v47 = vadd.f32 %v1984_v31, %v1914_v28  ;;  %v1675_v20 = vpop.f32.mrf.mxu2  ;;  %v1990_v21 = vpop.f32.mrf.mxu0 }
 0x292   : > { %v1759_v4 = vadd.f32 %v1675_v20, %v5559_v25  ;;  %v5879_v25 = vld [vmem:[#allocation2 + $0x152] sm:$0xff] }
 0x293   : > { %v2106_v44 = vadd.f32 %v5784_v61, %v2070_v47  ;;  %4404 = vmatmul.msk.f32.gmra.mxu3 %vm225_vm2, %v5813_v62 }
 0x294   : > { %4439 = vmatmul.msk.f32.gmra.mxu0 %vm225_vm2, %v5862_v36 }
 0x295   : > { %v2138_v15 = vmax.f32 %v2106_v44, 0.0  ;;  %v5885_v44 = vpop.f32.mrf.mxu1 }
 0x296   : > { %v1831_v60 = vpop.f32.mrf.mxu3  ;;  %v5872_v26 = vld [vmem:[#allocation3 + $0x48] sm:$0xff]  ;;  %4371 = vmatmul.msk.f32.gmra.mxu2 %vm225_vm2, %v5797_v40 }
 0x297   : > { %2171 = vst.msk [vmem:[#allocation3 + $0x51] sm:$0xff] %vm225_vm2, %v2138_v15  ;;  %v1915_v31 = vadd.f32 %v1831_v60, %v1759_v4  ;;  %4454 = vmatmul.msk.f32.gmra.mxu1 %vm225_vm2, %v5872_v26 }
 0x299   : > { %v2071_v59 = vadd.f32 %v1987_v30, %v1915_v31  ;;  %v1678_v22 = vpop.f32.mrf.mxu2  ;;  %v1993_v28 = vpop.f32.mrf.mxu0 }
 0x29a   : > { %v1760_v20 = vadd.f32 %v1678_v22, %v5570_v48  ;;  %v1479_v48 = vadd.f32 %v5666_v52, %v5578_v34  ;;  %v5898_v22 = vld [vmem:[#allocation2 + $0x15a] sm:$0xff]  ;;  %v1480_v52 = vadd.f32 %v5675_v10, %v5588_v45 }
 0x29b   : > { %v2107_v47 = vadd.f32 %v5784_v61, %v2071_v59  ;;  %4405 = vmatmul.msk.f32.gmra.mxu3 %vm225_vm2, %v5830_v33 }
 0x29c   : > { %4440 = vmatmul.msk.f32.gmra.mxu0 %vm225_vm2, %v5879_v25 }
 0x29d   : > { %v2139_v40 = vmax.f32 %v2107_v47, 0.0 }
 0x29e   : > { %v1834_v4 = vpop.f32.mrf.mxu3  ;;  %v5889_v15 = vld [vmem:[#allocation3 + $0x50] sm:$0xff]  ;;  %4372 = vmatmul.msk.f32.gmra.mxu2 %vm225_vm2, %v5813_v62 }
 0x29f   : > { %2172 = vst.msk [vmem:[#allocation3 + $0x61] sm:$0xff] %vm225_vm2, %v2139_v40  ;;  %v1916_v30 = vadd.f32 %v1834_v4, %v1760_v20  ;;  %4455 = vmatmul.msk.f32.gmra.mxu1 %vm225_vm2, %v5889_v15  ;;  %v5905_v40 = vpop.f32.mrf.mxu1 }
 0x2a1   : > { %v2072_v60 = vadd.f32 %v1990_v21, %v1916_v30  ;;  %v1681_v31 = vpop.f32.mrf.mxu2  ;;  %v1996_v59 = vpop.f32.mrf.mxu0 }
 0x2a2   : > { %v1761_v62 = vadd.f32 %v1681_v31, %v1479_v48 }
 0x2a3   : > { %v2108_v47 = vadd.f32 %v5784_v61, %v2072_v60  ;;  %4406 = vmatmul.msk.f32.gmra.mxu3 %vm225_vm2, %v5847_v46  ;;  %v5916_v60 = vld [vmem:[#allocation2 + $0x16a] sm:$0xff] }
 0x2a4   : > { %4441 = vmatmul.msk.f32.gmra.mxu0 %vm225_vm2, %v5898_v22 }
 0x2a5   : > { %v2140_v20 = vmax.f32 %v2108_v47, 0.0 }
 0x2a6   : > { %v1837_v4 = vpop.f32.mrf.mxu3  ;;  %v5907_v29 = vld [vmem:[#allocation3 + $0x60] sm:$0xff]  ;;  %4373 = vmatmul.msk.f32.gmra.mxu2 %vm225_vm2, %v5830_v33 }
 0x2a7   : > { %2173 = vst.msk [vmem:[#allocation3 + $0x69] sm:$0xff] %vm225_vm2, %v2140_v20  ;;  %v1917_v34 = vadd.f32 %v1837_v4, %v1761_v62  ;;  %4456 = vmatmul.msk.f32.gmra.mxu1 %vm225_vm2, %v5907_v29  ;;  %v5930_v10 = vpop.f32.mrf.mxu1 }
 0x2a9   : > { %v2073_v21 = vadd.f32 %v1993_v28, %v1917_v34  ;;  %v1684_v30 = vpop.f32.mrf.mxu2  ;;  %v1999_v48 = vpop.f32.mrf.mxu0  ;;  %v1481_v28 = vadd.f32 %v5685_v13, %v5598_v54  ;;  %v1482_v13 = vadd.f32 %v5695_v63, %v5607_v7  ;;  %v1483_v63 = vadd.f32 %v5704_v51, %v5616_v16 }
 0x2aa   : > { %v1762_v33 = vadd.f32 %v1684_v30, %v1480_v52  ;;  %v1484_v51 = vadd.f32 %v5713_v56, %v5624_v24  ;;  %v1485_v56 = vadd.f32 %v5723_v2, %v5632_v38 }
 0x2ab   : > { %v2109_v31 = vadd.f32 %v5784_v61, %v2073_v21  ;;  %4407 = vmatmul.msk.f32.gmra.mxu3 %vm225_vm2, %v5862_v36  ;;  %v5934_v21 = vld [vmem:[#allocation2 + $0x172] sm:$0xff] }
 0x2ac   : > { %4442 = vmatmul.msk.f32.gmra.mxu0 %vm225_vm2, %v5916_v60 }
 0x2ad   : > { %v2141_v47 = vmax.f32 %v2109_v31, 0.0 }
 0x2ae   : > { %v1840_v62 = vpop.f32.mrf.mxu3  ;;  %v5923_v20 = vld [vmem:[#allocation3 + $0x68] sm:$0xff]  ;;  %4374 = vmatmul.msk.f32.gmra.mxu2 %vm225_vm2, %v5847_v46 }
 0x2af   : > { %2174 = vst.msk [vmem:[#allocation3 + $0x79] sm:$0xff] %vm225_vm2, %v2141_v47  ;;  %v1918_v45 = vadd.f32 %v1840_v62, %v1762_v33  ;;  %4457 = vmatmul.msk.f32.gmra.mxu1 %vm225_vm2, %v5923_v20 }
 0x2b1   : > { %v2074_v4 = vadd.f32 %v1996_v59, %v1918_v45  ;;  %v1687_v34 = vpop.f32.mrf.mxu2  ;;  %v2002_v52 = vpop.f32.mrf.mxu0 }
 0x2b2   : > { %v1763_v46 = vadd.f32 %v1687_v34, %v1481_v28  ;;  %v1535_v28 = vld [vmem:[#allocation2 + $0x182] sm:$0xff] }
 0x2b3   : > { %v2110_v30 = vadd.f32 %v5784_v61, %v2074_v4  ;;  %4408 = vmatmul.msk.f32.gmra.mxu3 %vm225_vm2, %v5879_v25  ;;  %v5950_v4 = vpop.f32.mrf.mxu1 }
 0x2b4   : > { %4443 = vmatmul.msk.f32.gmra.mxu0 %vm225_vm2, %v5934_v21 }
 0x2b5   : > { %v2142_v31 = vmax.f32 %v2110_v30, 0.0 }
 0x2b6   : > { %v1843_v33 = vpop.f32.mrf.mxu3  ;;  %v5941_v47 = vld [vmem:[#allocation3 + $0x78] sm:$0xff]  ;;  %4375 = vmatmul.msk.f32.gmra.mxu2 %vm225_vm2, %v5862_v36 }
 0x2b7   : > { %2175 = vst.msk [vmem:[#allocation3 + $0x81] sm:$0xff] %vm225_vm2, %v2142_v31  ;;  %v1919_v54 = vadd.f32 %v1843_v33, %v1763_v46  ;;  %4458 = vmatmul.msk.f32.gmra.mxu1 %vm225_vm2, %v5941_v47 }
 0x2b9   : > { %v2075_v59 = vadd.f32 %v1999_v48, %v1919_v54  ;;  %v1690_v62 = vpop.f32.mrf.mxu2  ;;  %v2005_v45 = vpop.f32.mrf.mxu0 }
 0x2ba   : > { %v1764_v36 = vadd.f32 %v1690_v62, %v1482_v13  ;;  %v1536_v13 = vld [vmem:[#allocation2 + $0x18a] sm:$0xff] }
 0x2bb   : > { %v2111_v34 = vadd.f32 %v5784_v61, %v2075_v59  ;;  %4409 = vmatmul.msk.f32.gmra.mxu3 %vm225_vm2, %v5898_v22 }
 0x2bc   : > { %4444 = vmatmul.msk.f32.gmra.mxu0 %vm225_vm2, %v1535_v28 }
 0x2bd   : > { %v2143_v30 = vmax.f32 %v2111_v34, 0.0 }
 0x2be   : > { %v1846_v46 = vpop.f32.mrf.mxu3  ;;  %v5956_v31 = vld [vmem:[#allocation3 + $0x80] sm:$0xff]  ;;  %4376 = vmatmul.msk.f32.gmra.mxu2 %vm225_vm2, %v5879_v25  ;;  %v5968_v25 = vpop.f32.mrf.mxu1 }
 0x2bf   : > { %2176 = vst.msk [vmem:[#allocation3 + $0x91] sm:$0xff] %vm225_vm2, %v2143_v30  ;;  %v1920_v7 = vadd.f32 %v1846_v46, %v1764_v36  ;;  %4459 = vmatmul.msk.f32.gmra.mxu1 %vm225_vm2, %v5956_v31 }
 0x2c1   : > { %v2076_v48 = vadd.f32 %v2002_v52, %v1920_v7  ;;  %v1693_v33 = vpop.f32.mrf.mxu2  ;;  %v2008_v54 = vpop.f32.mrf.mxu0 }
 0x2c2   : > { %v1765_v62 = vadd.f32 %v1693_v33, %v1483_v63  ;;  %v1537_v63 = vld [vmem:[#allocation2 + $0x19a] sm:$0xff] }
 0x2c3   : > { %v2112_v59 = vadd.f32 %v5784_v61, %v2076_v48  ;;  %4410 = vmatmul.msk.f32.gmra.mxu3 %vm225_vm2, %v5916_v60 }
 0x2c4   : > { %4445 = vmatmul.msk.f32.gmra.mxu0 %vm225_vm2, %v1536_v13 }
 0x2c5   : > { %v2144_v34 = vmax.f32 %v2112_v59, 0.0 }
 0x2c6   : > { %v1849_v36 = vpop.f32.mrf.mxu3  ;;  %v5971_v30 = vld [vmem:[#allocation3 + $0x90] sm:$0xff]  ;;  %4377 = vmatmul.msk.f32.gmra.mxu2 %vm225_vm2, %v5898_v22  ;;  %v5984_v59 = vpop.f32.mrf.mxu1 }
 0x2c7   : > { %2177 = vst.msk [vmem:[#allocation3 + $0x99] sm:$0xff] %vm225_vm2, %v2144_v34  ;;  %v1921_v16 = vadd.f32 %v1849_v36, %v1765_v62  ;;  %4460 = vmatmul.msk.f32.gmra.mxu1 %vm225_vm2, %v5971_v30 }
 0x2c9   : > { %v2077_v52 = vadd.f32 %v2005_v45, %v1921_v16  ;;  %v1696_v46 = vpop.f32.mrf.mxu2  ;;  %v2011_v7 = vpop.f32.mrf.mxu0 }
 0x2ca   : > { %v1766_v33 = vadd.f32 %v1696_v46, %v1484_v51  ;;  %v1538_v51 = vld [vmem:[#allocation2 + $0x1a2] sm:$0xff] }
 0x2cb   : > { %v2113_v48 = vadd.f32 %v5784_v61, %v2077_v52  ;;  %4411 = vmatmul.msk.f32.gmra.mxu3 %vm225_vm2, %v5934_v21 }
 0x2cc   : > { %4446 = vmatmul.msk.f32.gmra.mxu0 %vm225_vm2, %v1537_v63 }
 0x2cd   : > { %v2145_v22 = vmax.f32 %v2113_v48, 0.0 }
 0x2ce   : > { %v1852_v62 = vpop.f32.mrf.mxu3  ;;  %v5986_v34 = vld [vmem:[#allocation3 + $0x98] sm:$0xff]  ;;  %4378 = vmatmul.msk.f32.gmra.mxu2 %vm225_vm2, %v5916_v60  ;;  %v6005_v2 = vpop.f32.mrf.mxu1 }
 0x2cf   : > { %2178 = vst.msk [vmem:[#allocation3 + $0xa9] sm:$0xff] %vm225_vm2, %v2145_v22  ;;  %v1922_v24 = vadd.f32 %v1852_v62, %v1766_v33  ;;  %4461 = vmatmul.msk.f32.gmra.mxu1 %vm225_vm2, %v5986_v34  ;;  %v2727_v62 = vld [vmem:[#allocation3 + $0x1] sm:$0xff] }
 0x2d1   : > { %v2078_v45 = vadd.f32 %v2008_v54, %v1922_v24  ;;  %v1699_v36 = vpop.f32.mrf.mxu2  ;;  %v2014_v16 = vpop.f32.mrf.mxu0 }
 0x2d2   : > { %v1767_v46 = vadd.f32 %v1699_v36, %v1485_v56  ;;  %v2198_v56 = vld [vmem:[#allocation3] sm:$0xff] }
 0x2d3   : > { %v2114_v52 = vadd.f32 %v5784_v61, %v2078_v45  ;;  %4412 = vmatmul.msk.f32.gmra.mxu3 %vm225_vm2, %v1535_v28  ;;  %v1486_v28 = vadd.f32 %v5733_v49, %v5637_v0  ;;  %v1487_v49 = vadd.f32 %v5746_v9, %v5643_v3  ;;  %v1488_v9 = vadd.f32 %v5768_v18, %v5649_v11 }
 0x2d4   : > { %4447 = vmatmul.msk.f32.gmra.mxu0 %vm225_vm2, %v1538_v51  ;;  %v1489_v18 = vadd.f32 %v5788_v8, %v5655_v32  ;;  %v1490_v8 = vadd.f32 %v5803_v35, %v5661_v50  ;;  %v1491_v35 = vadd.f32 %v5821_v39, %v5669_v43  ;;  %v1492_v39 = vadd.f32 %v5845_v23, %v5677_v58 }
 0x2d5   : > { %v2146_v60 = vmax.f32 %v2114_v52, 0.0  ;;  %v1493_v23 = vadd.f32 %v5864_v1, %v5683_v6  ;;  %v1494_v1 = vadd.f32 %v5885_v44, %v5691_v5  ;;  %v1495_v44 = vadd.f32 %v5905_v40, %v5699_v53 }
 0x2d6   : > { %v1855_v63 = vpop.f32.mrf.mxu3  ;;  %v5998_v48 = vld [vmem:[#allocation3 + $0xa8] sm:$0xff]  ;;  %4379 = vmatmul.msk.f32.gmra.mxu2 %vm225_vm2, %v5934_v21  ;;  %v1496_v40 = vadd.f32 %v5930_v10, %v5707_v57  ;;  %v1497_v10 = vadd.f32 %v5950_v4, %v5715_v41  ;;  %v1498_v4 = vadd.f32 %v5968_v25, %v5721_v55  ;;  %v1499_v25 = vadd.f32 %v5984_v59, %v5729_v37 }
 0x2d7   : > { %2179 = vst.msk [vmem:[#allocation3 + $0xb1] sm:$0xff] %vm225_vm2, %v2146_v60  ;;  %v1923_v38 = vadd.f32 %v1855_v63, %v1767_v46  ;;  %4462 = vmatmul.msk.f32.gmra.mxu1 %vm225_vm2, %v5998_v48  ;;  %v2728_v46 = vld [vmem:[#allocation3 + $0x9] sm:$0xff]  ;;  %v6020_v60 = vpop.f32.mrf.mxu1  ;;  %v1500_v59 = vadd.f32 %v6005_v2, %v5741_v17 }
 0x2d9   : > { %v2079_v54 = vadd.f32 %v2011_v7, %v1923_v38  ;;  %v1702_v33 = vpop.f32.mrf.mxu2  ;;  %v2017_v22 = vpop.f32.mrf.mxu0 }
 0x2da   : > { %v1768_v21 = vadd.f32 %v1702_v33, %v1486_v28  ;;  %v2199_v28 = vld [vmem:[#allocation3 + $0x8] sm:$0xff] }
 0x2db   : > { %v2115_v24 = vadd.f32 %v5784_v61, %v2079_v54  ;;  %4413 = vmatmul.msk.f32.gmra.mxu3 %vm225_vm2, %v1536_v13 }
 0x2dc   : > { %4551 = vmatmul.msk.f32.vlgmr.msrb.gmra.mxu0 %vm225_vm2, %v2727_v62 }
 0x2dd   : > { %v2147_v45 = vmax.f32 %v2115_v24, 0.0 }
 0x2de   : > { %v1858_v36 = vpop.f32.mrf.mxu3  ;;  %v6012_v51 = vld [vmem:[#allocation3 + $0xb0] sm:$0xff]  ;;  %4483 = vmatmul.msk.f32.vlgmr.msrb.gmra.mxu2 %vm225_vm2, %v2198_v56 }
 0x2df   : > { %2180 = vst.msk [vmem:[#allocation3 + $0xc1] sm:$0xff] %vm225_vm2, %v2147_v45  ;;  %v1924_v0 = vadd.f32 %v1858_v36, %v1768_v21  ;;  %4463 = vmatmul.msk.f32.gmra.mxu1 %vm225_vm2, %v6012_v51  ;;  %v6037_v36 = vld [vmem:[#allocation3 + $0x19] sm:$0xff] }
 0x2e1   : > { %v2080_v13 = vadd.f32 %v2014_v16, %v1924_v0  ;;  %v1705_v7 = vpop.f32.mrf.mxu2  ;;  %v2020_v52 = vpop.f32.mrf.mxu0 }
 0x2e2   : > { %v1769_v38 = vadd.f32 %v1705_v7, %v1487_v49  ;;  %v6039_v0 = vpop.f32.mrf.mxu1 }
 0x2e3   : > { %v2116_v63 = vadd.f32 %v5784_v61, %v2080_v13  ;;  %4517 = vmatmul.msk.f32.vlgmr.msrb.gmra.mxu3 %vm225_vm2, %v5838_v27 }
 0x2e4   : > { %4552 = vmatmul.msk.f32.gmra.mxu0 %vm225_vm2, %v2728_v46 }
 0x2e5   : > { %v2148_v54 = vmax.f32 %v2116_v63, 0.0 }
 0x2e6   : > { %v1861_v33 = vpop.f32.mrf.mxu3  ;;  %v6026_v62 = vld [vmem:[#allocation3 + $0xc0] sm:$0xff]  ;;  %4484 = vmatmul.msk.f32.gmra.mxu2 %vm225_vm2, %v2199_v28 }
 0x2e7   : > { %2181 = vst.msk [vmem:[#allocation3 + $0xc9] sm:$0xff] %vm225_vm2, %v2148_v54  ;;  %v1925_v3 = vadd.f32 %v1861_v33, %v1769_v38  ;;  %4464 = vmatmul.msk.f32.gmra.mxu1 %vm225_vm2, %v6026_v62  ;;  %v6055_v54 = vld [vmem:[#allocation3 + $0x21] sm:$0xff] }
 0x2e9   : > { %v2081_v16 = vadd.f32 %v2017_v22, %v1925_v3  ;;  %v1708_v24 = vpop.f32.mrf.mxu2  ;;  %v2023_v21 = vpop.f32.mrf.mxu0 }
 0x2ea   : > { %v1770_v45 = vadd.f32 %v1708_v24, %v1488_v9 }
 0x2eb   : > { %v2117_v56 = vadd.f32 %v5784_v61, %v2081_v16  ;;  %4518 = vmatmul.msk.f32.gmra.mxu3 %vm225_vm2, %v5855_v42 }
 0x2ec   : > { %4553 = vmatmul.msk.f32.gmra.mxu0 %vm225_vm2, %v6037_v36 }
 0x2ed   : > { %v2149_v49 = vmax.f32 %v2117_v56, 0.0 }
 0x2ee   : > { %v1864_v13 = vpop.f32.mrf.mxu3  ;;  %v6043_v7 = vld [vmem:[#allocation3 + $0xc8] sm:$0xff]  ;;  %4485 = vmatmul.msk.f32.gmra.mxu2 %vm225_vm2, %v5807_v14 }
 0x2ef   : > { %2182 = vst.msk [vmem:[#allocation3 + $0xd9] sm:$0xff] %vm225_vm2, %v2149_v49  ;;  %v1926_v11 = vadd.f32 %v1864_v13, %v1770_v45  ;;  %4465 = vmatmul.msk.f32.gmra.mxu1 %vm225_vm2, %v6043_v7  ;;  %v6073_v49 = vld [vmem:[#allocation3 + $0x31] sm:$0xff] }
 0x2f1   : > { %v2082_v22 = vadd.f32 %v2020_v52, %v1926_v11  ;;  %v1711_v46 = vpop.f32.mrf.mxu2  ;;  %v2026_v63 = vpop.f32.mrf.mxu0 }
 0x2f2   : > { %v1771_v28 = vadd.f32 %v1711_v46, %v1489_v18 }
 0x2f3   : > { %v2118_v38 = vadd.f32 %v5784_v61, %v2082_v22  ;;  %4519 = vmatmul.msk.f32.gmra.mxu3 %vm225_vm2, %v5872_v26 }
 0x2f4   : > { %v6057_v14 = vpop.f32.mrf.mxu1  ;;  %4554 = vmatmul.msk.f32.gmra.mxu0 %vm225_vm2, %v6055_v54 }
 0x2f5   : > { %v2150_v33 = vmax.f32 %v2118_v38, 0.0 }
 0x2f6   : > { %v1867_v3 = vpop.f32.mrf.mxu3  ;;  %v6061_v9 = vld [vmem:[#allocation3 + $0xd8] sm:$0xff]  ;;  %4486 = vmatmul.msk.f32.gmra.mxu2 %vm225_vm2, %v5823_v12 }
 0x2f7   : > { %2183 = vst.msk [vmem:[#allocation3 + $0xe1] sm:$0xff] %vm225_vm2, %v2150_v33  ;;  %v1927_v32 = vadd.f32 %v1867_v3, %v1771_v28  ;;  %4466 = vmatmul.msk.f32.gmra.mxu1 %vm225_vm2, %v6061_v9  ;;  %v6091_v33 = vld [vmem:[#allocation3 + $0x39] sm:$0xff] }
 0x2f9   : > { %v2083_v52 = vadd.f32 %v2023_v21, %v1927_v32  ;;  %v1714_v16 = vpop.f32.mrf.mxu2  ;;  %v2029_v24 = vpop.f32.mrf.mxu0 }
 0x2fa   : > { %v1772_v45 = vadd.f32 %v1714_v16, %v1490_v8 }
 0x2fb   : > { %v2119_v56 = vadd.f32 %v5784_v61, %v2083_v52  ;;  %4520 = vmatmul.msk.f32.gmra.mxu3 %vm225_vm2, %v5889_v15 }
 0x2fc   : > { %v6075_v12 = vpop.f32.mrf.mxu1  ;;  %4555 = vmatmul.msk.f32.gmra.mxu0 %vm225_vm2, %v6073_v49 }
 0x2fd   : > { %v2151_v13 = vmax.f32 %v2119_v56, 0.0 }
 0x2fe   : > { %v1870_v11 = vpop.f32.mrf.mxu3  ;;  %v6079_v18 = vld [vmem:[#allocation3 + $0xe0] sm:$0xff]  ;;  %4487 = vmatmul.msk.f32.gmra.mxu2 %vm225_vm2, %v5838_v27 }
 0x2ff   : > { %2184 = vst.msk [vmem:[#allocation3 + $0xf1] sm:$0xff] %vm225_vm2, %v2151_v13  ;;  %v1928_v50 = vadd.f32 %v1870_v11, %v1772_v45  ;;  %4467 = vmatmul.msk.f32.gmra.mxu1 %vm225_vm2, %v6079_v18  ;;  %v6109_v13 = vld [vmem:[#allocation3 + $0x49] sm:$0xff] }
 0x301   : > { %v2084_v21 = vadd.f32 %v2026_v63, %v1928_v50  ;;  %v1717_v22 = vpop.f32.mrf.mxu2  ;;  %v2032_v46 = vpop.f32.mrf.mxu0 }
 0x302   : > { %v1773_v28 = vadd.f32 %v1717_v22, %v1491_v35 }
 0x303   : > { %v2120_v38 = vadd.f32 %v5784_v61, %v2084_v21  ;;  %4521 = vmatmul.msk.f32.gmra.mxu3 %vm225_vm2, %v5907_v29 }
 0x304   : > { %v6093_v27 = vpop.f32.mrf.mxu1  ;;  %4556 = vmatmul.msk.f32.gmra.mxu0 %vm225_vm2, %v6091_v33 }
 0x305   : > { %v2152_v3 = vmax.f32 %v2120_v38, 0.0 }
 0x306   : > { %v1873_v32 = vpop.f32.mrf.mxu3  ;;  %v6097_v8 = vld [vmem:[#allocation3 + $0xf0] sm:$0xff]  ;;  %4488 = vmatmul.msk.f32.gmra.mxu2 %vm225_vm2, %v5855_v42 }
 0x307   : > { %2185 = vst.msk [vmem:[#allocation3 + $0xf9] sm:$0xff] %vm225_vm2, %v2152_v3  ;;  %v1929_v43 = vadd.f32 %v1873_v32, %v1773_v28  ;;  %4468 = vmatmul.msk.f32.gmra.mxu1 %vm225_vm2, %v6097_v8  ;;  %v6127_v3 = vld [vmem:[#allocation3 + $0x51] sm:$0xff] }
 0x309   : > { %v2085_v63 = vadd.f32 %v2029_v24, %v1929_v43  ;;  %v1720_v52 = vpop.f32.mrf.mxu2  ;;  %v2035_v16 = vpop.f32.mrf.mxu0 }
 0x30a   : > { %v1774_v45 = vadd.f32 %v1720_v52, %v1492_v39 }
 0x30b   : > { %v2121_v56 = vadd.f32 %v5784_v61, %v2085_v63  ;;  %4522 = vmatmul.msk.f32.gmra.mxu3 %vm225_vm2, %v5923_v20 }
 0x30c   : > { %v6111_v42 = vpop.f32.mrf.mxu1  ;;  %4557 = vmatmul.msk.f32.gmra.mxu0 %vm225_vm2, %v6109_v13 }
 0x30d   : > { %v2153_v11 = vmax.f32 %v2121_v56, 0.0 }
 0x30e   : > { %v1876_v50 = vpop.f32.mrf.mxu3  ;;  %v6115_v35 = vld [vmem:[#allocation3 + $0xf8] sm:$0xff]  ;;  %4489 = vmatmul.msk.f32.gmra.mxu2 %vm225_vm2, %v5872_v26 }
 0x30f   : > { %2186 = vst.msk [vmem:[#allocation3 + $0x109] sm:$0xff] %vm225_vm2, %v2153_v11  ;;  %v1930_v58 = vadd.f32 %v1876_v50, %v1774_v45  ;;  %4469 = vmatmul.msk.f32.gmra.mxu1 %vm225_vm2, %v6115_v35  ;;  %v6145_v11 = vld [vmem:[#allocation3 + $0x61] sm:$0xff] }
 0x311   : > { %v2086_v24 = vadd.f32 %v2032_v46, %v1930_v58  ;;  %v1723_v21 = vpop.f32.mrf.mxu2  ;;  %v2038_v22 = vpop.f32.mrf.mxu0 }
 0x312   : > { %v1775_v28 = vadd.f32 %v1723_v21, %v1493_v23 }
 0x313   : > { %v2122_v38 = vadd.f32 %v5784_v61, %v2086_v24  ;;  %4523 = vmatmul.msk.f32.gmra.mxu3 %vm225_vm2, %v5941_v47 }
 0x314   : > { %v6129_v26 = vpop.f32.mrf.mxu1  ;;  %4558 = vmatmul.msk.f32.gmra.mxu0 %vm225_vm2, %v6127_v3 }
 0x315   : > { %v2154_v32 = vmax.f32 %v2122_v38, 0.0 }
 0x316   : > { %v1879_v43 = vpop.f32.mrf.mxu3  ;;  %v6133_v39 = vld [vmem:[#allocation3 + $0x108] sm:$0xff]  ;;  %4490 = vmatmul.msk.f32.gmra.mxu2 %vm225_vm2, %v5889_v15 }
 0x317   : > { %2187 = vst.msk [vmem:[#allocation3 + $0x111] sm:$0xff] %vm225_vm2, %v2154_v32  ;;  %v1931_v6 = vadd.f32 %v1879_v43, %v1775_v28  ;;  %4470 = vmatmul.msk.f32.gmra.mxu1 %vm225_vm2, %v6133_v39  ;;  %v6163_v32 = vld [vmem:[#allocation3 + $0x69] sm:$0xff] }
 0x319   : > { %v2087_v46 = vadd.f32 %v2035_v16, %v1931_v6  ;;  %v1726_v63 = vpop.f32.mrf.mxu2  ;;  %v2041_v52 = vpop.f32.mrf.mxu0 }
 0x31a   : > { %v1776_v45 = vadd.f32 %v1726_v63, %v1494_v1 }
 0x31b   : > { %v2123_v56 = vadd.f32 %v5784_v61, %v2087_v46  ;;  %4524 = vmatmul.msk.f32.gmra.mxu3 %vm225_vm2, %v5956_v31 }
 0x31c   : > { %v6147_v15 = vpop.f32.mrf.mxu1  ;;  %4559 = vmatmul.msk.f32.gmra.mxu0 %vm225_vm2, %v6145_v11 }
 0x31d   : > { %v2155_v50 = vmax.f32 %v2123_v56, 0.0 }
 0x31e   : > { %v1882_v58 = vpop.f32.mrf.mxu3  ;;  %v6151_v23 = vld [vmem:[#allocation3 + $0x110] sm:$0xff]  ;;  %4491 = vmatmul.msk.f32.gmra.mxu2 %vm225_vm2, %v5907_v29 }
 0x31f   : > { %2188 = vst.msk [vmem:[#allocation3 + $0x121] sm:$0xff] %vm225_vm2, %v2155_v50  ;;  %v1932_v5 = vadd.f32 %v1882_v58, %v1776_v45  ;;  %4471 = vmatmul.msk.f32.gmra.mxu1 %vm225_vm2, %v6151_v23  ;;  %v6181_v50 = vld [vmem:[#allocation3 + $0x79] sm:$0xff] }
 0x321   : > { %v2088_v16 = vadd.f32 %v2038_v22, %v1932_v5  ;;  %v1729_v24 = vpop.f32.mrf.mxu2  ;;  %v2044_v21 = vpop.f32.mrf.mxu0 }
 0x322   : > { %v1777_v28 = vadd.f32 %v1729_v24, %v1495_v44 }
 0x323   : > { %v2124_v38 = vadd.f32 %v5784_v61, %v2088_v16  ;;  %4525 = vmatmul.msk.f32.gmra.mxu3 %vm225_vm2, %v5971_v30 }
 0x324   : > { %v6165_v29 = vpop.f32.mrf.mxu1  ;;  %4560 = vmatmul.msk.f32.gmra.mxu0 %vm225_vm2, %v6163_v32 }
 0x325   : > { %v2156_v43 = vmax.f32 %v2124_v38, 0.0 }
 0x326   : > { %v1885_v6 = vpop.f32.mrf.mxu3  ;;  %v6169_v1 = vld [vmem:[#allocation3 + $0x120] sm:$0xff]  ;;  %4492 = vmatmul.msk.f32.gmra.mxu2 %vm225_vm2, %v5923_v20 }
 0x327   : > { %2189 = vst.msk [vmem:[#allocation3 + $0x129] sm:$0xff] %vm225_vm2, %v2156_v43  ;;  %v1933_v53 = vadd.f32 %v1885_v6, %v1777_v28  ;;  %4472 = vmatmul.msk.f32.gmra.mxu1 %vm225_vm2, %v6169_v1  ;;  %v6199_v43 = vld [vmem:[#allocation3 + $0x81] sm:$0xff] }
 0x329   : > { %v2089_v22 = vadd.f32 %v2041_v52, %v1933_v53  ;;  %v1732_v46 = vpop.f32.mrf.mxu2  ;;  %v2047_v63 = vpop.f32.mrf.mxu0 }
 0x32a   : > { %v1778_v45 = vadd.f32 %v1732_v46, %v1496_v40 }
 0x32b   : > { %v2125_v56 = vadd.f32 %v5784_v61, %v2089_v22  ;;  %4526 = vmatmul.msk.f32.gmra.mxu3 %vm225_vm2, %v5986_v34 }
 0x32c   : > { %v6183_v20 = vpop.f32.mrf.mxu1  ;;  %4561 = vmatmul.msk.f32.gmra.mxu0 %vm225_vm2, %v6181_v50 }
 0x32d   : > { %v2157_v58 = vmax.f32 %v2125_v56, 0.0 }
 0x32e   : > { %v1888_v5 = vpop.f32.mrf.mxu3  ;;  %v6187_v44 = vld [vmem:[#allocation3 + $0x128] sm:$0xff]  ;;  %4493 = vmatmul.msk.f32.gmra.mxu2 %vm225_vm2, %v5941_v47 }
 0x32f   : > { %2190 = vst.msk [vmem:[#allocation3 + $0x139] sm:$0xff] %vm225_vm2, %v2157_v58  ;;  %v1934_v57 = vadd.f32 %v1888_v5, %v1778_v45  ;;  %4473 = vmatmul.msk.f32.gmra.mxu1 %vm225_vm2, %v6187_v44  ;;  %v6217_v58 = vld [vmem:[#allocation3 + $0x91] sm:$0xff] }
 0x331   : > { %v2090_v52 = vadd.f32 %v2044_v21, %v1934_v57  ;;  %v1735_v16 = vpop.f32.mrf.mxu2  ;;  %v2050_v24 = vpop.f32.mrf.mxu0 }
 0x332   : > { %v1779_v28 = vadd.f32 %v1735_v16, %v1497_v10 }
 0x333   : > { %v2126_v38 = vadd.f32 %v5784_v61, %v2090_v52  ;;  %4527 = vmatmul.msk.f32.gmra.mxu3 %vm225_vm2, %v5998_v48 }
 0x334   : > { %v6201_v47 = vpop.f32.mrf.mxu1  ;;  %4562 = vmatmul.msk.f32.gmra.mxu0 %vm225_vm2, %v6199_v43 }
 0x335   : > { %v2158_v6 = vmax.f32 %v2126_v38, 0.0 }
 0x336   : > { %v1891_v53 = vpop.f32.mrf.mxu3  ;;  %v6205_v40 = vld [vmem:[#allocation3 + $0x138] sm:$0xff]  ;;  %4494 = vmatmul.msk.f32.gmra.mxu2 %vm225_vm2, %v5956_v31 }
 0x337   : > { %2191 = vst.msk [vmem:[#allocation3 + $0x141] sm:$0xff] %vm225_vm2, %v2158_v6  ;;  %v1935_v41 = vadd.f32 %v1891_v53, %v1779_v28  ;;  %4474 = vmatmul.msk.f32.gmra.mxu1 %vm225_vm2, %v6205_v40  ;;  %v6235_v6 = vld [vmem:[#allocation3 + $0x99] sm:$0xff] }
 0x339   : > { %v2091_v21 = vadd.f32 %v2047_v63, %v1935_v41  ;;  %v1738_v22 = vpop.f32.mrf.mxu2  ;;  %v2053_v46 = vpop.f32.mrf.mxu0 }
 0x33a   : > { %v1780_v45 = vadd.f32 %v1738_v22, %v1498_v4 }
 0x33b   : > { %v2127_v56 = vadd.f32 %v5784_v61, %v2091_v21  ;;  %4528 = vmatmul.msk.f32.gmra.mxu3 %vm225_vm2, %v6012_v51 }
 0x33c   : > { %v6219_v31 = vpop.f32.mrf.mxu1  ;;  %4563 = vmatmul.msk.f32.gmra.mxu0 %vm225_vm2, %v6217_v58 }
 0x33d   : > { %v2159_v5 = vmax.f32 %v2127_v56, 0.0 }
 0x33e   : > { %v1894_v57 = vpop.f32.mrf.mxu3  ;;  %v6223_v10 = vld [vmem:[#allocation3 + $0x140] sm:$0xff]  ;;  %4495 = vmatmul.msk.f32.gmra.mxu2 %vm225_vm2, %v5971_v30 }
 0x33f   : > { %2192 = vst.msk [vmem:[#allocation3 + $0x151] sm:$0xff] %vm225_vm2, %v2159_v5  ;;  %v1936_v55 = vadd.f32 %v1894_v57, %v1780_v45  ;;  %4475 = vmatmul.msk.f32.gmra.mxu1 %vm225_vm2, %v6223_v10  ;;  %v6253_v5 = vld [vmem:[#allocation3 + $0xa9] sm:$0xff] }
 0x341   : > { %v2092_v63 = vadd.f32 %v2050_v24, %v1936_v55  ;;  %v1741_v52 = vpop.f32.mrf.mxu2  ;;  %v2056_v16 = vpop.f32.mrf.mxu0 }
 0x342   : > { %v1781_v28 = vadd.f32 %v1741_v52, %v1499_v25  ;;  %v4651_v25 = vld [vmem:[%s7319_s3 + $0x8] sm:$0xf] }
 0x343   : > { %v2128_v38 = vadd.f32 %v5784_v61, %v2092_v63  ;;  %4529 = vmatmul.msk.f32.gmra.mxu3 %vm225_vm2, %v6026_v62  ;;  %v1501_v63 = vadd.f32 %v6020_v60, %v5753_v19  ;;  %v4719_v60 = vld [vmem:[%s7319_s3 + $0x20] sm:$0xf] }
 0x344   : > { %v6237_v30 = vpop.f32.mrf.mxu1  ;;  %4564 = vmatmul.msk.f32.gmra.mxu0 %vm225_vm2, %v6235_v6  ;;  %4652 = vmatpush.msk.msra.mxu3 %vm514_vm0, %v4651_v25  ;;  %v6307_v25 = vld [vmem:[#allocation3 + $0xc1] sm:$0xff] }
 0x345   : > { %v2160_v53 = vmax.f32 %v2128_v38, 0.0  ;;  %4720 = vmatpush.msk.msra.mxu1 %vm514_vm0, %v4719_v60 }
 0x346   : > { %v1897_v41 = vpop.f32.mrf.mxu3  ;;  %v6241_v4 = vld [vmem:[#allocation3 + $0x150] sm:$0xff]  ;;  %4496 = vmatmul.msk.f32.gmra.mxu2 %vm225_vm2, %v5986_v34  ;;  %v4617_v34 = vld [vmem:[%s7319_s3 + $0x1c] sm:$0xf] }
 0x347   : > { %2193 = vst.msk [vmem:[#allocation3 + $0x159] sm:$0xff] %vm225_vm2, %v2160_v53  ;;  %v1937_v37 = vadd.f32 %v1897_v41, %v1781_v28  ;;  %4476 = vmatmul.msk.f32.gmra.mxu1 %vm225_vm2, %v6241_v4  ;;  %4618 = vmatpush.msk.msra.mxu2 %vm514_vm0, %v4617_v34  ;;  %v6279_v41 = vld [vmem:[#allocation3 + $0xb1] sm:$0xff] }
 0x349   : > { %v2093_v24 = vadd.f32 %v2053_v46, %v1937_v37  ;;  %v1744_v21 = vpop.f32.mrf.mxu2  ;;  %v2059_v22 = vpop.f32.mrf.mxu0 }
 0x34a   : > { %v1782_v45 = vadd.f32 %v1744_v21, %v1500_v59 }
 0x34b   : > { %v2129_v56 = vadd.f32 %v5784_v61, %v2093_v24  ;;  %4530 = vmatmul.msk.f32.gmra.mxu3 %vm225_vm2, %v6043_v7 }
 0x34c   : > { %v6258_v57 = vpop.f32.mrf.mxu1  ;;  %4565 = vmatmul.msk.f32.gmra.mxu0 %vm225_vm2, %v6253_v5 }
 0x34d   : > { %v2161_v17 = vmax.f32 %v2129_v56, 0.0 }
 0x34e   : > { %v1900_v2 = vpop.f32.mrf.mxu3  ;;  %v6263_v46 = vld [vmem:[#allocation3 + $0x158] sm:$0xff]  ;;  %4497 = vmatmul.msk.f32.gmra.mxu2 %vm225_vm2, %v5998_v48 }
 0x34f   : > { %2194 = vst.msk [vmem:[#allocation3 + $0x169] sm:$0xff] %vm225_vm2, %v2161_v17  ;;  %v1938_v55 = vadd.f32 %v1900_v2, %v1782_v45  ;;  %4477 = vmatmul.msk.f32.gmra.mxu1 %vm225_vm2, %v6263_v46  ;;  %v4770_v17 = vld [vmem:[%s7318_s2] ss:$0 sm:$0xff] }
 0x351   : > { %v2094_v52 = vadd.f32 %v2056_v16, %v1938_v55  ;;  %v1747_v38 = vpop.f32.mrf.mxu2  ;;  %v2062_v28 = vpop.f32.mrf.mxu0  ;;  %v7351_v16 = vld [vmem:[#allocation4_spill] sm:$0xff] }
 0x352   : > { %v1783_v53 = vadd.f32 %v1747_v38, %v1501_v63 }
 0x353   : > { %v2130_v48 = vadd.f32 %v5784_v61, %v2094_v52  ;;  %4531 = vmatmul.msk.f32.gmra.mxu3 %vm225_vm2, %v6061_v9  ;;  %v4685_v61 = vld [vmem:[%s7319_s3 + $0x14] sm:$0xf] }
 0x354   : > { %v6281_v37 = vpop.f32.mrf.mxu1  ;;  %4566 = vmatmul.msk.f32.gmra.mxu0 %vm225_vm2, %v6279_v41 }
 0x355   : > { %v2162_v59 = vmax.f32 %v2130_v48, 0.0  ;;  %4686 = vmatpush.msk.msra.mxu0 %vm514_vm0, %v4685_v61  ;;  %v6323_v61 = vld [vmem:[#allocation3 + $0xc9] sm:$0xff] }
 0x356   : > { %v1903_v24 = vpop.f32.mrf.mxu3  ;;  %v6285_v21 = vld [vmem:[#allocation3 + $0x168] sm:$0xff]  ;;  %4498 = vmatmul.msk.f32.gmra.mxu2 %vm225_vm2, %v6012_v51  ;;  %v1502_v51 = vadd.f32 %v6039_v0, %v7351_v16 }
 0x357   : > { %2195 = vst.msk [vmem:[#allocation3 + $0x171] sm:$0xff] %vm225_vm2, %v2162_v59  ;;  %v1939_v19 = vadd.f32 %v1903_v24, %v1783_v53  ;;  %4478 = vmatmul.msk.f32.gmra.mxu1 %vm225_vm2, %v6285_v21 }
 0x359   : > { %v2095_v56 = vadd.f32 %v2059_v22, %v1939_v19  ;;  %v1750_v45 = vpop.f32.mrf.mxu2  ;;  %v2881_v34 = vpop.f32.mrf.mxu0 }
 0x35a   : > { %v1784_v55 = vadd.f32 %v1750_v45, %v1502_v51 }
 0x35b   : > { %v2131_v2 = vadd.f32 %v4770_v17, %v2095_v56  ;;  %4532 = vmatmul.msk.f32.gmra.mxu3 %vm225_vm2, %v6079_v18 }
 0x35c   : > { %v6309_v63 = vpop.f32.mrf.mxu1  ;;  %4567 = vmatmul.msk.f32.gmra.mxu0 %vm225_vm2, %v6307_v25 }
 0x35d   : > { %v2163_v0 = vmax.f32 %v2131_v2, 0.0  ;;  %v6341_v2 = vld [vmem:[#allocation3 + $0xd9] sm:$0xff] }
 0x35e   : > { %v1906_v22 = vpop.f32.mrf.mxu3  ;;  %v6313_v52 = vld [vmem:[#allocation3 + $0x170] sm:$0xff]  ;;  %4499 = vmatmul.msk.f32.gmra.mxu2 %vm225_vm2, %v6026_v62 }
 0x35f   : > { %2196 = vst.msk [vmem:[#allocation3 + $0x181] sm:$0xff] %vm225_vm2, %v2163_v0  ;;  %v1940_v38 = vadd.f32 %v1906_v22, %v1784_v55  ;;  %4479 = vmatmul.msk.f32.gmra.mxu1 %vm225_vm2, %v6313_v52 }
 0x361   : > { %v2096_v48 = vadd.f32 %v2062_v28, %v1940_v38  ;;  %v2475_v53 = vpop.f32.mrf.mxu2  ;;  %v2884_v59 = vpop.f32.mrf.mxu0 }
 0x362   : > { %v2476_v19 = vadd.f32 %v2475_v53, %v6057_v14  ;;  %v6358_v53 = vld [vmem:[#allocation3 + $0xe1] sm:$0xff] }
 0x363   : > { %v2132_v24 = vadd.f32 %v4770_v17, %v2096_v48  ;;  %4533 = vmatmul.msk.f32.gmra.mxu3 %vm225_vm2, %v6097_v8 }
 0x364   : > { %v6325_v60 = vpop.f32.mrf.mxu1  ;;  %4568 = vmatmul.msk.f32.gmra.mxu0 %vm225_vm2, %v6323_v61 }
 0x365   : > { %v2164_v62 = vmax.f32 %v2132_v24, 0.0 }
 0x366   : > { %v2599_v16 = vpop.f32.mrf.mxu3  ;;  %v6329_v51 = vld [vmem:[#allocation3 + $0x180] sm:$0xff]  ;;  %4500 = vmatmul.msk.f32.gmra.mxu2 %vm225_vm2, %v6043_v7 }
 0x367   : > { %2197 = vst.msk [vmem:[#allocation3 + $0x189] sm:$0xff] %vm225_vm2, %v2164_v62  ;;  %v2695_v28 = vadd.f32 %v2599_v16, %v2476_v19  ;;  %4480 = vmatmul.msk.f32.gmra.mxu1 %vm225_vm2, %v6329_v51 }
 0x369   : > { %v2478_v14 = vpop.f32.mrf.mxu2  ;;  %v2887_v56 = vpop.f32.mrf.mxu0  ;;  %v6336_v45 = vadd.f32 %v2881_v34, %v2695_v28  ;;  %v6373_v28 = vld [vmem:[#allocation3 + $0xf1] sm:$0xff] }
 0x36a   : > { %v2479_v17 = vadd.f32 %v2478_v14, %v6075_v12 }
 0x36b   : > { %4534 = vmatmul.msk.f32.gmra.mxu3 %vm225_vm2, %v6115_v35 }
 0x36c   : > { %v6343_v55 = vpop.f32.mrf.mxu1  ;;  %4569 = vmatmul.msk.f32.gmra.mxu0 %vm225_vm2, %v6341_v2 }
 0x36e   : > { %v2602_v7 = vpop.f32.mrf.mxu3  ;;  %v6347_v0 = vld [vmem:[#allocation3 + $0x188] sm:$0xff]  ;;  %4501 = vmatmul.msk.f32.gmra.mxu2 %vm225_vm2, %v6061_v9 }
 0x36f   : > { %v2696_v34 = vadd.f32 %v2602_v7, %v2479_v17  ;;  %4481 = vmatmul.msk.f32.gmra.mxu1 %vm225_vm2, %v6347_v0 }
 0x371   : > { %v2481_v22 = vpop.f32.mrf.mxu2  ;;  %v2890_v38 = vpop.f32.mrf.mxu0  ;;  %v6353_v12 = vadd.f32 %v2884_v59, %v2696_v34  ;;  %v6388_v34 = vld [vmem:[#allocation3 + $0xf9] sm:$0xff] }
 0x372   : > { %v2482_v48 = vadd.f32 %v2481_v22, %v6093_v27 }
 0x373   : > { %4535 = vmatmul.msk.f32.gmra.mxu3 %vm225_vm2, %v6133_v39 }
 0x374   : > { %v6360_v24 = vpop.f32.mrf.mxu1  ;;  %4570 = vmatmul.msk.f32.gmra.mxu0 %vm225_vm2, %v6358_v53 }
 0x376   : > { %v2605_v9 = vpop.f32.mrf.mxu3  ;;  %4502 = vmatmul.msk.f32.gmra.mxu2 %vm225_vm2, %v6079_v18 }
 0x377   : > { %v2697_v19 = vadd.f32 %v2605_v9, %v2482_v48  ;;  %4585 = vmatmul.msk.f32.vlgmr.msrb.gmra.mxu1 %vm225_vm2, %v6037_v36 }
 0x379   : > { %v2484_v59 = vpop.f32.mrf.mxu2  ;;  %v2893_v62 = vpop.f32.mrf.mxu0  ;;  %v6368_v16 = vadd.f32 %v2887_v56, %v2697_v19  ;;  %v6403_v19 = vld [vmem:[#allocation3 + $0x109] sm:$0xff] }
 0x37a   : > { %v2485_v27 = vadd.f32 %v2484_v59, %v6111_v42 }
 0x37b   : > { %4536 = vmatmul.msk.f32.gmra.mxu3 %vm225_vm2, %v6151_v23 }
 0x37c   : > { %v6375_v14 = vpop.f32.mrf.mxu1  ;;  %4571 = vmatmul.msk.f32.gmra.mxu0 %vm225_vm2, %v6373_v28 }
 0x37e   : > { %v2608_v18 = vpop.f32.mrf.mxu3  ;;  %4503 = vmatmul.msk.f32.gmra.mxu2 %vm225_vm2, %v6097_v8 }
 0x37f   : > { %v2698_v36 = vadd.f32 %v2608_v18, %v2485_v27  ;;  %4586 = vmatmul.msk.f32.gmra.mxu1 %vm225_vm2, %v6055_v54 }
 0x381   : > { %v2487_v56 = vpop.f32.mrf.mxu2  ;;  %v2896_v17 = vpop.f32.mrf.mxu0  ;;  %v6383_v7 = vadd.f32 %v2890_v38, %v2698_v36 }
 0x382   : > { %v2488_v42 = vadd.f32 %v2487_v56, %v6129_v26  ;;  %v6418_v56 = vld [vmem:[#allocation3 + $0x111] sm:$0xff] }
 0x383   : > { %4537 = vmatmul.msk.f32.gmra.mxu3 %vm225_vm2, %v6169_v1 }
 0x384   : > { %v6390_v22 = vpop.f32.mrf.mxu1  ;;  %4572 = vmatmul.msk.f32.gmra.mxu0 %vm225_vm2, %v6388_v34 }
 0x386   : > { %v2611_v8 = vpop.f32.mrf.mxu3  ;;  %4504 = vmatmul.msk.f32.gmra.mxu2 %vm225_vm2, %v6115_v35 }
 0x387   : > { %v2699_v54 = vadd.f32 %v2611_v8, %v2488_v42  ;;  %4587 = vmatmul.msk.f32.gmra.mxu1 %vm225_vm2, %v6073_v49 }
 0x389   : > { %v2490_v38 = vpop.f32.mrf.mxu2  ;;  %v2899_v48 = vpop.f32.mrf.mxu0  ;;  %v6398_v9 = vadd.f32 %v2893_v62, %v2699_v54 }
 0x38a   : > { %v2491_v26 = vadd.f32 %v2490_v38, %v6147_v15 }
 0x38b   : > { %4538 = vmatmul.msk.f32.gmra.mxu3 %vm225_vm2, %v6187_v44 }
 0x38c   : > { %v6405_v59 = vpop.f32.mrf.mxu1  ;;  %4573 = vmatmul.msk.f32.gmra.mxu0 %vm225_vm2, %v6403_v19 }
 0x38e   : > { %v2614_v35 = vpop.f32.mrf.mxu3  ;;  %4505 = vmatmul.msk.f32.gmra.mxu2 %vm225_vm2, %v6133_v39 }
 0x38f   : > { %v2700_v27 = vadd.f32 %v2614_v35, %v2491_v26  ;;  %4588 = vmatmul.msk.f32.gmra.mxu1 %vm225_vm2, %v6091_v33  ;;  %v6433_v26 = vld [vmem:[#allocation3 + $0x121] sm:$0xff] }
 0x391   : > { %v2493_v62 = vpop.f32.mrf.mxu2  ;;  %v2902_v18 = vpop.f32.mrf.mxu0  ;;  %v6413_v36 = vadd.f32 %v2896_v17, %v2700_v27 }
 0x392   : > { %v2494_v15 = vadd.f32 %v2493_v62, %v6165_v29 }
 0x393   : > { %4539 = vmatmul.msk.f32.gmra.mxu3 %vm225_vm2, %v6205_v40 }
 0x394   : > { %v6420_v42 = vpop.f32.mrf.mxu1  ;;  %4574 = vmatmul.msk.f32.gmra.mxu0 %vm225_vm2, %v6418_v56 }
 0x396   : > { %v2617_v39 = vpop.f32.mrf.mxu3  ;;  %4506 = vmatmul.msk.f32.gmra.mxu2 %vm225_vm2, %v6151_v23 }
 0x397   : > { %v2701_v8 = vadd.f32 %v2617_v39, %v2494_v15  ;;  %4589 = vmatmul.msk.f32.gmra.mxu1 %vm225_vm2, %v6109_v13  ;;  %v6448_v39 = vld [vmem:[#allocation3 + $0x129] sm:$0xff] }
 0x399   : > { %v2496_v17 = vpop.f32.mrf.mxu2  ;;  %v2905_v54 = vpop.f32.mrf.mxu0  ;;  %v6428_v38 = vadd.f32 %v2899_v48, %v2701_v8 }
 0x39a   : > { %v2497_v29 = vadd.f32 %v2496_v17, %v6183_v20 }
 0x39b   : > { %4540 = vmatmul.msk.f32.gmra.mxu3 %vm225_vm2, %v6223_v10 }
 0x39c   : > { %v6435_v35 = vpop.f32.mrf.mxu1  ;;  %4575 = vmatmul.msk.f32.gmra.mxu0 %vm225_vm2, %v6433_v26 }
 0x39e   : > { %v2620_v23 = vpop.f32.mrf.mxu3  ;;  %4507 = vmatmul.msk.f32.gmra.mxu2 %vm225_vm2, %v6169_v1 }
 0x39f   : > { %v2702_v27 = vadd.f32 %v2620_v23, %v2497_v29  ;;  %4590 = vmatmul.msk.f32.gmra.mxu1 %vm225_vm2, %v6127_v3 }
 0x3a1   : > { %v2499_v48 = vpop.f32.mrf.mxu2  ;;  %v2908_v62 = vpop.f32.mrf.mxu0  ;;  %v6443_v15 = vadd.f32 %v2902_v18, %v2702_v27  ;;  %v6463_v27 = vld [vmem:[#allocation3 + $0x139] sm:$0xff] }
 0x3a2   : > { %v2500_v20 = vadd.f32 %v2499_v48, %v6201_v47 }
 0x3a3   : > { %4541 = vmatmul.msk.f32.gmra.mxu3 %vm225_vm2, %v6241_v4 }
 0x3a4   : > { %v6450_v8 = vpop.f32.mrf.mxu1  ;;  %4576 = vmatmul.msk.f32.gmra.mxu0 %vm225_vm2, %v6448_v39 }
 0x3a6   : > { %v2623_v1 = vpop.f32.mrf.mxu3  ;;  %4508 = vmatmul.msk.f32.gmra.mxu2 %vm225_vm2, %v6187_v44 }
 0x3a7   : > { %v2703_v17 = vadd.f32 %v2623_v1, %v2500_v20  ;;  %4591 = vmatmul.msk.f32.gmra.mxu1 %vm225_vm2, %v6145_v11 }
 0x3a9   : > { %v2502_v18 = vpop.f32.mrf.mxu2  ;;  %v2911_v29 = vpop.f32.mrf.mxu0  ;;  %v6458_v23 = vadd.f32 %v2905_v54, %v2703_v17 }
 0x3aa   : > { %v2503_v47 = vadd.f32 %v2502_v18, %v6219_v31  ;;  %v6478_v18 = vld [vmem:[#allocation3 + $0x141] sm:$0xff] }
 0x3ab   : > { %7352 = vst [vmem:[#allocation5_spill] sm:$0xff] %v6458_v23  ;;  %4542 = vmatmul.msk.f32.gmra.mxu3 %vm225_vm2, %v6263_v46 }
 0x3ac   : > { %v6465_v48 = vpop.f32.mrf.mxu1  ;;  %4577 = vmatmul.msk.f32.gmra.mxu0 %vm225_vm2, %v6463_v27 }
 0x3ae   : > { %v2626_v44 = vpop.f32.mrf.mxu3  ;;  %4509 = vmatmul.msk.f32.gmra.mxu2 %vm225_vm2, %v6205_v40 }
 0x3af   : > { %v2704_v20 = vadd.f32 %v2626_v44, %v2503_v47  ;;  %4592 = vmatmul.msk.f32.gmra.mxu1 %vm225_vm2, %v6163_v32 }
 0x3b1   : > { %v2505_v54 = vpop.f32.mrf.mxu2  ;;  %v2914_v1 = vpop.f32.mrf.mxu0  ;;  %v6473_v17 = vadd.f32 %v2908_v62, %v2704_v20 }
 0x3b2   : > { %v2506_v31 = vadd.f32 %v2505_v54, %v6237_v30  ;;  %v6493_v54 = vld [vmem:[#allocation3 + $0x151] sm:$0xff] }
 0x3b3   : > { %7353 = vst [vmem:[#allocation6_spill] sm:$0xff] %v6473_v17  ;;  %4543 = vmatmul.msk.f32.gmra.mxu3 %vm225_vm2, %v6285_v21 }
 0x3b4   : > { %v6480_v23 = vpop.f32.mrf.mxu1  ;;  %4578 = vmatmul.msk.f32.gmra.mxu0 %vm225_vm2, %v6478_v18 }
 0x3b6   : > { %v2629_v40 = vpop.f32.mrf.mxu3  ;;  %4510 = vmatmul.msk.f32.gmra.mxu2 %vm225_vm2, %v6223_v10 }
 0x3b7   : > { %v2705_v47 = vadd.f32 %v2629_v40, %v2506_v31  ;;  %4593 = vmatmul.msk.f32.gmra.mxu1 %vm225_vm2, %v6181_v50 }
 0x3b9   : > { %v2508_v62 = vpop.f32.mrf.mxu2  ;;  %v2917_v44 = vpop.f32.mrf.mxu0  ;;  %v6488_v20 = vadd.f32 %v2911_v29, %v2705_v47 }
 0x3ba   : > { %v2509_v30 = vadd.f32 %v2508_v62, %v6258_v57  ;;  %v6508_v62 = vld [vmem:[#allocation3 + $0x159] sm:$0xff] }
 0x3bb   : > { %7354 = vst [vmem:[#allocation7_spill] sm:$0xff] %v6488_v20  ;;  %4544 = vmatmul.msk.f32.gmra.mxu3 %vm225_vm2, %v6313_v52 }
 0x3bc   : > { %v6495_v17 = vpop.f32.mrf.mxu1  ;;  %4579 = vmatmul.msk.f32.gmra.mxu0 %vm225_vm2, %v6493_v54 }
 0x3be   : > { %v2632_v10 = vpop.f32.mrf.mxu3  ;;  %4511 = vmatmul.msk.f32.gmra.mxu2 %vm225_vm2, %v6241_v4 }
 0x3bf   : > { %v2706_v31 = vadd.f32 %v2632_v10, %v2509_v30  ;;  %4594 = vmatmul.msk.f32.gmra.mxu1 %vm225_vm2, %v6199_v43 }
 0x3c1   : > { %v2511_v29 = vpop.f32.mrf.mxu2  ;;  %v2920_v40 = vpop.f32.mrf.mxu0  ;;  %v6503_v47 = vadd.f32 %v2914_v1, %v2706_v31  ;;  %v6523_v31 = vld [vmem:[#allocation3 + $0x169] sm:$0xff] }
 0x3c2   : > { %v2512_v57 = vadd.f32 %v2511_v29, %v6281_v37 }
 0x3c3   : > { %7355 = vst [vmem:[#allocation8_spill] sm:$0xff] %v6503_v47  ;;  %4545 = vmatmul.msk.f32.gmra.mxu3 %vm225_vm2, %v6329_v51 }
 0x3c4   : > { %v6510_v20 = vpop.f32.mrf.mxu1  ;;  %4580 = vmatmul.msk.f32.gmra.mxu0 %vm225_vm2, %v6508_v62 }
 0x3c6   : > { %v2635_v4 = vpop.f32.mrf.mxu3  ;;  %4512 = vmatmul.msk.f32.gmra.mxu2 %vm225_vm2, %v6263_v46 }
 0x3c7   : > { %v2707_v30 = vadd.f32 %v2635_v4, %v2512_v57  ;;  %4595 = vmatmul.msk.f32.gmra.mxu1 %vm225_vm2, %v6217_v58 }
 0x3c9   : > { %v2514_v1 = vpop.f32.mrf.mxu2  ;;  %v2923_v10 = vpop.f32.mrf.mxu0  ;;  %v6518_v51 = vadd.f32 %v2917_v44, %v2707_v30  ;;  %v2232_v44 = vld [vmem:[#allocation3 + $0x198] sm:$0xff] }
 0x3ca   : > { %v2515_v37 = vadd.f32 %v2514_v1, %v6309_v63  ;;  %v6537_v1 = vld [vmem:[#allocation3 + $0x171] sm:$0xff] }
 0x3cb   : > { %7356 = vst [vmem:[#allocation9_spill] sm:$0xff] %v6518_v51  ;;  %4546 = vmatmul.msk.f32.gmra.mxu3 %vm225_vm2, %v6347_v0 }
 0x3cc   : > { %v6525_v29 = vpop.f32.mrf.mxu1  ;;  %4581 = vmatmul.msk.f32.gmra.mxu0 %vm225_vm2, %v6523_v31 }
 0x3ce   : > { %v2638_v46 = vpop.f32.mrf.mxu3  ;;  %4513 = vmatmul.msk.f32.gmra.mxu2 %vm225_vm2, %v6285_v21 }
 0x3cf   : > { %v2708_v57 = vadd.f32 %v2638_v46, %v2515_v37  ;;  %4596 = vmatmul.msk.f32.gmra.mxu1 %vm225_vm2, %v6235_v6 }
 0x3d1   : > { %v2517_v4 = vpop.f32.mrf.mxu2  ;;  %v2926_v0 = vpop.f32.mrf.mxu0  ;;  %v6533_v30 = vadd.f32 %v2920_v40, %v2708_v57  ;;  %v2233_v40 = vld [vmem:[#allocation3 + $0x1a0] sm:$0xff] }
 0x3d2   : > { %v2518_v63 = vadd.f32 %v2517_v4, %v6325_v60  ;;  %v3323_v4 = vld [vmem:[#allocation3 + $0x1a] sm:$0xff] }
 0x3d3   : > { %7357 = vst [vmem:[#allocation10_spill] sm:$0xff] %v6533_v30  ;;  %4547 = vmatmul.msk.f32.gmra.mxu3 %vm225_vm2, %v2232_v44 }
 0x3d4   : > { %v6539_v51 = vpop.f32.mrf.mxu1  ;;  %4582 = vmatmul.msk.f32.gmra.mxu0 %vm225_vm2, %v6537_v1 }
 0x3d6   : > { %v2641_v21 = vpop.f32.mrf.mxu3  ;;  %4514 = vmatmul.msk.f32.gmra.mxu2 %vm225_vm2, %v6313_v52 }
 0x3d7   : > { %v2709_v37 = vadd.f32 %v2641_v21, %v2518_v63  ;;  %4597 = vmatmul.msk.f32.gmra.mxu1 %vm225_vm2, %v6253_v5  ;;  %v3321_v63 = vld [vmem:[#allocation3 + $0x2] sm:$0xff] }
 0x3d9   : > { %v2520_v46 = vpop.f32.mrf.mxu2  ;;  %v2929_v57 = vpop.f32.mrf.mxu0  ;;  %v6547_v44 = vadd.f32 %v2923_v10, %v2709_v37 }
 0x3da   : > { %v2521_v60 = vadd.f32 %v2520_v46, %v6343_v55 }
 0x3db   : > { %7358 = vst [vmem:[#allocation11_spill] sm:$0xff] %v6547_v44  ;;  %4548 = vmatmul.msk.f32.gmra.mxu3 %vm225_vm2, %v2233_v40  ;;  %v3324_v40 = vld [vmem:[#allocation3 + $0x22] sm:$0xff] }
 0x3dc   : > { %v6551_v30 = vpop.f32.mrf.mxu1  ;;  %4687 = vmatmul.msk.f32.vlgmr.msra.gmra.mxu0 %vm225_vm2, %v3323_v4 }
 0x3de   : > { %v2644_v47 = vpop.f32.mrf.mxu3  ;;  %4619 = vmatmul.msk.f32.vlgmr.msra.gmra.mxu2 %vm225_vm2, %v6073_v49 }
 0x3df   : > { %v2710_v52 = vadd.f32 %v2644_v47, %v2521_v60  ;;  %4598 = vmatmul.msk.f32.gmra.mxu1 %vm225_vm2, %v6279_v41  ;;  %v3322_v47 = vld [vmem:[#allocation3 + $0xa] sm:$0xff] }
 0x3e1   : > { %v2523_v10 = vpop.f32.mrf.mxu2  ;;  %v2932_v21 = vpop.f32.mrf.mxu0  ;;  %v6558_v37 = vadd.f32 %v2926_v0, %v2710_v52 }
 0x3e2   : > { %v2524_v55 = vadd.f32 %v2523_v10, %v6360_v24 }
 0x3e3   : > { %4653 = vmatmul.msk.f32.vlgmr.msra.gmra.mxu3 %vm225_vm2, %v3321_v63  ;;  %v6573_v63 = vld [vmem:[#allocation3 + $0x32] sm:$0xff] }
 0x3e4   : > { %v6562_v46 = vpop.f32.mrf.mxu1  ;;  %4688 = vmatmul.msk.f32.gmra.mxu0 %vm225_vm2, %v3324_v40 }
 0x3e6   : > { %v2647_v44 = vpop.f32.mrf.mxu3  ;;  %4620 = vmatmul.msk.f32.gmra.mxu2 %vm225_vm2, %v6091_v33 }
 0x3e7   : > { %v2711_v49 = vadd.f32 %v2647_v44, %v2524_v55  ;;  %4599 = vmatmul.msk.f32.gmra.mxu1 %vm225_vm2, %v6307_v25 }
 0x3e9   : > { %v2526_v0 = vpop.f32.mrf.mxu2  ;;  %v2935_v60 = vpop.f32.mrf.mxu0  ;;  %v6569_v52 = vadd.f32 %v2929_v57, %v2711_v49 }
 0x3ea   : > { %v2527_v24 = vadd.f32 %v2526_v0, %v6375_v14 }
 0x3eb   : > { %4654 = vmatmul.msk.f32.gmra.mxu3 %vm225_vm2, %v3322_v47  ;;  %v6587_v47 = vld [vmem:[#allocation3 + $0x3a] sm:$0xff] }
 0x3ec   : > { %v6575_v10 = vpop.f32.mrf.mxu1  ;;  %4689 = vmatmul.msk.f32.gmra.mxu0 %vm225_vm2, %v6573_v63 }
 0x3ee   : > { %v2650_v33 = vpop.f32.mrf.mxu3  ;;  %4621 = vmatmul.msk.f32.gmra.mxu2 %vm225_vm2, %v6109_v13 }
 0x3ef   : > { %v2712_v44 = vadd.f32 %v2650_v33, %v2527_v24  ;;  %4600 = vmatmul.msk.f32.gmra.mxu1 %vm225_vm2, %v6323_v61 }
 0x3f1   : > { %v2529_v57 = vpop.f32.mrf.mxu2  ;;  %v2938_v55 = vpop.f32.mrf.mxu0  ;;  %v6583_v49 = vadd.f32 %v2932_v21, %v2712_v44  ;;  %v6601_v44 = vld [vmem:[#allocation3 + $0x4a] sm:$0xff] }
 0x3f2   : > { %v2530_v14 = vadd.f32 %v2529_v57, %v6390_v22 }
 0x3f3   : > { %4655 = vmatmul.msk.f32.gmra.mxu3 %vm225_vm2, %v3323_v4 }
 0x3f4   : > { %v6589_v0 = vpop.f32.mrf.mxu1  ;;  %4690 = vmatmul.msk.f32.gmra.mxu0 %vm225_vm2, %v6587_v47 }
 0x3f6   : > { %v2653_v13 = vpop.f32.mrf.mxu3  ;;  %4622 = vmatmul.msk.f32.gmra.mxu2 %vm225_vm2, %v6127_v3 }
 0x3f7   : > { %v2713_v24 = vadd.f32 %v2653_v13, %v2530_v14  ;;  %4601 = vmatmul.msk.f32.gmra.mxu1 %vm225_vm2, %v6341_v2 }
 0x3f9   : > { %v2532_v21 = vpop.f32.mrf.mxu2  ;;  %v2941_v33 = vpop.f32.mrf.mxu0  ;;  %v6597_v4 = vadd.f32 %v2935_v60, %v2713_v24  ;;  %v6616_v24 = vld [vmem:[#allocation3 + $0x52] sm:$0xff] }
 0x3fa   : > { %v2533_v22 = vadd.f32 %v2532_v21, %v6405_v59 }
 0x3fb   : > { %7359 = vst [vmem:[#allocation12_spill] sm:$0xff] %v6597_v4  ;;  %4656 = vmatmul.msk.f32.gmra.mxu3 %vm225_vm2, %v3324_v40 }
 0x3fc   : > { %v6603_v57 = vpop.f32.mrf.mxu1  ;;  %4691 = vmatmul.msk.f32.gmra.mxu0 %vm225_vm2, %v6601_v44 }
 0x3fe   : > { %v2656_v3 = vpop.f32.mrf.mxu3  ;;  %4623 = vmatmul.msk.f32.gmra.mxu2 %vm225_vm2, %v6145_v11 }
 0x3ff   : > { %v2714_v14 = vadd.f32 %v2656_v3, %v2533_v22  ;;  %4602 = vmatmul.msk.f32.gmra.mxu1 %vm225_vm2, %v6358_v53 }
 0x401   : > { %v2535_v60 = vpop.f32.mrf.mxu2  ;;  %v2944_v13 = vpop.f32.mrf.mxu0  ;;  %v6611_v40 = vadd.f32 %v2938_v55, %v2714_v14 }
 0x402   : > { %v2536_v59 = vadd.f32 %v2535_v60, %v6420_v42  ;;  %v6631_v60 = vld [vmem:[#allocation3 + $0x62] sm:$0xff] }
 0x403   : > { %7360 = vst [vmem:[#allocation13_spill] sm:$0xff] %v6611_v40  ;;  %4657 = vmatmul.msk.f32.gmra.mxu3 %vm225_vm2, %v6573_v63 }
 0x404   : > { %v6618_v21 = vpop.f32.mrf.mxu1  ;;  %4692 = vmatmul.msk.f32.gmra.mxu0 %vm225_vm2, %v6616_v24 }
 0x406   : > { %v2659_v11 = vpop.f32.mrf.mxu3  ;;  %4624 = vmatmul.msk.f32.gmra.mxu2 %vm225_vm2, %v6163_v32 }
 0x407   : > { %v2715_v22 = vadd.f32 %v2659_v11, %v2536_v59  ;;  %4603 = vmatmul.msk.f32.gmra.mxu1 %vm225_vm2, %v6373_v28 }
 0x409   : > { %v2538_v55 = vpop.f32.mrf.mxu2  ;;  %v2947_v3 = vpop.f32.mrf.mxu0  ;;  %v6626_v14 = vadd.f32 %v2941_v33, %v2715_v22 }
 0x40a   : > { %v2539_v42 = vadd.f32 %v2538_v55, %v6435_v35  ;;  %v6646_v55 = vld [vmem:[#allocation3 + $0x6a] sm:$0xff] }
 0x40b   : > { %7361 = vst [vmem:[#allocation14_spill] sm:$0xff] %v6626_v14  ;;  %4658 = vmatmul.msk.f32.gmra.mxu3 %vm225_vm2, %v6587_v47 }
 0x40c   : > { %v6633_v40 = vpop.f32.mrf.mxu1  ;;  %4693 = vmatmul.msk.f32.gmra.mxu0 %vm225_vm2, %v6631_v60 }
 0x40e   : > { %v2662_v32 = vpop.f32.mrf.mxu3  ;;  %4625 = vmatmul.msk.f32.gmra.mxu2 %vm225_vm2, %v6181_v50 }
 0x40f   : > { %v2716_v59 = vadd.f32 %v2662_v32, %v2539_v42  ;;  %4604 = vmatmul.msk.f32.gmra.mxu1 %vm225_vm2, %v6388_v34 }
 0x411   : > { %v2541_v33 = vpop.f32.mrf.mxu2  ;;  %v2950_v11 = vpop.f32.mrf.mxu0  ;;  %v6641_v22 = vadd.f32 %v2944_v13, %v2716_v59 }
 0x412   : > { %v2542_v35 = vadd.f32 %v2541_v33, %v6450_v8  ;;  %v6661_v33 = vld [vmem:[#allocation3 + $0x7a] sm:$0xff] }
 0x413   : > { %7362 = vst [vmem:[#allocation15_spill] sm:$0xff] %v6641_v22  ;;  %4659 = vmatmul.msk.f32.gmra.mxu3 %vm225_vm2, %v6601_v44 }
 0x414   : > { %v6648_v14 = vpop.f32.mrf.mxu1  ;;  %4694 = vmatmul.msk.f32.gmra.mxu0 %vm225_vm2, %v6646_v55 }
 0x416   : > { %v2665_v50 = vpop.f32.mrf.mxu3  ;;  %4626 = vmatmul.msk.f32.gmra.mxu2 %vm225_vm2, %v6199_v43 }
 0x417   : > { %v2717_v42 = vadd.f32 %v2665_v50, %v2542_v35  ;;  %4605 = vmatmul.msk.f32.gmra.mxu1 %vm225_vm2, %v6403_v19 }
 0x419   : > { %v2544_v13 = vpop.f32.mrf.mxu2  ;;  %v2953_v32 = vpop.f32.mrf.mxu0  ;;  %v6656_v59 = vadd.f32 %v2947_v3, %v2717_v42 }
 0x41a   : > { %v2545_v8 = vadd.f32 %v2544_v13, %v6465_v48  ;;  %v6676_v13 = vld [vmem:[#allocation3 + $0x82] sm:$0xff] }
 0x41b   : > { %7363 = vst [vmem:[#allocation16_spill] sm:$0xff] %v6656_v59  ;;  %4660 = vmatmul.msk.f32.gmra.mxu3 %vm225_vm2, %v6616_v24 }
 0x41c   : > { %v6663_v22 = vpop.f32.mrf.mxu1  ;;  %4695 = vmatmul.msk.f32.gmra.mxu0 %vm225_vm2, %v6661_v33 }
 0x41e   : > { %v2668_v43 = vpop.f32.mrf.mxu3  ;;  %4627 = vmatmul.msk.f32.gmra.mxu2 %vm225_vm2, %v6217_v58 }
 0x41f   : > { %v2718_v35 = vadd.f32 %v2668_v43, %v2545_v8  ;;  %4606 = vmatmul.msk.f32.gmra.mxu1 %vm225_vm2, %v6418_v56 }
 0x421   : > { %v2547_v3 = vpop.f32.mrf.mxu2  ;;  %v2956_v50 = vpop.f32.mrf.mxu0  ;;  %v6671_v42 = vadd.f32 %v2950_v11, %v2718_v35 }
 0x422   : > { %v2548_v48 = vadd.f32 %v2547_v3, %v6480_v23  ;;  %v6691_v3 = vld [vmem:[#allocation3 + $0x92] sm:$0xff] }
 0x423   : > { %7364 = vst [vmem:[#allocation17_spill] sm:$0xff] %v6671_v42  ;;  %4661 = vmatmul.msk.f32.gmra.mxu3 %vm225_vm2, %v6631_v60 }
 0x424   : > { %v6678_v59 = vpop.f32.mrf.mxu1  ;;  %4696 = vmatmul.msk.f32.gmra.mxu0 %vm225_vm2, %v6676_v13 }
 0x426   : > { %v2671_v58 = vpop.f32.mrf.mxu3  ;;  %4628 = vmatmul.msk.f32.gmra.mxu2 %vm225_vm2, %v6235_v6 }
 0x427   : > { %v2719_v8 = vadd.f32 %v2671_v58, %v2548_v48  ;;  %4607 = vmatmul.msk.f32.gmra.mxu1 %vm225_vm2, %v6433_v26 }
 0x429   : > { %v2550_v11 = vpop.f32.mrf.mxu2  ;;  %v2959_v43 = vpop.f32.mrf.mxu0  ;;  %v6686_v35 = vadd.f32 %v2953_v32, %v2719_v8 }
 0x42a   : > { %v2551_v23 = vadd.f32 %v2550_v11, %v6495_v17  ;;  %v6706_v11 = vld [vmem:[#allocation3 + $0x9a] sm:$0xff] }
 0x42b   : > { %7365 = vst [vmem:[#allocation4_spill] sm:$0xff] %v6686_v35  ;;  %4662 = vmatmul.msk.f32.gmra.mxu3 %vm225_vm2, %v6646_v55 }
 0x42c   : > { %v6693_v42 = vpop.f32.mrf.mxu1  ;;  %4697 = vmatmul.msk.f32.gmra.mxu0 %vm225_vm2, %v6691_v3 }
 0x42e   : > { %v2674_v6 = vpop.f32.mrf.mxu3  ;;  %4629 = vmatmul.msk.f32.gmra.mxu2 %vm225_vm2, %v6253_v5 }
 0x42f   : > { %v2720_v48 = vadd.f32 %v2674_v6, %v2551_v23  ;;  %4608 = vmatmul.msk.f32.gmra.mxu1 %vm225_vm2, %v6448_v39 }
 0x431   : > { %v2553_v32 = vpop.f32.mrf.mxu2  ;;  %v2962_v58 = vpop.f32.mrf.mxu0  ;;  %v6701_v8 = vadd.f32 %v2956_v50, %v2720_v48 }
 0x432   : > { %v2554_v17 = vadd.f32 %v2553_v32, %v6510_v20  ;;  %v6721_v32 = vld [vmem:[#allocation3 + $0xaa] sm:$0xff] }
 0x433   : > { %7366 = vst [vmem:[#allocation18_spill] sm:$0xff] %v6701_v8  ;;  %4663 = vmatmul.msk.f32.gmra.mxu3 %vm225_vm2, %v6661_v33 }
 0x434   : > { %v6708_v35 = vpop.f32.mrf.mxu1  ;;  %4698 = vmatmul.msk.f32.gmra.mxu0 %vm225_vm2, %v6706_v11 }
 0x436   : > { %v2677_v5 = vpop.f32.mrf.mxu3  ;;  %4630 = vmatmul.msk.f32.gmra.mxu2 %vm225_vm2, %v6279_v41 }
 0x437   : > { %v2721_v23 = vadd.f32 %v2677_v5, %v2554_v17  ;;  %4609 = vmatmul.msk.f32.gmra.mxu1 %vm225_vm2, %v6463_v27 }
 0x439   : > { %v2556_v50 = vpop.f32.mrf.mxu2  ;;  %v2965_v6 = vpop.f32.mrf.mxu0  ;;  %v6716_v48 = vadd.f32 %v2959_v43, %v2721_v23 }
 0x43a   : > { %v2557_v20 = vadd.f32 %v2556_v50, %v6525_v29  ;;  %v6736_v50 = vld [vmem:[#allocation3 + $0xb2] sm:$0xff] }
 0x43b   : > { %7367 = vst [vmem:[#allocation19_spill] sm:$0xff] %v6716_v48  ;;  %4664 = vmatmul.msk.f32.gmra.mxu3 %vm225_vm2, %v6676_v13 }
 0x43c   : > { %v6723_v8 = vpop.f32.mrf.mxu1  ;;  %4699 = vmatmul.msk.f32.gmra.mxu0 %vm225_vm2, %v6721_v32 }
 0x43e   : > { %v2680_v41 = vpop.f32.mrf.mxu3  ;;  %4631 = vmatmul.msk.f32.gmra.mxu2 %vm225_vm2, %v6307_v25 }
 0x43f   : > { %v2722_v17 = vadd.f32 %v2680_v41, %v2557_v20  ;;  %4610 = vmatmul.msk.f32.gmra.mxu1 %vm225_vm2, %v6478_v18 }
 0x441   : > { %v2559_v43 = vpop.f32.mrf.mxu2  ;;  %v2968_v5 = vpop.f32.mrf.mxu0  ;;  %v6731_v23 = vadd.f32 %v2962_v58, %v2722_v17 }
 0x442   : > { %v2560_v29 = vadd.f32 %v2559_v43, %v6539_v51  ;;  %v6751_v43 = vld [vmem:[#allocation3 + $0xc2] sm:$0xff] }
 0x443   : > { %7368 = vst [vmem:[#allocation20_spill] sm:$0xff] %v6731_v23  ;;  %4665 = vmatmul.msk.f32.gmra.mxu3 %vm225_vm2, %v6691_v3 }
 0x444   : > { %v6738_v48 = vpop.f32.mrf.mxu1  ;;  %4700 = vmatmul.msk.f32.gmra.mxu0 %vm225_vm2, %v6736_v50 }
 0x446   : > { %v2683_v25 = vpop.f32.mrf.mxu3  ;;  %4632 = vmatmul.msk.f32.gmra.mxu2 %vm225_vm2, %v6323_v61 }
 0x447   : > { %v2723_v20 = vadd.f32 %v2683_v25, %v2560_v29  ;;  %4611 = vmatmul.msk.f32.gmra.mxu1 %vm225_vm2, %v6493_v54 }
 0x449   : > { %v2562_v58 = vpop.f32.mrf.mxu2  ;;  %v2971_v41 = vpop.f32.mrf.mxu0  ;;  %v6746_v17 = vadd.f32 %v2965_v6, %v2723_v20 }
 0x44a   : > { %v2563_v51 = vadd.f32 %v2562_v58, %v6551_v30  ;;  %v6766_v58 = vld [vmem:[#allocation3 + $0xca] sm:$0xff] }
 0x44b   : > { %7369 = vst [vmem:[#allocation21_spill] sm:$0xff] %v6746_v17  ;;  %4666 = vmatmul.msk.f32.gmra.mxu3 %vm225_vm2, %v6706_v11 }
 0x44c   : > { %v6753_v23 = vpop.f32.mrf.mxu1  ;;  %4701 = vmatmul.msk.f32.gmra.mxu0 %vm225_vm2, %v6751_v43 }
 0x44e   : > { %v2686_v61 = vpop.f32.mrf.mxu3  ;;  %4633 = vmatmul.msk.f32.gmra.mxu2 %vm225_vm2, %v6341_v2 }
 0x44f   : > { %v2724_v29 = vadd.f32 %v2686_v61, %v2563_v51  ;;  %4612 = vmatmul.msk.f32.gmra.mxu1 %vm225_vm2, %v6508_v62 }
 0x451   : > { %v2565_v6 = vpop.f32.mrf.mxu2  ;;  %v2974_v25 = vpop.f32.mrf.mxu0  ;;  %v6761_v20 = vadd.f32 %v2968_v5, %v2724_v29 }
 0x452   : > { %v2566_v30 = vadd.f32 %v2565_v6, %v6562_v46  ;;  %v6781_v6 = vld [vmem:[#allocation3 + $0xda] sm:$0xff] }
 0x453   : > { %7370 = vst [vmem:[#allocation22_spill] sm:$0xff] %v6761_v20  ;;  %4667 = vmatmul.msk.f32.gmra.mxu3 %vm225_vm2, %v6721_v32 }
 0x454   : > { %v6768_v17 = vpop.f32.mrf.mxu1  ;;  %4702 = vmatmul.msk.f32.gmra.mxu0 %vm225_vm2, %v6766_v58 }
 0x456   : > { %v2689_v2 = vpop.f32.mrf.mxu3  ;;  %4634 = vmatmul.msk.f32.gmra.mxu2 %vm225_vm2, %v6358_v53 }
 0x457   : > { %v2725_v51 = vadd.f32 %v2689_v2, %v2566_v30  ;;  %4613 = vmatmul.msk.f32.gmra.mxu1 %vm225_vm2, %v6523_v31 }
 0x459   : > { %v2568_v5 = vpop.f32.mrf.mxu2  ;;  %v6776_v61 = vadd.f32 %v2971_v41, %v2725_v51  ;;  %v3631_v29 = vpop.f32.mrf.mxu0  ;;  %v3133_v41 = vadd.f32 %v6589_v0, %v6336_v45  ;;  %v3134_v0 = vadd.f32 %v6603_v57, %v6353_v12  ;;  %v3135_v57 = vadd.f32 %v6618_v21, %v6368_v16 }
 0x45a   : > { %v2569_v46 = vadd.f32 %v2568_v5, %v6575_v10  ;;  %v6797_v5 = vld [vmem:[#allocation3 + $0xe2] sm:$0xff]  ;;  %v3136_v16 = vadd.f32 %v6633_v40, %v6383_v7 }
 0x45b   : > { %7371 = vst [vmem:[#allocation23_spill] sm:$0xff] %v6776_v61  ;;  %4668 = vmatmul.msk.f32.gmra.mxu3 %vm225_vm2, %v6736_v50 }
 0x45c   : > { %v6783_v20 = vpop.f32.mrf.mxu1  ;;  %4703 = vmatmul.msk.f32.gmra.mxu0 %vm225_vm2, %v6781_v6 }
 0x45e   : > { %v2692_v53 = vpop.f32.mrf.mxu3  ;;  %4635 = vmatmul.msk.f32.gmra.mxu2 %vm225_vm2, %v6373_v28 }
 0x45f   : > { %v2726_v30 = vadd.f32 %v2692_v53, %v2569_v46  ;;  %4614 = vmatmul.msk.f32.gmra.mxu1 %vm225_vm2, %v6537_v1  ;;  %v6803_v46 = vld [vmem:[#allocation3 + $0x181] sm:$0xff] }
 0x461   : > { %v3193_v2 = vpop.f32.mrf.mxu2  ;;  %v6793_v10 = vadd.f32 %v2974_v25, %v2726_v30  ;;  %v3634_v4 = vpop.f32.mrf.mxu0 }
 0x462   : > { %v3289_v51 = vadd.f32 %v3193_v2, %v3133_v41  ;;  %v6815_v41 = vld [vmem:[#allocation3 + $0xf2] sm:$0xff] }
 0x463   : > { %7372 = vst [vmem:[#allocation24_spill] sm:$0xff] %v6793_v10  ;;  %4669 = vmatmul.msk.f32.gmra.mxu3 %vm225_vm2, %v6751_v43 }
 0x464   : > { %v6799_v61 = vpop.f32.mrf.mxu1  ;;  %4704 = vmatmul.msk.f32.gmra.mxu0 %vm225_vm2, %v6797_v5 }
 0x466   : > { %v3475_v28 = vpop.f32.mrf.mxu3  ;;  %4636 = vmatmul.msk.f32.gmra.mxu2 %vm225_vm2, %v6388_v34 }
 0x467   : > { %v3571_v45 = vadd.f32 %v3475_v28, %v3289_v51  ;;  %4615 = vmatmul.msk.f32.gmra.mxu1 %vm225_vm2, %v6803_v46  ;;  %v6821_v28 = vld [vmem:[#allocation3 + $0x189] sm:$0xff] }
 0x469   : > { %v3196_v25 = vpop.f32.mrf.mxu2  ;;  %v6811_v53 = vadd.f32 %v3631_v29, %v3571_v45  ;;  %v3637_v51 = vpop.f32.mrf.mxu0 }
 0x46a   : > { %v3290_v30 = vadd.f32 %v3196_v25, %v3134_v0  ;;  %v6833_v25 = vld [vmem:[#allocation3 + $0xfa] sm:$0xff] }
 0x46b   : > { %4670 = vmatmul.msk.f32.gmra.mxu3 %vm225_vm2, %v6766_v58 }
 0x46c   : > { %v6817_v2 = vpop.f32.mrf.mxu1  ;;  %4705 = vmatmul.msk.f32.gmra.mxu0 %vm225_vm2, %v6815_v41 }
 0x46e   : > { %v3478_v34 = vpop.f32.mrf.mxu3  ;;  %4637 = vmatmul.msk.f32.gmra.mxu2 %vm225_vm2, %v6403_v19 }
 0x46f   : > { %v3572_v12 = vadd.f32 %v3478_v34, %v3290_v30  ;;  %4616 = vmatmul.msk.f32.gmra.mxu1 %vm225_vm2, %v6821_v28 }
 0x471   : > { %v3199_v29 = vpop.f32.mrf.mxu2  ;;  %v6829_v45 = vadd.f32 %v3634_v4, %v3572_v12  ;;  %v3640_v4 = vpop.f32.mrf.mxu0 }
 0x472   : > { %v3291_v0 = vadd.f32 %v3199_v29, %v3135_v57  ;;  %v6849_v57 = vld [vmem:[#allocation3 + $0x10a] sm:$0xff] }
 0x473   : > { %4671 = vmatmul.msk.f32.gmra.mxu3 %vm225_vm2, %v6781_v6 }
 0x474   : > { %v6835_v10 = vpop.f32.mrf.mxu1  ;;  %4706 = vmatmul.msk.f32.gmra.mxu0 %vm225_vm2, %v6833_v25 }
 0x476   : > { %v3481_v19 = vpop.f32.mrf.mxu3  ;;  %4638 = vmatmul.msk.f32.gmra.mxu2 %vm225_vm2, %v6418_v56 }
 0x477   : > { %v3573_v30 = vadd.f32 %v3481_v19, %v3291_v0  ;;  %4721 = vmatmul.msk.f32.vlgmr.msra.gmra.mxu1 %vm225_vm2, %v6573_v63  ;;  %v3137_v63 = vadd.f32 %v6648_v14, %v6398_v9 }
 0x479   : > { %v3202_v21 = vpop.f32.mrf.mxu2  ;;  %v6845_v34 = vadd.f32 %v3637_v51, %v3573_v30  ;;  %v3643_v0 = vpop.f32.mrf.mxu0  ;;  %v6865_v30 = vld [vmem:[#allocation3 + $0x112] sm:$0xff] }
 0x47a   : > { %v3292_v12 = vadd.f32 %v3202_v21, %v3136_v16 }
 0x47b   : > { %4672 = vmatmul.msk.f32.gmra.mxu3 %vm225_vm2, %v6797_v5 }
 0x47c   : > { %v6851_v29 = vpop.f32.mrf.mxu1  ;;  %4707 = vmatmul.msk.f32.gmra.mxu0 %vm225_vm2, %v6849_v57 }
 0x47e   : > { %v3484_v56 = vpop.f32.mrf.mxu3  ;;  %4639 = vmatmul.msk.f32.gmra.mxu2 %vm225_vm2, %v6433_v26 }
 0x47f   : > { %v3574_v7 = vadd.f32 %v3484_v56, %v3292_v12  ;;  %4722 = vmatmul.msk.f32.gmra.mxu1 %vm225_vm2, %v6587_v47  ;;  %v3138_v47 = vadd.f32 %v6663_v22, %v6413_v36  ;;  %v6881_v12 = vld [vmem:[#allocation3 + $0x122] sm:$0xff] }
 0x481   : > { %v3205_v40 = vpop.f32.mrf.mxu2  ;;  %v6861_v51 = vadd.f32 %v3640_v4, %v3574_v7  ;;  %v3646_v56 = vpop.f32.mrf.mxu0 }
 0x482   : > { %v3293_v19 = vadd.f32 %v3205_v40, %v3137_v63 }
 0x483   : > { %4673 = vmatmul.msk.f32.gmra.mxu3 %vm225_vm2, %v6815_v41 }
 0x484   : > { %v6867_v16 = vpop.f32.mrf.mxu1  ;;  %4708 = vmatmul.msk.f32.gmra.mxu0 %vm225_vm2, %v6865_v30 }
 0x486   : > { %v3487_v26 = vpop.f32.mrf.mxu3  ;;  %4640 = vmatmul.msk.f32.gmra.mxu2 %vm225_vm2, %v6448_v39 }
 0x487   : > { %v3575_v9 = vadd.f32 %v3487_v26, %v3293_v19  ;;  %4723 = vmatmul.msk.f32.gmra.mxu1 %vm225_vm2, %v6601_v44  ;;  %v3139_v44 = vadd.f32 %v6678_v59, %v6428_v38 }
 0x489   : > { %v3208_v14 = vpop.f32.mrf.mxu2  ;;  %v6877_v4 = vadd.f32 %v3643_v0, %v3575_v9  ;;  %v6897_v0 = vld [vmem:[#allocation3 + $0x12a] sm:$0xff] }
 0x48a   : > { %v3294_v21 = vadd.f32 %v3208_v14, %v3138_v47  ;;  %v6913_v14 = vld [vmem:[#allocation3 + $0x13a] sm:$0xff] }
 0x48b   : > { %4674 = vmatmul.msk.f32.gmra.mxu3 %vm225_vm2, %v6833_v25 }
 0x48c   : > { %v6883_v7 = vpop.f32.mrf.mxu1  ;;  %4709 = vmatmul.msk.f32.gmra.mxu0 %vm225_vm2, %v6881_v12 }
 0x48e   : > { %v3490_v39 = vpop.f32.mrf.mxu3  ;;  %4641 = vmatmul.msk.f32.gmra.mxu2 %vm225_vm2, %v6463_v27  ;;  %v3649_v27 = vpop.f32.mrf.mxu0 }
 0x48f   : > { %v3576_v36 = vadd.f32 %v3490_v39, %v3294_v21  ;;  %4724 = vmatmul.msk.f32.gmra.mxu1 %vm225_vm2, %v6616_v24  ;;  %v3140_v24 = vadd.f32 %v6693_v42, %v6443_v15 }
 0x491   : > { %v3211_v22 = vpop.f32.mrf.mxu2  ;;  %v6893_v63 = vadd.f32 %v3646_v56, %v3576_v36  ;;  %v6927_v56 = vld [vmem:[#allocation3 + $0x142] sm:$0xff] }
 0x492   : > { %v3295_v40 = vadd.f32 %v3211_v22, %v3139_v44 }
 0x493   : > { %4675 = vmatmul.msk.f32.gmra.mxu3 %vm225_vm2, %v6849_v57 }
 0x494   : > { %v6899_v19 = vpop.f32.mrf.mxu1  ;;  %4710 = vmatmul.msk.f32.gmra.mxu0 %vm225_vm2, %v6897_v0 }
 0x496   : > { %v3493_v26 = vpop.f32.mrf.mxu3  ;;  %4642 = vmatmul.msk.f32.gmra.mxu2 %vm225_vm2, %v6478_v18  ;;  %v3652_v15 = vpop.f32.mrf.mxu0 }
 0x497   : > { %v3577_v38 = vadd.f32 %v3493_v26, %v3295_v40  ;;  %4725 = vmatmul.msk.f32.gmra.mxu1 %vm225_vm2, %v6631_v60 }
 0x499   : > { %v3214_v59 = vpop.f32.mrf.mxu2  ;;  %v6909_v9 = vadd.f32 %v3649_v27, %v3577_v38 }
 0x49a   : > { %v3296_v47 = vadd.f32 %v3214_v59, %v3140_v24 }
 0x49b   : > { %4676 = vmatmul.msk.f32.gmra.mxu3 %vm225_vm2, %v6865_v30 }
 0x49c   : > { %v6915_v21 = vpop.f32.mrf.mxu1  ;;  %4711 = vmatmul.msk.f32.gmra.mxu0 %vm225_vm2, %v6913_v14 }
 0x49e   : > { %v3496_v18 = vpop.f32.mrf.mxu3  ;;  %4643 = vmatmul.msk.f32.gmra.mxu2 %vm225_vm2, %v6493_v54  ;;  %v6939_v54 = vld [vmem:[#allocation3 + $0x152] sm:$0xff] }
 0x49f   : > { %v3578_v60 = vadd.f32 %v3496_v18, %v3296_v47  ;;  %4726 = vmatmul.msk.f32.gmra.mxu1 %vm225_vm2, %v6646_v55  ;;  %v3952_v47 = vld [vmem:[%s4842_s27 + $0x8] sm:$0xff] }
 0x4a1   : > { %v6923_v42 = vadd.f32 %v3652_v15, %v3578_v60  ;;  %v7031_v24 = vpop.f32.mrf.mxu2  ;;  %v7049_v15 = vpop.f32.mrf.mxu0 }
 0x4a3   : > { %4677 = vmatmul.msk.f32.gmra.mxu3 %vm225_vm2, %v6881_v12 }
 0x4a4   : > { %v6929_v39 = vpop.f32.mrf.mxu1  ;;  %4712 = vmatmul.msk.f32.gmra.mxu0 %vm225_vm2, %v6927_v56 }
 0x4a6   : > { %4644 = vmatmul.msk.f32.gmra.mxu2 %vm225_vm2, %v6508_v62  ;;  %v6951_v62 = vld [vmem:[#allocation3 + $0x15a] sm:$0xff]  ;;  %v7047_v18 = vpop.f32.mrf.mxu3 }
 0x4a7   : > { %4727 = vmatmul.msk.f32.gmra.mxu1 %vm225_vm2, %v6661_v33 }
 0x4ab   : > { %4678 = vmatmul.msk.f32.gmra.mxu3 %vm225_vm2, %v6897_v0 }
 0x4ac   : > { %v6941_v55 = vpop.f32.mrf.mxu1  ;;  %4713 = vmatmul.msk.f32.gmra.mxu0 %vm225_vm2, %v6939_v54 }
 0x4ae   : > { %4645 = vmatmul.msk.f32.gmra.mxu2 %vm225_vm2, %v6523_v31  ;;  %v6963_v31 = vld [vmem:[#allocation3 + $0x16a] sm:$0xff] }
 0x4af   : > { %4728 = vmatmul.msk.f32.gmra.mxu1 %vm225_vm2, %v6676_v13 }
 0x4b3   : > { %4679 = vmatmul.msk.f32.gmra.mxu3 %vm225_vm2, %v6913_v14 }
 0x4b4   : > { %v6953_v33 = vpop.f32.mrf.mxu1  ;;  %4714 = vmatmul.msk.f32.gmra.mxu0 %vm225_vm2, %v6951_v62 }
 0x4b6   : > { %4646 = vmatmul.msk.f32.gmra.mxu2 %vm225_vm2, %v6537_v1  ;;  %v6975_v1 = vld [vmem:[#allocation3 + $0x172] sm:$0xff] }
 0x4b7   : > { %4729 = vmatmul.msk.f32.gmra.mxu1 %vm225_vm2, %v6691_v3 }
 0x4bb   : > { %4680 = vmatmul.msk.f32.gmra.mxu3 %vm225_vm2, %v6927_v56 }
 0x4bc   : > { %v6965_v13 = vpop.f32.mrf.mxu1  ;;  %4715 = vmatmul.msk.f32.gmra.mxu0 %vm225_vm2, %v6963_v31 }
 0x4be   : > { %4647 = vmatmul.msk.f32.gmra.mxu2 %vm225_vm2, %v6803_v46  ;;  %v6987_v46 = vld [vmem:[#allocation3 + $0x182] sm:$0xff] }
 0x4bf   : > { %4730 = vmatmul.msk.f32.gmra.mxu1 %vm225_vm2, %v6706_v11  ;;  %v2761_v11 = vld [vmem:[#allocation3 + $0x199] sm:$0xff] }
 0x4c3   : > { %4681 = vmatmul.msk.f32.gmra.mxu3 %vm225_vm2, %v6939_v54 }
 0x4c4   : > { %v6977_v3 = vpop.f32.mrf.mxu1  ;;  %4716 = vmatmul.msk.f32.gmra.mxu0 %vm225_vm2, %v6975_v1 }
 0x4c6   : > { %4648 = vmatmul.msk.f32.gmra.mxu2 %vm225_vm2, %v6821_v28  ;;  %v6998_v28 = vld [vmem:[#allocation3 + $0x18a] sm:$0xff] }
 0x4c7   : > { %4731 = vmatmul.msk.f32.gmra.mxu1 %vm225_vm2, %v6721_v32  ;;  %v2762_v32 = vld [vmem:[#allocation3 + $0x1a1] sm:$0xff] }
 0x4cb   : > { %4682 = vmatmul.msk.f32.gmra.mxu3 %vm225_vm2, %v6951_v62 }
 0x4cc   : > { %v6989_v36 = vpop.f32.mrf.mxu1  ;;  %4717 = vmatmul.msk.f32.gmra.mxu0 %vm225_vm2, %v6987_v46 }
 0x4ce   : > { %4649 = vmatmul.msk.f32.gmra.mxu2 %vm225_vm2, %v2761_v11 }
 0x4cf   : > { %4732 = vmatmul.msk.f32.gmra.mxu1 %vm225_vm2, %v6736_v50 }
 0x4d3   : > { %4683 = vmatmul.msk.f32.gmra.mxu3 %vm225_vm2, %v6963_v31 }
 0x4d4   : > { %v7000_v44 = vpop.f32.mrf.mxu1  ;;  %4718 = vmatmul.msk.f32.gmra.mxu0 %vm225_vm2, %v6998_v28 }
 0x4d6   : > { %4650 = vmatmul.msk.f32.gmra.mxu2 %vm225_vm2, %v2762_v32  ;;  %v7051_v32 = vpop.f32.mrf.mxu2 }
 0x4d7   : > { %4733 = vmatmul.msk.f32.gmra.mxu1 %vm225_vm2, %v6751_v43  ;;  %v7024_v43 = vld [vmem:[%s7320_s4] ss:$0 sm:$0xff] }
 0x4db   : > { %4684 = vmatmul.msk.f32.gmra.mxu3 %vm225_vm2, %v6975_v1 }
 0x4dc   : > { %v7009_v50 = vpop.f32.mrf.mxu1 }
 0x4df   : > { %4734 = vmatmul.msk.f32.gmra.mxu1 %vm225_vm2, %v6766_v58  ;;  %v3951_v58 = vld [vmem:[%s4842_s27] sm:$0xff] }
 0x4e4   : > { %v7013_v22 = vpop.f32.mrf.mxu1 }
 0x4e7   : > { %4735 = vmatmul.msk.f32.gmra.mxu1 %vm225_vm2, %v6781_v6 }
 0x4ec   : > { %v7017_v40 = vpop.f32.mrf.mxu1 }
 0x4ef   : > { %4736 = vmatmul.msk.f32.gmra.mxu1 %vm225_vm2, %v6797_v5 }
 0x4f4   : > { %v3787_v27 = vpop.f32.mrf.mxu1 }
 0x4f5   : > { %v3883_v26 = vadd.f32 %v3787_v27, %v6811_v53 }
 0x4f7   : > { %v3919_v38 = vadd.f32 %v7024_v43, %v3883_v26  ;;  %4737 = vmatmul.msk.f32.gmra.mxu1 %vm225_vm2, %v6815_v41  ;;  %v3953_v26 = vld [vmem:[%s4842_s27 + $0x10] sm:$0xff] }
 0x4f9   : > { %v3983_v6 = vadd.f32 %v3951_v58, %v3919_v38  ;;  %v7060_v38 = vpop.f32.mrf.mxu3 }
 0x4fb   : > { %v4015_v5 = vmax.f32 %v3983_v6, 0.0 }
 0x4fc   : > { %v3790_v53 = vpop.f32.mrf.mxu1 }
 0x4fd   : > { %4047 = vst.msk [vmem:[%s7038_s25] sm:$0xff] %vm225_vm2, %v4015_v5  ;;  %v3884_v59 = vadd.f32 %v3790_v53, %v6829_v45  ;;  %v7062_v53 = vpop.f32.mrf.mxu0 }
 0x4ff   : > { %v3920_v41 = vadd.f32 %v7024_v43, %v3884_v59  ;;  %4738 = vmatmul.msk.f32.gmra.mxu1 %vm225_vm2, %v6833_v25 }
 0x501   : > { %v3984_v60 = vadd.f32 %v3952_v47, %v3920_v41  ;;  %v3954_v47 = vld [vmem:[%s4842_s27 + $0x18] sm:$0xff] }
 0x503   : > { %v4016_v11 = vmax.f32 %v3984_v60, 0.0 }
 0x504   : > { %v3793_v27 = vpop.f32.mrf.mxu1 }
 0x505   : > { %4048 = vst.msk [vmem:[%s7038_s25 + $0x8] sm:$0xff] %vm225_vm2, %v4016_v11  ;;  %v3885_v45 = vadd.f32 %v3793_v27, %v6845_v34  ;;  %v7067_v34 = vpop.f32.mrf.mxu2  ;;  %v7073_v11 = vpop.f32.mrf.mxu3 }
 0x507   : > { %v3921_v58 = vadd.f32 %v7024_v43, %v3885_v45  ;;  %4739 = vmatmul.msk.f32.gmra.mxu1 %vm225_vm2, %v6849_v57 }
 0x509   : > { %v3985_v25 = vadd.f32 %v3953_v26, %v3921_v58  ;;  %v7079_v26 = vpop.f32.mrf.mxu0 }
 0x50b   : > { %v4017_v6 = vmax.f32 %v3985_v25, 0.0 }
 0x50c   : > { %v3796_v5 = vpop.f32.mrf.mxu1 }
 0x50d   : > { %4049 = vst.msk [vmem:[%s7038_s25 + $0x10] sm:$0xff] %vm225_vm2, %v4017_v6  ;;  %v3886_v59 = vadd.f32 %v3796_v5, %v6861_v51  ;;  %v3955_v51 = vld [vmem:[%s4842_s27 + $0x20] sm:$0xff] }
 0x50f   : > { %v3922_v41 = vadd.f32 %v7024_v43, %v3886_v59  ;;  %4740 = vmatmul.msk.f32.gmra.mxu1 %vm225_vm2, %v6865_v30  ;;  %v7084_v30 = vpop.f32.mrf.mxu2 }
 0x511   : > { %v3986_v57 = vadd.f32 %v3954_v47, %v3922_v41  ;;  %v3956_v47 = vld [vmem:[%s4842_s27 + $0x28] sm:$0xff] }
 0x513   : > { %v4018_v60 = vmax.f32 %v3986_v57, 0.0 }
 0x514   : > { %v3799_v27 = vpop.f32.mrf.mxu1 }
 0x515   : > { %4050 = vst.msk [vmem:[%s7038_s25 + $0x18] sm:$0xff] %vm225_vm2, %v4018_v60  ;;  %v3887_v45 = vadd.f32 %v3799_v27, %v6877_v4  ;;  %v7089_v4 = vpop.f32.mrf.mxu3 }
 0x517   : > { %v3923_v58 = vadd.f32 %v7024_v43, %v3887_v45  ;;  %4741 = vmatmul.msk.f32.gmra.mxu1 %vm225_vm2, %v6881_v12  ;;  %v7095_v12 = vpop.f32.mrf.mxu0  ;;  %v7097_v60 = vpop.f32.mrf.mxu2 }
 0x519   : > { %v3987_v25 = vadd.f32 %v3955_v51, %v3923_v58  ;;  %v3957_v51 = vld [vmem:[%s4842_s27 + $0x30] sm:$0xff] }
 0x51b   : > { %v4019_v6 = vmax.f32 %v3987_v25, 0.0  ;;  %v7373_v25 = vld [vmem:[#allocation5_spill] sm:$0xff] }
 0x51c   : > { %v3802_v5 = vpop.f32.mrf.mxu1 }
 0x51d   : > { %4051 = vst.msk [vmem:[%s7038_s25 + $0x20] sm:$0xff] %vm225_vm2, %v4019_v6  ;;  %v3888_v59 = vadd.f32 %v3802_v5, %v6893_v63  ;;  %v3141_v6 = vadd.f32 %v6708_v35, %v7373_v25 }
 0x51f   : > { %v3924_v41 = vadd.f32 %v7024_v43, %v3888_v59  ;;  %4742 = vmatmul.msk.f32.gmra.mxu1 %vm225_vm2, %v6897_v0  ;;  %v7106_v0 = vpop.f32.mrf.mxu3  ;;  %v3297_v59 = vadd.f32 %v7031_v24, %v3141_v6  ;;  %v7374_v24 = vld [vmem:[#allocation6_spill] sm:$0xff] }
 0x521   : > { %v3988_v57 = vadd.f32 %v3956_v47, %v3924_v41  ;;  %v7111_v47 = vpop.f32.mrf.mxu0 }
 0x523   : > { %v4020_v27 = vmax.f32 %v3988_v57, 0.0  ;;  %v7113_v57 = vpop.f32.mrf.mxu2 }
 0x524   : > { %v3805_v45 = vpop.f32.mrf.mxu1 }
 0x525   : > { %4052 = vst.msk [vmem:[%s7038_s25 + $0x28] sm:$0xff] %vm225_vm2, %v4020_v27  ;;  %v3889_v63 = vadd.f32 %v3805_v45, %v6909_v9  ;;  %v3579_v45 = vadd.f32 %v7047_v18, %v3297_v59  ;;  %v3959_v59 = vld [vmem:[%s4842_s27 + $0x40] sm:$0xff] }
 0x527   : > { %v3925_v58 = vadd.f32 %v7024_v43, %v3889_v63  ;;  %4743 = vmatmul.msk.f32.gmra.mxu1 %vm225_vm2, %v6913_v14  ;;  %v3958_v14 = vld [vmem:[%s4842_s27 + $0x38] sm:$0xff]  ;;  %v3142_v63 = vadd.f32 %v6723_v8, %v7374_v24 }
 0x529   : > { %v3989_v5 = vadd.f32 %v3957_v51, %v3925_v58  ;;  %v7125_v58 = vpop.f32.mrf.mxu3  ;;  %v3298_v25 = vadd.f32 %v7051_v32, %v3142_v63  ;;  %v7375_v32 = vld [vmem:[#allocation7_spill] sm:$0xff] }
 0x52b   : > { %v4021_v41 = vmax.f32 %v3989_v5, 0.0  ;;  %v3580_v8 = vadd.f32 %v7060_v38, %v3298_v25 }
 0x52c   : > { %v3808_v9 = vpop.f32.mrf.mxu1 }
 0x52d   : > { %4053 = vst.msk [vmem:[%s7038_s25 + $0x30] sm:$0xff] %vm225_vm2, %v4021_v41  ;;  %v3890_v27 = vadd.f32 %v3808_v9, %v6923_v42  ;;  %v3735_v42 = vadd.f32 %v7049_v15, %v3579_v45  ;;  %v7129_v41 = vpop.f32.mrf.mxu0  ;;  %v3143_v15 = vadd.f32 %v6738_v48, %v7375_v32  ;;  %v3961_v32 = vld [vmem:[%s4842_s27 + $0x50] sm:$0xff] }
 0x52f   : > { %v3926_v35 = vadd.f32 %v7024_v43, %v3890_v27  ;;  %4744 = vmatmul.msk.f32.gmra.mxu1 %vm225_vm2, %v6927_v56  ;;  %v7133_v56 = vpop.f32.mrf.mxu2 }
 0x531   : > { %v3990_v51 = vadd.f32 %v3958_v14, %v3926_v35  ;;  %v3299_v14 = vadd.f32 %v7067_v34, %v3143_v15  ;;  %v3736_v35 = vadd.f32 %v7062_v53, %v3580_v8  ;;  %v7144_v24 = vpop.f32.mrf.mxu3  ;;  %v7376_v53 = vld [vmem:[#allocation8_spill] sm:$0xff] }
 0x533   : > { %v4022_v6 = vmax.f32 %v3990_v51, 0.0  ;;  %v3960_v51 = vld [vmem:[%s4842_s27 + $0x48] sm:$0xff] }
 0x534   : > { %v3811_v5 = vpop.f32.mrf.mxu1 }
 0x535   : > { %4054 = vst.msk [vmem:[%s7038_s25 + $0x38] sm:$0xff] %vm225_vm2, %v4022_v6  ;;  %v3891_v18 = vadd.f32 %v3811_v5, %v3735_v42  ;;  %v7150_v25 = vpop.f32.mrf.mxu0  ;;  %v3144_v6 = vadd.f32 %v6753_v23, %v7376_v53  ;;  %v7377_v23 = vld [vmem:[#allocation9_spill] sm:$0xff] }
 0x537   : > { %v3927_v9 = vadd.f32 %v7024_v43, %v3891_v18  ;;  %4745 = vmatmul.msk.f32.gmra.mxu1 %vm225_vm2, %v6939_v54  ;;  %v3581_v54 = vadd.f32 %v7073_v11, %v3299_v14  ;;  %v3238_v34 = vpop.f32.mrf.mxu2  ;;  %v3300_v5 = vadd.f32 %v7084_v30, %v3144_v6  ;;  %v3145_v30 = vadd.f32 %v6768_v17, %v7377_v23 }
 0x539   : > { %v3991_v27 = vadd.f32 %v3959_v59, %v3927_v9  ;;  %v3737_v59 = vadd.f32 %v7079_v26, %v3581_v54  ;;  %v3520_v9 = vpop.f32.mrf.mxu3 }
 0x53b   : > { %v4023_v45 = vmax.f32 %v3991_v27, 0.0 }
 0x53c   : > { %v3814_v63 = vpop.f32.mrf.mxu1 }
 0x53d   : > { %4055 = vst.msk [vmem:[%s7038_s25 + $0x40] sm:$0xff] %vm225_vm2, %v4023_v45  ;;  %v3892_v38 = vadd.f32 %v3814_v63, %v3736_v35  ;;  %v7168_v27 = vpop.f32.mrf.mxu0  ;;  %v3301_v45 = vadd.f32 %v7097_v60, %v3145_v30 }
 0x53f   : > { %v3928_v48 = vadd.f32 %v7024_v43, %v3892_v38  ;;  %4746 = vmatmul.msk.f32.gmra.mxu1 %vm225_vm2, %v6951_v62  ;;  %v3582_v62 = vadd.f32 %v7089_v4, %v3300_v5  ;;  %v3241_v14 = vpop.f32.mrf.mxu2 }
 0x541   : > { %v3992_v42 = vadd.f32 %v3960_v51, %v3928_v48  ;;  %v3738_v63 = vadd.f32 %v7095_v12, %v3582_v62  ;;  %v3962_v51 = vld [vmem:[%s4842_s27 + $0x58] sm:$0xff]  ;;  %v3523_v54 = vpop.f32.mrf.mxu3  ;;  %v7378_v48 = vld [vmem:[#allocation10_spill] sm:$0xff] }
 0x542   : > { %v3146_v60 = vadd.f32 %v6783_v20, %v7378_v48  ;;  %v7379_v20 = vld [vmem:[#allocation11_spill] sm:$0xff]  ;;  %v3965_v48 = vld [vmem:[%s4842_s27 + $0x70] sm:$0xff] }
 0x543   : > { %v4024_v18 = vmax.f32 %v3992_v42, 0.0 }
 0x544   : > { %v3817_v8 = vpop.f32.mrf.mxu1  ;;  %v3302_v12 = vadd.f32 %v7113_v57, %v3146_v60  ;;  %v3147_v57 = vadd.f32 %v6799_v61, %v7379_v20 }
 0x545   : > { %4056 = vst.msk [vmem:[%s7038_s25 + $0x48] sm:$0xff] %vm225_vm2, %v4024_v18  ;;  %v3893_v11 = vadd.f32 %v3817_v8, %v3737_v59  ;;  %v3679_v6 = vpop.f32.mrf.mxu0  ;;  %v3963_v8 = vld [vmem:[%s4842_s27 + $0x60] sm:$0xff] }
 0x546   : > { %v3303_v62 = vadd.f32 %v7133_v56, %v3147_v57  ;;  %v3148_v56 = vadd.f32 %v6817_v2, %v6558_v37  ;;  %v3149_v2 = vadd.f32 %v6835_v10, %v6569_v52  ;;  %v3150_v52 = vadd.f32 %v6851_v29, %v6583_v49 }
 0x547   : > { %v3929_v15 = vadd.f32 %v7024_v43, %v3893_v11  ;;  %4747 = vmatmul.msk.f32.gmra.mxu1 %vm225_vm2, %v6963_v31  ;;  %v3583_v31 = vadd.f32 %v7106_v0, %v3301_v45  ;;  %v3244_v18 = vpop.f32.mrf.mxu2 }
 0x548   : > { %v3306_v20 = vadd.f32 %v3244_v18, %v3150_v52 }
 0x549   : > { %v3993_v26 = vadd.f32 %v3961_v32, %v3929_v15  ;;  %v3739_v5 = vadd.f32 %v7111_v47, %v3583_v31  ;;  %v3526_v47 = vpop.f32.mrf.mxu3 }
 0x54b   : > { %v4025_v35 = vmax.f32 %v3993_v26, 0.0 }
 0x54c   : > { %v3820_v38 = vpop.f32.mrf.mxu1 }
 0x54d   : > { %4057 = vst.msk [vmem:[%s7038_s25 + $0x50] sm:$0xff] %vm225_vm2, %v4025_v35  ;;  %v3894_v4 = vadd.f32 %v3820_v38, %v3738_v63  ;;  %v3682_v26 = vpop.f32.mrf.mxu0  ;;  %v3964_v35 = vld [vmem:[%s4842_s27 + $0x68] sm:$0xff]  ;;  %v3304_v63 = vadd.f32 %v3238_v34, %v3148_v56  ;;  %v3305_v34 = vadd.f32 %v3241_v14, %v3149_v2 }
 0x54f   : > { %v3930_v17 = vadd.f32 %v7024_v43, %v3894_v4  ;;  %4748 = vmatmul.msk.f32.gmra.mxu1 %vm225_vm2, %v6975_v1  ;;  %v3584_v1 = vadd.f32 %v7125_v58, %v3302_v12  ;;  %v3247_v45 = vpop.f32.mrf.mxu2  ;;  %v3586_v60 = vadd.f32 %v3520_v9, %v3304_v63 }
 0x551   : > { %v3994_v53 = vadd.f32 %v3962_v51, %v3930_v17  ;;  %v3740_v23 = vadd.f32 %v7129_v41, %v3584_v1  ;;  %v3529_v51 = vpop.f32.mrf.mxu3  ;;  %v3355_v17 = vld [vmem:[#allocation3 + $0x19a] sm:$0xff]  ;;  %v3587_v1 = vadd.f32 %v3523_v54, %v3305_v34  ;;  %v3967_v54 = vld [vmem:[%s4842_s27 + $0x80] sm:$0xff] }
 0x552   : > { %v3969_v34 = vld [vmem:[%s4842_s27 + $0x90] sm:$0xff] }
 0x553   : > { %v4026_v42 = vmax.f32 %v3994_v53, 0.0 }
 0x554   : > { %v3823_v59 = vpop.f32.mrf.mxu1 }
 0x555   : > { %4058 = vst.msk [vmem:[%s7038_s25 + $0x58] sm:$0xff] %vm225_vm2, %v4026_v42  ;;  %v3895_v0 = vadd.f32 %v3823_v59, %v3739_v5  ;;  %v3685_v53 = vpop.f32.mrf.mxu0  ;;  %v3742_v42 = vadd.f32 %v7168_v27, %v3586_v60  ;;  %v3356_v59 = vld [vmem:[#allocation3 + $0x1a2] sm:$0xff] }
 0x557   : > { %v3931_v11 = vadd.f32 %v7024_v43, %v3895_v0  ;;  %4749 = vmatmul.msk.f32.gmra.mxu1 %vm225_vm2, %v6987_v46  ;;  %v3585_v46 = vadd.f32 %v7144_v24, %v3303_v62  ;;  %v3250_v37 = vpop.f32.mrf.mxu2 }
 0x559   : > { %v3995_v32 = vadd.f32 %v3963_v8, %v3931_v11  ;;  %v3741_v4 = vadd.f32 %v7150_v25, %v3585_v46  ;;  %v3532_v0 = vpop.f32.mrf.mxu3  ;;  %v3966_v8 = vld [vmem:[%s4842_s27 + $0x78] sm:$0xff] }
 0x55b   : > { %v4027_v15 = vmax.f32 %v3995_v32, 0.0  ;;  %v3743_v32 = vadd.f32 %v3679_v6, %v3587_v1 }
 0x55c   : > { %v3826_v30 = vpop.f32.mrf.mxu1 }
 0x55d   : > { %4059 = vst.msk [vmem:[%s7038_s25 + $0x60] sm:$0xff] %vm225_vm2, %v4027_v15  ;;  %v3896_v58 = vadd.f32 %v3826_v30, %v3740_v23  ;;  %v3688_v10 = vpop.f32.mrf.mxu0  ;;  %v3588_v23 = vadd.f32 %v3526_v47, %v3306_v20 }
 0x55f   : > { %v3932_v61 = vadd.f32 %v7024_v43, %v3896_v58  ;;  %4750 = vmatmul.msk.f32.gmra.mxu1 %vm225_vm2, %v6998_v28  ;;  %v3253_v27 = vpop.f32.mrf.mxu2  ;;  %v3744_v56 = vadd.f32 %v3682_v26, %v3588_v23 }
 0x561   : > { %v3996_v41 = vadd.f32 %v3964_v35, %v3932_v61  ;;  %v3535_v58 = vpop.f32.mrf.mxu3  ;;  %v7380_v35 = vld [vmem:[#allocation12_spill] sm:$0xff] }
 0x562   : > { %v3151_v49 = vadd.f32 %v6867_v16, %v7380_v35 }
 0x563   : > { %v4028_v38 = vmax.f32 %v3996_v41, 0.0 }
 0x564   : > { %v3829_v31 = vpop.f32.mrf.mxu1  ;;  %v3307_v46 = vadd.f32 %v3247_v45, %v3151_v49  ;;  %v7384_v49 = vld [vmem:[#allocation16_spill] sm:$0xff] }
 0x565   : > { %4060 = vst.msk [vmem:[%s7038_s25 + $0x68] sm:$0xff] %vm225_vm2, %v4028_v38  ;;  %v3897_v24 = vadd.f32 %v3829_v31, %v3741_v4  ;;  %v3691_v61 = vpop.f32.mrf.mxu0  ;;  %v3968_v38 = vld [vmem:[%s4842_s27 + $0x88] sm:$0xff] }
 0x566   : > { %v3589_v47 = vadd.f32 %v3529_v51, %v3307_v46  ;;  %v7381_v31 = vld [vmem:[#allocation13_spill] sm:$0xff] }
 0x567   : > { %v3933_v28 = vadd.f32 %v7024_v43, %v3897_v24  ;;  %4751 = vmatmul.msk.f32.gmra.mxu1 %vm225_vm2, %v3355_v17  ;;  %v3256_v6 = vpop.f32.mrf.mxu2  ;;  %v3152_v17 = vadd.f32 %v6883_v7, %v7381_v31 }
 0x568   : > { %v3745_v60 = vadd.f32 %v3685_v53, %v3589_v47 }
 0x569   : > { %v3997_v25 = vadd.f32 %v3965_v48, %v3933_v28  ;;  %v3538_v24 = vpop.f32.mrf.mxu3  ;;  %v3308_v45 = vadd.f32 %v3250_v37, %v3152_v17  ;;  %v7385_v17 = vld [vmem:[#allocation17_spill] sm:$0xff] }
 0x56b   : > { %v4029_v12 = vmax.f32 %v3997_v25, 0.0  ;;  %v3590_v51 = vadd.f32 %v3532_v0, %v3308_v45 }
 0x56c   : > { %v3832_v5 = vpop.f32.mrf.mxu1 }
 0x56d   : > { %4061 = vst.msk [vmem:[%s7038_s25 + $0x70] sm:$0xff] %vm225_vm2, %v4029_v12  ;;  %v3898_v9 = vadd.f32 %v3832_v5, %v3742_v42  ;;  %v3694_v28 = vpop.f32.mrf.mxu0  ;;  %v7382_v42 = vld [vmem:[#allocation14_spill] sm:$0xff] }
 0x56e   : > { %v3153_v7 = vadd.f32 %v6899_v19, %v7382_v42 }
 0x56f   : > { %v3934_v11 = vadd.f32 %v7024_v43, %v3898_v9  ;;  %4752 = vmatmul.msk.f32.gmra.mxu1 %vm225_vm2, %v3356_v59  ;;  %v3259_v25 = vpop.f32.mrf.mxu2  ;;  %v3746_v9 = vadd.f32 %v3688_v10, %v3590_v51 }
 0x570   : > { %v3309_v59 = vadd.f32 %v3253_v27, %v3153_v7 }
 0x571   : > { %v3998_v14 = vadd.f32 %v3966_v8, %v3934_v11  ;;  %v3541_v53 = vpop.f32.mrf.mxu3  ;;  %v3970_v11 = vld [vmem:[%s4842_s27 + $0x98] sm:$0xff] }
 0x572   : > { %v3591_v52 = vadd.f32 %v3535_v58, %v3309_v59 }
 0x573   : > { %v4030_v57 = vmax.f32 %v3998_v14, 0.0 }
 0x574   : > { %v3835_v62 = vpop.f32.mrf.mxu1  ;;  %v3747_v10 = vadd.f32 %v3691_v61, %v3591_v52 }
 0x575   : > { %4062 = vst.msk [vmem:[%s7038_s25 + $0x78] sm:$0xff] %vm225_vm2, %v4030_v57  ;;  %v3899_v15 = vadd.f32 %v3835_v62, %v3743_v32  ;;  %v3697_v14 = vpop.f32.mrf.mxu0  ;;  %v7383_v57 = vld [vmem:[#allocation15_spill] sm:$0xff] }
 0x576   : > { %v3154_v19 = vadd.f32 %v6915_v21, %v7383_v57 }
 0x577   : > { %v3935_v30 = vadd.f32 %v7024_v43, %v3899_v15  ;;  %v3262_v20 = vpop.f32.mrf.mxu2 }
 0x578   : > { %v3310_v27 = vadd.f32 %v3256_v6, %v3154_v19 }
 0x579   : > { %v3999_v29 = vadd.f32 %v3967_v54, %v3935_v30  ;;  %v3544_v23 = vpop.f32.mrf.mxu3  ;;  %v3971_v30 = vld [vmem:[%s4842_s27 + $0xa0] sm:$0xff] }
 0x57a   : > { %v3592_v58 = vadd.f32 %v3538_v24, %v3310_v27 }
 0x57b   : > { %v4031_v18 = vmax.f32 %v3999_v29, 0.0  ;;  %v3155_v29 = vadd.f32 %v6929_v39, %v7384_v49  ;;  %v3156_v39 = vadd.f32 %v6941_v55, %v7385_v17 }
 0x57c   : > { %v3838_v41 = vpop.f32.mrf.mxu1  ;;  %v3748_v61 = vadd.f32 %v3694_v28, %v3592_v58 }
 0x57d   : > { %4063 = vst.msk [vmem:[%s7038_s25 + $0x80] sm:$0xff] %vm225_vm2, %v4031_v18  ;;  %v3900_v63 = vadd.f32 %v3838_v41, %v3744_v56  ;;  %v3700_v46 = vpop.f32.mrf.mxu0  ;;  %v3311_v56 = vadd.f32 %v3259_v25, %v3155_v29  ;;  %v3312_v24 = vadd.f32 %v3262_v20, %v3156_v39  ;;  %v3973_v25 = vld [vmem:[%s4842_s27 + $0xb0] sm:$0xff] }
 0x57f   : > { %v3936_v4 = vadd.f32 %v7024_v43, %v3900_v63  ;;  %v3265_v18 = vpop.f32.mrf.mxu2  ;;  %v3593_v47 = vadd.f32 %v3541_v53, %v3311_v56 }
 0x581   : > { %v4000_v16 = vadd.f32 %v3968_v38, %v3936_v4  ;;  %v3972_v38 = vld [vmem:[%s4842_s27 + $0xa8] sm:$0xff]  ;;  %v3547_v31 = vpop.f32.mrf.mxu3 }
 0x583   : > { %v4032_v48 = vmax.f32 %v4000_v16, 0.0 }
 0x584   : > { %v3841_v26 = vpop.f32.mrf.mxu1 }
 0x585   : > { %4064 = vst.msk [vmem:[%s7038_s25 + $0x88] sm:$0xff] %vm225_vm2, %v4032_v48  ;;  %v3901_v2 = vadd.f32 %v3841_v26, %v3745_v60  ;;  %v3703_v45 = vpop.f32.mrf.mxu0  ;;  %v3749_v60 = vadd.f32 %v3697_v14, %v3593_v47 }
 0x587   : > { %v3937_v12 = vadd.f32 %v7024_v43, %v3901_v2  ;;  %v3268_v26 = vpop.f32.mrf.mxu2 }
 0x589   : > { %v4001_v5 = vadd.f32 %v3969_v34, %v3937_v12  ;;  %v3594_v34 = vadd.f32 %v3544_v23, %v3312_v24  ;;  %v7386_v12 = vld [vmem:[#allocation4_spill] sm:$0xff]  ;;  %v3550_v7 = vpop.f32.mrf.mxu3 }
 0x58a   : > { %v3157_v42 = vadd.f32 %v6953_v33, %v7386_v12 }
 0x58b   : > { %v4033_v37 = vmax.f32 %v4001_v5, 0.0 }
 0x58c   : > { %v3844_v8 = vpop.f32.mrf.mxu1  ;;  %v3313_v5 = vadd.f32 %v3265_v18, %v3157_v42 }
 0x58d   : > { %4065 = vst.msk [vmem:[%s7038_s25 + $0x90] sm:$0xff] %vm225_vm2, %v4033_v37  ;;  %v3902_v1 = vadd.f32 %v3844_v8, %v3746_v9  ;;  %v3750_v37 = vadd.f32 %v3700_v46, %v3594_v34  ;;  %v3706_v53 = vpop.f32.mrf.mxu0 }
 0x58e   : > { %v3595_v52 = vadd.f32 %v3547_v31, %v3313_v5 }
 0x58f   : > { %v3938_v0 = vadd.f32 %v7024_v43, %v3902_v1  ;;  %v3271_v1 = vpop.f32.mrf.mxu2 }
 0x591   : > { %v4002_v32 = vadd.f32 %v3970_v11, %v3938_v0  ;;  %v3974_v11 = vld [vmem:[%s4842_s27 + $0xb8] sm:$0xff]  ;;  %v7387_v0 = vld [vmem:[#allocation18_spill] sm:$0xff]  ;;  %v3553_v27 = vpop.f32.mrf.mxu3 }
 0x592   : > { %v3158_v33 = vadd.f32 %v6965_v13, %v7387_v0 }
 0x593   : > { %v4034_v62 = vmax.f32 %v4002_v32, 0.0  ;;  %v3751_v32 = vadd.f32 %v3703_v45, %v3595_v52 }
 0x594   : > { %v3847_v15 = vpop.f32.mrf.mxu1  ;;  %v3314_v57 = vadd.f32 %v3268_v26, %v3158_v33 }
 0x595   : > { %4066 = vst.msk [vmem:[%s7038_s25 + $0x98] sm:$0xff] %vm225_vm2, %v4034_v62  ;;  %v3903_v54 = vadd.f32 %v3847_v15, %v3747_v10  ;;  %v3975_v15 = vld [vmem:[%s4842_s27 + $0xc0] sm:$0xff]  ;;  %v3709_v23 = vpop.f32.mrf.mxu0 }
 0x597   : > { %v3939_v35 = vadd.f32 %v7024_v43, %v3903_v54  ;;  %v3596_v54 = vadd.f32 %v3550_v7, %v3314_v57  ;;  %v3274_v58 = vpop.f32.mrf.mxu2 }
 0x599   : > { %v4003_v21 = vadd.f32 %v3971_v30, %v3939_v35  ;;  %v7388_v35 = vld [vmem:[#allocation19_spill] sm:$0xff] }
 0x59a   : > { %v3159_v13 = vadd.f32 %v6977_v3, %v7388_v35 }
 0x59b   : > { %v4035_v6 = vmax.f32 %v4003_v21, 0.0  ;;  %v3752_v21 = vadd.f32 %v3706_v53, %v3596_v54  ;;  %v7391_v53 = vld [vmem:[#allocation22_spill] sm:$0xff] }
 0x59c   : > { %v3850_v41 = vpop.f32.mrf.mxu1  ;;  %v3315_v29 = vadd.f32 %v3271_v1, %v3159_v13  ;;  %v3980_v13 = vld [vmem:[%s4842_s27 + $0xe8] sm:$0xff] }
 0x59d   : > { %4067 = vst.msk [vmem:[%s7038_s25 + $0xa0] sm:$0xff] %vm225_vm2, %v4035_v6  ;;  %v3904_v63 = vadd.f32 %v3850_v41, %v3748_v61  ;;  %v3556_v6 = vpop.f32.mrf.mxu3  ;;  %v3976_v61 = vld [vmem:[%s4842_s27 + $0xc8] sm:$0xff] }
 0x59e   : > { %v3597_v41 = vadd.f32 %v3553_v27, %v3315_v29 }
 0x59f   : > { %v3940_v4 = vadd.f32 %v7024_v43, %v3904_v63  ;;  %v3277_v31 = vpop.f32.mrf.mxu2 }
 0x5a1   : > { %v4004_v16 = vadd.f32 %v3972_v38, %v3940_v4  ;;  %v7389_v38 = vld [vmem:[#allocation20_spill] sm:$0xff]  ;;  %v3712_v4 = vpop.f32.mrf.mxu0 }
 0x5a2   : > { %v3160_v47 = vadd.f32 %v6989_v36, %v7389_v38 }
 0x5a3   : > { %v4036_v48 = vmax.f32 %v4004_v16, 0.0  ;;  %v3753_v16 = vadd.f32 %v3709_v23, %v3597_v41 }
 0x5a4   : > { %v3853_v28 = vpop.f32.mrf.mxu1  ;;  %v3316_v17 = vadd.f32 %v3274_v58, %v3160_v47 }
 0x5a5   : > { %4068 = vst.msk [vmem:[%s7038_s25 + $0xa8] sm:$0xff] %vm225_vm2, %v4036_v48  ;;  %v3905_v2 = vadd.f32 %v3853_v28, %v3749_v60  ;;  %v3977_v48 = vld [vmem:[%s4842_s27 + $0xd0] sm:$0xff]  ;;  %v3559_v28 = vpop.f32.mrf.mxu3 }
 0x5a6   : > { %v3598_v60 = vadd.f32 %v3556_v6, %v3316_v17 }
 0x5a7   : > { %v3941_v51 = vadd.f32 %v7024_v43, %v3905_v2  ;;  %v7390_v2 = vld [vmem:[#allocation21_spill] sm:$0xff] }
 0x5a8   : > { %v3161_v36 = vadd.f32 %v7000_v44, %v7390_v2  ;;  %v3754_v42 = vadd.f32 %v3712_v4, %v3598_v60  ;;  %v3981_v4 = vld [vmem:[%s4842_s27 + $0xf0] sm:$0xff] }
 0x5a9   : > { %v4005_v55 = vadd.f32 %v3973_v25, %v3941_v51  ;;  %v3715_v34 = vpop.f32.mrf.mxu0 }
 0x5aa   : > { %v3317_v51 = vadd.f32 %v3277_v31, %v3161_v36 }
 0x5ab   : > { %v4037_v59 = vmax.f32 %v4005_v55, 0.0  ;;  %v3280_v55 = vpop.f32.mrf.mxu2 }
 0x5ac   : > { %v3856_v9 = vpop.f32.mrf.mxu1 }
 0x5ad   : > { %4069 = vst.msk [vmem:[%s7038_s25 + $0xb0] sm:$0xff] %vm225_vm2, %v4037_v59  ;;  %v3906_v8 = vadd.f32 %v3856_v9, %v3750_v37  ;;  %v3978_v59 = vld [vmem:[%s4842_s27 + $0xd8] sm:$0xff]  ;;  %v3599_v37 = vadd.f32 %v3559_v28, %v3317_v51  ;;  %v3562_v1 = vpop.f32.mrf.mxu3 }
 0x5af   : > { %v3942_v14 = vadd.f32 %v7024_v43, %v3906_v8  ;;  %v3162_v8 = vadd.f32 %v7009_v50, %v7391_v53 }
 0x5b1   : > { %v4006_v20 = vadd.f32 %v3974_v11, %v3942_v14  ;;  %v3318_v11 = vadd.f32 %v3280_v55, %v3162_v8  ;;  %v3755_v14 = vadd.f32 %v3715_v34, %v3599_v37 }
 0x5b3   : > { %v4038_v19 = vmax.f32 %v4006_v20, 0.0  ;;  %v3718_v20 = vpop.f32.mrf.mxu0  ;;  %v3283_v57 = vpop.f32.mrf.mxu2 }
 0x5b4   : > { %v3859_v62 = vpop.f32.mrf.mxu1 }
 0x5b5   : > { %4070 = vst.msk [vmem:[%s7038_s25 + $0xb8] sm:$0xff] %vm225_vm2, %v4038_v19  ;;  %v3907_v10 = vadd.f32 %v3859_v62, %v3751_v32  ;;  %v3979_v19 = vld [vmem:[%s4842_s27 + $0xe0] sm:$0xff]  ;;  %v3600_v32 = vadd.f32 %v3562_v1, %v3318_v11  ;;  %v7392_v62 = vld [vmem:[#allocation23_spill] sm:$0xff] }
 0x5b6   : > { %v3163_v50 = vadd.f32 %v7013_v22, %v7392_v62 }
 0x5b7   : > { %v3943_v30 = vadd.f32 %v7024_v43, %v3907_v10  ;;  %v3756_v23 = vadd.f32 %v3718_v20, %v3600_v32 }
 0x5b9   : > { %v4007_v49 = vadd.f32 %v3975_v15, %v3943_v30  ;;  %v3319_v15 = vadd.f32 %v3283_v57, %v3163_v50  ;;  %v3565_v30 = vpop.f32.mrf.mxu3 }
 0x5bb   : > { %v4039_v46 = vmax.f32 %v4007_v49, 0.0  ;;  %v3601_v49 = vadd.f32 %v3565_v30, %v3319_v15 }
 0x5bc   : > { %v3862_v18 = vpop.f32.mrf.mxu1 }
 0x5bd   : > { %4071 = vst.msk [vmem:[%s7038_s25 + $0xc0] sm:$0xff] %vm225_vm2, %v4039_v46  ;;  %v3908_v56 = vadd.f32 %v3862_v18, %v3752_v21  ;;  %v3721_v46 = vpop.f32.mrf.mxu0  ;;  %v3286_v21 = vpop.f32.mrf.mxu2  ;;  %v7393_v18 = vld [vmem:[#allocation24_spill] sm:$0xff] }
 0x5be   : > { %v3164_v22 = vadd.f32 %v7017_v40, %v7393_v18  ;;  %v3757_v41 = vadd.f32 %v3721_v46, %v3601_v49 }
 0x5bf   : > { %v3944_v63 = vadd.f32 %v7024_v43, %v3908_v56 }
 0x5c0   : > { %v3320_v6 = vadd.f32 %v3286_v21, %v3164_v22 }
 0x5c1   : > { %v4008_v3 = vadd.f32 %v3976_v61, %v3944_v63  ;;  %v3568_v47 = vpop.f32.mrf.mxu3 }
 0x5c3   : > { %v4040_v39 = vmax.f32 %v4008_v3, 0.0  ;;  %v3602_v3 = vadd.f32 %v3568_v47, %v3320_v6 }
 0x5c4   : > { %v3865_v24 = vpop.f32.mrf.mxu1 }
 0x5c5   : > { %4072 = vst.msk [vmem:[%s7038_s25 + $0xc8] sm:$0xff] %vm225_vm2, %v4040_v39  ;;  %v3909_v45 = vadd.f32 %v3865_v24, %v3753_v16  ;;  %v3724_v39 = vpop.f32.mrf.mxu0 }
 0x5c6   : > { %v3758_v40 = vadd.f32 %v3724_v39, %v3602_v3 }
 0x5c7   : > { %v3945_v26 = vadd.f32 %v7024_v43, %v3909_v45 }
 0x5c9   : > { %v4009_v25 = vadd.f32 %v3977_v48, %v3945_v26  ;;  %v3982_v48 = vld [vmem:[%s4842_s27 + $0xf8] sm:$0xff] }
 0x5cb   : > { %v4041_v12 = vmax.f32 %v4009_v25, 0.0 }
 0x5cc   : > { %v3868_v7 = vpop.f32.mrf.mxu1 }
 0x5cd   : > { %4073 = vst.msk [vmem:[%s7038_s25 + $0xd0] sm:$0xff] %vm225_vm2, %v4041_v12  ;;  %v3910_v5 = vadd.f32 %v3868_v7, %v3754_v42 }
 0x5cf   : > { %v3946_v9 = vadd.f32 %v7024_v43, %v3910_v5 }
 0x5d1   : > { %v4010_v44 = vadd.f32 %v3978_v59, %v3946_v9 }
 0x5d3   : > { %v4042_v52 = vmax.f32 %v4010_v44, 0.0 }
 0x5d4   : > { %v3871_v0 = vpop.f32.mrf.mxu1 }
 0x5d5   : > { %4074 = vst.msk [vmem:[%s7038_s25 + $0xd8] sm:$0xff] %vm225_vm2, %v4042_v52  ;;  %v3911_v33 = vadd.f32 %v3871_v0, %v3755_v14 }
 0x5d7   : > { %v3947_v27 = vadd.f32 %v7024_v43, %v3911_v33 }
 0x5d9   : > { %v4011_v10 = vadd.f32 %v3979_v19, %v3947_v27 }
 0x5db   : > { %v4043_v54 = vmax.f32 %v4011_v10, 0.0 }
 0x5dc   : > { %v3874_v58 = vpop.f32.mrf.mxu1 }
 0x5dd   : > { %4075 = vst.msk [vmem:[%s7038_s25 + $0xe0] sm:$0xff] %vm225_vm2, %v4043_v54  ;;  %v3912_v35 = vadd.f32 %v3874_v58, %v3756_v23 }
 0x5df   : > { %v3948_v29 = vadd.f32 %v7024_v43, %v3912_v35 }
 0x5e1   : > { %v4012_v56 = vadd.f32 %v3980_v13, %v3948_v29 }
 0x5e3   : > { %v4044_v61 = vmax.f32 %v4012_v56, 0.0 }
 0x5e4   : > { %v3877_v63 = vpop.f32.mrf.mxu1 }
 0x5e5   : > { %4076 = vst.msk [vmem:[%s7038_s25 + $0xe8] sm:$0xff] %vm225_vm2, %v4044_v61  ;;  %v3913_v38 = vadd.f32 %v3877_v63, %v3757_v41 }
 0x5e7   : > { %v3949_v31 = vadd.f32 %v7024_v43, %v3913_v38 }
 0x5e9   : > { %v4013_v17 = vadd.f32 %v3981_v4, %v3949_v31 }
 0x5eb   : > { %v4045_v16 = vmax.f32 %v4013_v17, 0.0 }
 0x5ec   : > { %v3880_v24 = vpop.f32.mrf.mxu1 }
 0x5ed   : > { %4077 = vst.msk [vmem:[%s7038_s25 + $0xf0] sm:$0xff] %vm225_vm2, %v4045_v16  ;;  %v3914_v45 = vadd.f32 %v3880_v24, %v3758_v40 }
 0x5ef   : > { %v3950_v60 = vadd.f32 %v7024_v43, %v3914_v45 }
 0x5f1   : > { %v4014_v26 = vadd.f32 %v3982_v48, %v3950_v60 }
 0x5f3   : > { %v4046_v28 = vmax.f32 %v4014_v26, 0.0 }
 0x5f5   : > { %4078 = vst.msk [vmem:[%s7038_s25 + $0xf8] sm:$0xff] %vm225_vm2, %v4046_v28 }
 0x5f6 PF: > { %s15_s18 = sadd.s32 1, %s4777_s18  }
 0x5f7   : > { %p12_p4 = scmp.ge.s32.totalorder %s15_s18, 4  }
 0x5f9   :  { %14 = sbr.rel (!%p12_p4) target bundleno = 1 (0x1), region = 90 }

</bundles_post_ra>
